<compile_context>
chip_gen: v6e
topology: v6e:2x2x1
jax: 0.10.0
libtpu: 0.0.40
codegen_flags: <defaults>
</compile_context>

<pallas_src>
import functools

import jax
import jax.numpy as jnp
from jax.experimental import pallas as pl
from jax.experimental.pallas import tpu as pltpu


# ---------------------------------------------------------------------------
# Helpers
# ---------------------------------------------------------------------------

def _round_up(x, m):
    return (x + m - 1) // m * m


def _pick_cout_tile(cop):
    # cop is a multiple of 128; largest lane-dense tile <= 512 that divides it.
    if cop <= 512:
        return cop
    for t in (512, 256, 128):
        if cop % t == 0:
            return t
    return 128


# ---------------------------------------------------------------------------
# Pallas kernels
# ---------------------------------------------------------------------------

def _conv_tap_kernel(x_ref, w_ref, b_ref, o_ref, *, taps, wo, apply_relu):
    """Implicit-im2col 3x3 conv for one (batch, cout-tile, output-row) step.

    x_ref : (1, P, Hq, Wq, Cin)  padded (parity-split if stride 2) image, bf16
    w_ref : (9, Cin, TCo)        BN-folded weights, bf16
    b_ref : (1, TCo)             BN-folded bias, f32
    o_ref : (1, 1, Wo, TCo)      one output row, bf16
    """
    ho = pl.program_id(2)
    tco = b_ref.shape[-1]
    # Fold the bias into the accumulator init (no epilogue bias add).
    acc = jnp.broadcast_to(b_ref[...], (wo, tco)).astype(jnp.float32)
    for t, (p, roff, coff) in enumerate(taps):
        # Contiguous (1, Wo, Cin) window of the VMEM-resident padded image.
        win = x_ref[0, p, pl.ds(ho + roff, 1), pl.ds(coff, wo), :]
        acc = acc + jnp.dot(win[0], w_ref[t],
                            preferred_element_type=jnp.float32)
    if apply_relu:
        acc = jnp.maximum(acc, 0.0)
    o_ref[0, 0] = acc.astype(o_ref.dtype)


def conv3x3_pallas(xt, w9, bias, taps, ho, wo, *, apply_relu=True,
                   out_dtype=jnp.bfloat16):
    """3x3 conv (+ folded BN bias, + ReLU) via in-kernel implicit im2col.

    xt   : (N, P, Hq, Wq, Cin) padded (and parity-split if stride 2), bf16
    w9   : (9, Cin, Cop)       Cop multiple of 128 (zero-padded columns), bf16
    bias : (1, Cop)            f32
    taps : 9 static (parity_block, row_offset, col_offset) triples
    Returns (N, ho, wo, Cop).
    """
    n, p, hq, wq, cin = xt.shape
    _, _, cop = w9.shape
    tco = _pick_cout_tile(cop)
    grid = (n, cop // tco, ho)

    # TODO(synk): at real TResNet spatial sizes, tile the output-row axis into
    # multi-row blocks (bigger matmul M) and row-tile the resident image
    # instead of holding the whole padded image per batch element.
    kernel = functools.partial(_conv_tap_kernel, taps=taps, wo=wo,
                               apply_relu=apply_relu)
    cost = pl.CostEstimate(
        flops=2 * n * ho * wo * 9 * cin * cop,
        transcendentals=0,
        bytes_accessed=xt.size * 2 + w9.size * 2 + bias.size * 4
        + n * ho * wo * cop * jnp.dtype(out_dtype).itemsize,
    )
    return pl.pallas_call(
        kernel,
        out_shape=jax.ShapeDtypeStruct((n, ho, wo, cop), out_dtype),
        grid_spec=pltpu.PrefetchScalarGridSpec(
            num_scalar_prefetch=0,
            grid=grid,
            in_specs=[
                # Whole padded image of batch element b; block index constant
                # across (co, row) -> DMA'd once per image, reused in VMEM.
                pl.BlockSpec((1, p, hq, wq, cin),
                             lambda b, co, r: (b, 0, 0, 0, 0)),
                pl.BlockSpec((9, cin, tco), lambda b, co, r: (0, 0, co)),
                pl.BlockSpec((1, tco), lambda b, co, r: (0, co)),
            ],
            out_specs=pl.BlockSpec((1, 1, wo, tco),
                                   lambda b, co, r: (b, r, 0, co)),
        ),
        compiler_params=pltpu.CompilerParams(
            dimension_semantics=("parallel", "parallel", "arbitrary")),
        cost_estimate=cost,
    )(xt, w9, bias)


def _gap_fc_kernel(x_ref, w_ref, b_ref, o_ref, *, inv_s):
    # Fused classifier: global average pool over the flattened spatial axis,
    # then one small MXU matmul with bias.  Everything stays in VMEM/vregs.
    pooled = jnp.sum(x_ref[...].astype(jnp.float32), axis=1) * inv_s     # (B,C)
    y = jnp.dot(pooled.astype(jnp.bfloat16), w_ref[...],
                preferred_element_type=jnp.float32) + b_ref[...]
    o_ref[...] = y


def gap_fc_pallas(x_bsc, fc_w, fc_b, num_classes):
    """(B, S, C) -> mean over S -> Linear(C, num_classes), one fused call.

    fc_w pre-padded to (C, Np) bf16 (Np multiple of 128), fc_b is (1, Np) f32.
    """
    b, s, c = x_bsc.shape
    np_ = fc_w.shape[1]
    # TODO(synk): at real TResNet sizes (B~128, S=49, C~2048) tile over batch
    # and reduce over S with an accumulator (v7x VMEM is only 64 MiB).
    out = pl.pallas_call(
        functools.partial(_gap_fc_kernel, inv_s=1.0 / s),
        out_shape=jax.ShapeDtypeStruct((b, np_), jnp.float32),
        grid=(1,),
        in_specs=[
            pl.BlockSpec((b, s, c), lambda i: (0, 0, 0)),
            pl.BlockSpec((c, np_), lambda i: (0, 0)),
            pl.BlockSpec((1, np_), lambda i: (0, 0)),
        ],
        out_specs=pl.BlockSpec((b, np_), lambda i: (0, 0)),
        compiler_params=pltpu.CompilerParams(
            dimension_semantics=("arbitrary",)),
    )(x_bsc, fc_w, fc_b)
    return out[:, :num_classes]


# ---------------------------------------------------------------------------
# Glue: SpaceToDepth, padding / parity split, parameter construction
# ---------------------------------------------------------------------------

def space_to_depth_nchw(x, bs=2):
    # Exactly TResNet's SpaceToDepth on NCHW tensors (pure data movement).
    n, c, h, w = x.shape
    x = x.reshape(n, c, h // bs, bs, w // bs, bs)
    x = jnp.transpose(x, (0, 3, 5, 1, 2, 4))
    return x.reshape(n, c * bs * bs, h // bs, w // bs)


def conv_bn_relu(x_nhwc, layer, *, c_out, stride):
    """Conv3x3(stride) + folded BN + ReLU wrapper around the Pallas kernel."""
    w9, bias = layer["w"], layer["b"]
    n, h, w, cin = x_nhwc.shape
    xp = jnp.pad(x_nhwc, ((0, 0), (1, 1), (1, 1), (0, 0)))       # spatial pad=1
    if stride == 1:
        xt = xp[:, None]                                         # (N,1,H+2,W+2,C)
        ho, wo = h, w
        taps = tuple((0, ki, kj) for ki in range(3) for kj in range(3))
    else:
        # Parity (space-to-depth) split of the padded image: each stride-2 tap
        # becomes a contiguous window of one parity block.
        hp, wp = h + 2, w + 2
        assert hp % 2 == 0 and wp % 2 == 0, "even spatial dims expected"
        xt = xp.reshape(n, hp // 2, 2, wp // 2, 2, cin)
        xt = jnp.transpose(xt, (0, 2, 4, 1, 3, 5))
        xt = xt.reshape(n, 4, hp // 2, wp // 2, cin)
        ho, wo = h // 2, w // 2
        taps = tuple(((ki % 2) * 2 + (kj % 2), ki // 2, kj // 2)
                     for ki in range(3) for kj in range(3))
    y = conv3x3_pallas(xt, w9, bias, taps, ho, wo, apply_relu=True)
    return y[..., :c_out]                 # drop zero-padded output channels


def make_conv_bn_params(key, c_in, c_out, eps=1e-5):
    """BN-folded conv params, padded/cast ONCE (not per forward call).

    Weight layout (9, c_in, c_out_pad): tap t = ki*3 + kj corresponds to the
    PyTorch weight slice W[:, :, ki, kj].T (c_in, c_out).
    """
    kw_, kg, kb, km, kv = jax.random.split(key, 5)
    w = jax.random.normal(kw_, (9, c_in, c_out), jnp.float32) * 0.05
    gamma = 1.0 + 0.1 * jax.random.normal(kg, (c_out,), jnp.float32)
    beta = 0.1 * jax.random.normal(kb, (c_out,), jnp.float32)
    mean = 0.1 * jax.random.normal(km, (c_out,), jnp.float32)
    var = jnp.abs(jax.random.normal(kv, (c_out,), jnp.float32)) + 0.5
    scale = gamma / jnp.sqrt(var + eps)            # folded inference BN
    bias = beta - mean * scale
    cop = _round_up(c_out, 128)                    # lane-dense output channels
    w_folded = w * scale[None, None, :]
    w_p = jnp.pad(w_folded, ((0, 0), (0, 0), (0, cop - c_out))).astype(jnp.bfloat16)
    b_p = jnp.pad(bias, (0, cop - c_out)).reshape(1, cop).astype(jnp.float32)
    return {"w": w_p, "b": b_p}


def make_fc_params(key, c_in, n_cls):
    kw_, kb = jax.random.split(key)
    w = jax.random.normal(kw_, (c_in, n_cls), jnp.float32) * 0.05
    b = 0.1 * jax.random.normal(kb, (n_cls,), jnp.float32)
    npad = _round_up(n_cls, 128)
    return {"w": jnp.pad(w, ((0, 0), (0, npad - n_cls))).astype(jnp.bfloat16),
            "b": jnp.pad(b, (0, npad - n_cls)).reshape(1, npad).astype(jnp.float32)}


# ---------------------------------------------------------------------------
# Full forward pass
# ---------------------------------------------------------------------------

def build_forward(couts, num_classes):
    """couts holds the true (unpadded) per-layer output channel counts; they
    are closed over as static Python ints so channel slicing stays static."""
    def forward(x_nchw, params):
        # net_layer_0: SpaceToDepth (pure data movement, stays XLA)
        x = space_to_depth_nchw(x_nchw, 2)
        x = jnp.transpose(x, (0, 2, 3, 1)).astype(jnp.bfloat16)   # NCHW -> NHWC

        x = conv_bn_relu(x, params["l1"], c_out=couts["l1"], stride=1)   # layer_1
        x = conv_bn_relu(x, params["l2"], c_out=couts["l2"], stride=1)   # layer_2
        x1 = conv_bn_relu(x, params["l3"], c_out=couts["l3"], stride=2)  # layer_3
        x2 = conv_bn_relu(x1, params["l4"], c_out=couts["l4"], stride=2) # layer_4
        x3 = conv_bn_relu(x2, params["l5"], c_out=couts["l5"], stride=2) # layer_5

        # classifier_pool + view(B, -1) + classifier_initial (fused)
        b, h3, w3, c3 = x3.shape
        out = gap_fc_pallas(x3.reshape(b, h3 * w3, c3),
                            params["fc"]["w"], params["fc"]["b"], num_classes)

        to_nchw = lambda t: jnp.transpose(t, (0, 3, 1, 2)).astype(jnp.float32)
        return out, to_nchw(x1), to_nchw(x2), to_nchw(x3)
    return forward


# ---------------------------------------------------------------------------
# Main
# ---------------------------------------------------------------------------

if __name__ == "__main__":
    key = jax.random.PRNGKey(0)
    kx, k1, k2, k3, k4, k5, kfc = jax.random.split(key, 7)

    # Input (NCHW), small shapes: batch=2, channels=4, spatial=16
    x = jax.random.normal(kx, (2, 4, 16, 16), jnp.float32)

    c_stem = 4 * 4  # after SpaceToDepth(block=2)
    num_classes = 10
    couts = {"l1": 32, "l2": 32, "l3": 64, "l4": 128, "l5": 256}
    params = {
        "l1": make_conv_bn_params(k1, c_stem, couts["l1"]),
        "l2": make_conv_bn_params(k2, couts["l1"], couts["l2"]),
        "l3": make_conv_bn_params(k3, couts["l2"], couts["l3"]),
        "l4": make_conv_bn_params(k4, couts["l3"], couts["l4"]),
        "l5": make_conv_bn_params(k5, couts["l4"], couts["l5"]),
        "fc": make_fc_params(kfc, couts["l5"], num_classes),
    }

    fwd = jax.jit(build_forward(couts, num_classes))
    out, x1, x2, x3 = fwd(x, params)
    jax.block_until_ready((out, x1, x2, x3))

    assert out.shape == (2, num_classes)
    assert x1.shape == (2, 64, 4, 4)
    assert x2.shape == (2, 128, 2, 2)
    assert x3.shape == (2, 256, 1, 1)
    print("KERNEL_OK")
</pallas_src>

<mosaic_0001>
module attributes {stable_mosaic.version = 11 : i64} {
  func.func @_conv_tap_kernel(%arg0: i32, %arg1: i32, %arg2: i32, %arg3: memref<1x1x10x10x16xbf16, #tpu.memory_space<vmem>>, %arg4: memref<9x16x128xbf16, #tpu.memory_space<vmem>>, %arg5: memref<1x128xf32, #tpu.memory_space<vmem>>, %arg6: memref<1x1x8x128xbf16, #tpu.memory_space<vmem>>) attributes {dimension_semantics = [#tpu.dimension_semantics<parallel>, #tpu.dimension_semantics<parallel>, #tpu.dimension_semantics<arbitrary>], iteration_bounds = array<i64: 2, 1, 8>, scalar_prefetch = 0 : i64, scratch_operands = 0 : i64, tpu.core_type = #tpu.core_type<tc>, window_params = [{transform_indices = @transform_0, window_bounds = array<i64: 1, 1, 10, 10, 16>}, {transform_indices = @transform_1, window_bounds = array<i64: 9, 16, 128>}, {transform_indices = @transform_2, window_bounds = array<i64: 1, 128>}, {transform_indices = @transform_3, window_bounds = array<i64: 1, 1, 8, 128>}]} {
    %c0 = arith.constant 0 : index
    %c0_0 = arith.constant 0 : index
    %0 = vector.load %arg5[%c0, %c0_0] : memref<1x128xf32, #tpu.memory_space<vmem>>, vector<1x128xf32>
    %1 = vector.shape_cast %0 : vector<1x128xf32> to vector<1x128xf32>
    %2 = vector.broadcast %1 : vector<1x128xf32> to vector<8x128xf32>
    %c0_i32 = arith.constant 0 : i32
    %3 = arith.addi %arg2, %c0_i32 : i32
    %c0_1 = arith.constant 0 : index
    %c0_2 = arith.constant 0 : index
    %4 = arith.index_cast %3 : i32 to index
    %c0_3 = arith.constant 0 : index
    %c0_4 = arith.constant 0 : index
    %5 = vector.load %arg3[%c0_1, %c0_2, %4, %c0_3, %c0_4] : memref<1x1x10x10x16xbf16, #tpu.memory_space<vmem>>, vector<1x1x1x8x16xbf16>
    %6 = vector.shape_cast %5 : vector<1x1x1x8x16xbf16> to vector<1x8x16xbf16>
    %7 = vector.shape_cast %6 : vector<1x8x16xbf16> to vector<8x16xbf16>
    %c0_5 = arith.constant 0 : index
    %c0_6 = arith.constant 0 : index
    %c0_7 = arith.constant 0 : index
    %8 = vector.load %arg4[%c0_5, %c0_6, %c0_7] : memref<9x16x128xbf16, #tpu.memory_space<vmem>>, vector<1x16x128xbf16>
    %9 = vector.shape_cast %8 : vector<1x16x128xbf16> to vector<16x128xbf16>
    %cst = arith.constant dense<0.000000e+00> : vector<8x128xf32>
    %10 = tpu.matmul %7, %9, %cst {dimension_numbers = #tpu.dot_dimension_numbers<[1], [0], [0], [1], [0, 0, 1, 1], [], []>} : vector<8x16xbf16>, vector<16x128xbf16>, vector<8x128xf32> -> vector<8x128xf32>
    %11 = arith.addf %2, %10 : vector<8x128xf32>
    %c0_i32_8 = arith.constant 0 : i32
    %12 = arith.addi %arg2, %c0_i32_8 : i32
    %c0_9 = arith.constant 0 : index
    %c0_10 = arith.constant 0 : index
    %13 = arith.index_cast %12 : i32 to index
    %c1 = arith.constant 1 : index
    %c0_11 = arith.constant 0 : index
    %14 = vector.load %arg3[%c0_9, %c0_10, %13, %c1, %c0_11] : memref<1x1x10x10x16xbf16, #tpu.memory_space<vmem>>, vector<1x1x1x8x16xbf16>
    %15 = vector.shape_cast %14 : vector<1x1x1x8x16xbf16> to vector<1x8x16xbf16>
    %16 = vector.shape_cast %15 : vector<1x8x16xbf16> to vector<8x16xbf16>
    %c1_12 = arith.constant 1 : index
    %c0_13 = arith.constant 0 : index
    %c0_14 = arith.constant 0 : index
    %17 = vector.load %arg4[%c1_12, %c0_13, %c0_14] : memref<9x16x128xbf16, #tpu.memory_space<vmem>>, vector<1x16x128xbf16>
    %18 = vector.shape_cast %17 : vector<1x16x128xbf16> to vector<16x128xbf16>
    %cst_15 = arith.constant dense<0.000000e+00> : vector<8x128xf32>
    %19 = tpu.matmul %16, %18, %cst_15 {dimension_numbers = #tpu.dot_dimension_numbers<[1], [0], [0], [1], [0, 0, 1, 1], [], []>} : vector<8x16xbf16>, vector<16x128xbf16>, vector<8x128xf32> -> vector<8x128xf32>
    %20 = arith.addf %11, %19 : vector<8x128xf32>
    %c0_i32_16 = arith.constant 0 : i32
    %21 = arith.addi %arg2, %c0_i32_16 : i32
    %c0_17 = arith.constant 0 : index
    %c0_18 = arith.constant 0 : index
    %22 = arith.index_cast %21 : i32 to index
    %c2 = arith.constant 2 : index
    %c0_19 = arith.constant 0 : index
    %23 = vector.load %arg3[%c0_17, %c0_18, %22, %c2, %c0_19] : memref<1x1x10x10x16xbf16, #tpu.memory_space<vmem>>, vector<1x1x1x8x16xbf16>
    %24 = vector.shape_cast %23 : vector<1x1x1x8x16xbf16> to vector<1x8x16xbf16>
    %25 = vector.shape_cast %24 : vector<1x8x16xbf16> to vector<8x16xbf16>
    %c2_20 = arith.constant 2 : index
    %c0_21 = arith.constant 0 : index
    %c0_22 = arith.constant 0 : index
    %26 = vector.load %arg4[%c2_20, %c0_21, %c0_22] : memref<9x16x128xbf16, #tpu.memory_space<vmem>>, vector<1x16x128xbf16>
    %27 = vector.shape_cast %26 : vector<1x16x128xbf16> to vector<16x128xbf16>
    %cst_23 = arith.constant dense<0.000000e+00> : vector<8x128xf32>
    %28 = tpu.matmul %25, %27, %cst_23 {dimension_numbers = #tpu.dot_dimension_numbers<[1], [0], [0], [1], [0, 0, 1, 1], [], []>} : vector<8x16xbf16>, vector<16x128xbf16>, vector<8x128xf32> -> vector<8x128xf32>
    %29 = arith.addf %20, %28 : vector<8x128xf32>
    %c1_i32 = arith.constant 1 : i32
    %30 = arith.addi %arg2, %c1_i32 : i32
    %c0_24 = arith.constant 0 : index
    %c0_25 = arith.constant 0 : index
    %31 = arith.index_cast %30 : i32 to index
    %c0_26 = arith.constant 0 : index
    %c0_27 = arith.constant 0 : index
    %32 = vector.load %arg3[%c0_24, %c0_25, %31, %c0_26, %c0_27] : memref<1x1x10x10x16xbf16, #tpu.memory_space<vmem>>, vector<1x1x1x8x16xbf16>
    %33 = vector.shape_cast %32 : vector<1x1x1x8x16xbf16> to vector<1x8x16xbf16>
    %34 = vector.shape_cast %33 : vector<1x8x16xbf16> to vector<8x16xbf16>
    %c3 = arith.constant 3 : index
    %c0_28 = arith.constant 0 : index
    %c0_29 = arith.constant 0 : index
    %35 = vector.load %arg4[%c3, %c0_28, %c0_29] : memref<9x16x128xbf16, #tpu.memory_space<vmem>>, vector<1x16x128xbf16>
    %36 = vector.shape_cast %35 : vector<1x16x128xbf16> to vector<16x128xbf16>
    %cst_30 = arith.constant dense<0.000000e+00> : vector<8x128xf32>
    %37 = tpu.matmul %34, %36, %cst_30 {dimension_numbers = #tpu.dot_dimension_numbers<[1], [0], [0], [1], [0, 0, 1, 1], [], []>} : vector<8x16xbf16>, vector<16x128xbf16>, vector<8x128xf32> -> vector<8x128xf32>
    %38 = arith.addf %29, %37 : vector<8x128xf32>
    %c1_i32_31 = arith.constant 1 : i32
    %39 = arith.addi %arg2, %c1_i32_31 : i32
    %c0_32 = arith.constant 0 : index
    %c0_33 = arith.constant 0 : index
    %40 = arith.index_cast %39 : i32 to index
    %c1_34 = arith.constant 1 : index
    %c0_35 = arith.constant 0 : index
    %41 = vector.load %arg3[%c0_32, %c0_33, %40, %c1_34, %c0_35] : memref<1x1x10x10x16xbf16, #tpu.memory_space<vmem>>, vector<1x1x1x8x16xbf16>
    %42 = vector.shape_cast %41 : vector<1x1x1x8x16xbf16> to vector<1x8x16xbf16>
    %43 = vector.shape_cast %42 : vector<1x8x16xbf16> to vector<8x16xbf16>
    %c4 = arith.constant 4 : index
    %c0_36 = arith.constant 0 : index
    %c0_37 = arith.constant 0 : index
    %44 = vector.load %arg4[%c4, %c0_36, %c0_37] : memref<9x16x128xbf16, #tpu.memory_space<vmem>>, vector<1x16x128xbf16>
    %45 = vector.shape_cast %44 : vector<1x16x128xbf16> to vector<16x128xbf16>
    %cst_38 = arith.constant dense<0.000000e+00> : vector<8x128xf32>
    %46 = tpu.matmul %43, %45, %cst_38 {dimension_numbers = #tpu.dot_dimension_numbers<[1], [0], [0], [1], [0, 0, 1, 1], [], []>} : vector<8x16xbf16>, vector<16x128xbf16>, vector<8x128xf32> -> vector<8x128xf32>
    %47 = arith.addf %38, %46 : vector<8x128xf32>
    %c1_i32_39 = arith.constant 1 : i32
    %48 = arith.addi %arg2, %c1_i32_39 : i32
    %c0_40 = arith.constant 0 : index
    %c0_41 = arith.constant 0 : index
    %49 = arith.index_cast %48 : i32 to index
    %c2_42 = arith.constant 2 : index
    %c0_43 = arith.constant 0 : index
    %50 = vector.load %arg3[%c0_40, %c0_41, %49, %c2_42, %c0_43] : memref<1x1x10x10x16xbf16, #tpu.memory_space<vmem>>, vector<1x1x1x8x16xbf16>
    %51 = vector.shape_cast %50 : vector<1x1x1x8x16xbf16> to vector<1x8x16xbf16>
    %52 = vector.shape_cast %51 : vector<1x8x16xbf16> to vector<8x16xbf16>
    %c5 = arith.constant 5 : index
    %c0_44 = arith.constant 0 : index
    %c0_45 = arith.constant 0 : index
    %53 = vector.load %arg4[%c5, %c0_44, %c0_45] : memref<9x16x128xbf16, #tpu.memory_space<vmem>>, vector<1x16x128xbf16>
    %54 = vector.shape_cast %53 : vector<1x16x128xbf16> to vector<16x128xbf16>
    %cst_46 = arith.constant dense<0.000000e+00> : vector<8x128xf32>
    %55 = tpu.matmul %52, %54, %cst_46 {dimension_numbers = #tpu.dot_dimension_numbers<[1], [0], [0], [1], [0, 0, 1, 1], [], []>} : vector<8x16xbf16>, vector<16x128xbf16>, vector<8x128xf32> -> vector<8x128xf32>
    %56 = arith.addf %47, %55 : vector<8x128xf32>
    %c2_i32 = arith.constant 2 : i32
    %57 = arith.addi %arg2, %c2_i32 : i32
    %c0_47 = arith.constant 0 : index
    %c0_48 = arith.constant 0 : index
    %58 = arith.index_cast %57 : i32 to index
    %c0_49 = arith.constant 0 : index
    %c0_50 = arith.constant 0 : index
    %59 = vector.load %arg3[%c0_47, %c0_48, %58, %c0_49, %c0_50] : memref<1x1x10x10x16xbf16, #tpu.memory_space<vmem>>, vector<1x1x1x8x16xbf16>
    %60 = vector.shape_cast %59 : vector<1x1x1x8x16xbf16> to vector<1x8x16xbf16>
    %61 = vector.shape_cast %60 : vector<1x8x16xbf16> to vector<8x16xbf16>
    %c6 = arith.constant 6 : index
    %c0_51 = arith.constant 0 : index
    %c0_52 = arith.constant 0 : index
    %62 = vector.load %arg4[%c6, %c0_51, %c0_52] : memref<9x16x128xbf16, #tpu.memory_space<vmem>>, vector<1x16x128xbf16>
    %63 = vector.shape_cast %62 : vector<1x16x128xbf16> to vector<16x128xbf16>
    %cst_53 = arith.constant dense<0.000000e+00> : vector<8x128xf32>
    %64 = tpu.matmul %61, %63, %cst_53 {dimension_numbers = #tpu.dot_dimension_numbers<[1], [0], [0], [1], [0, 0, 1, 1], [], []>} : vector<8x16xbf16>, vector<16x128xbf16>, vector<8x128xf32> -> vector<8x128xf32>
    %65 = arith.addf %56, %64 : vector<8x128xf32>
    %c2_i32_54 = arith.constant 2 : i32
    %66 = arith.addi %arg2, %c2_i32_54 : i32
    %c0_55 = arith.constant 0 : index
    %c0_56 = arith.constant 0 : index
    %67 = arith.index_cast %66 : i32 to index
    %c1_57 = arith.constant 1 : index
    %c0_58 = arith.constant 0 : index
    %68 = vector.load %arg3[%c0_55, %c0_56, %67, %c1_57, %c0_58] : memref<1x1x10x10x16xbf16, #tpu.memory_space<vmem>>, vector<1x1x1x8x16xbf16>
    %69 = vector.shape_cast %68 : vector<1x1x1x8x16xbf16> to vector<1x8x16xbf16>
    %70 = vector.shape_cast %69 : vector<1x8x16xbf16> to vector<8x16xbf16>
    %c7 = arith.constant 7 : index
    %c0_59 = arith.constant 0 : index
    %c0_60 = arith.constant 0 : index
    %71 = vector.load %arg4[%c7, %c0_59, %c0_60] : memref<9x16x128xbf16, #tpu.memory_space<vmem>>, vector<1x16x128xbf16>
    %72 = vector.shape_cast %71 : vector<1x16x128xbf16> to vector<16x128xbf16>
    %cst_61 = arith.constant dense<0.000000e+00> : vector<8x128xf32>
    %73 = tpu.matmul %70, %72, %cst_61 {dimension_numbers = #tpu.dot_dimension_numbers<[1], [0], [0], [1], [0, 0, 1, 1], [], []>} : vector<8x16xbf16>, vector<16x128xbf16>, vector<8x128xf32> -> vector<8x128xf32>
    %74 = arith.addf %65, %73 : vector<8x128xf32>
    %c2_i32_62 = arith.constant 2 : i32
    %75 = arith.addi %arg2, %c2_i32_62 : i32
    %c0_63 = arith.constant 0 : index
    %c0_64 = arith.constant 0 : index
    %76 = arith.index_cast %75 : i32 to index
    %c2_65 = arith.constant 2 : index
    %c0_66 = arith.constant 0 : index
    %77 = vector.load %arg3[%c0_63, %c0_64, %76, %c2_65, %c0_66] : memref<1x1x10x10x16xbf16, #tpu.memory_space<vmem>>, vector<1x1x1x8x16xbf16>
    %78 = vector.shape_cast %77 : vector<1x1x1x8x16xbf16> to vector<1x8x16xbf16>
    %79 = vector.shape_cast %78 : vector<1x8x16xbf16> to vector<8x16xbf16>
    %c8 = arith.constant 8 : index
    %c0_67 = arith.constant 0 : index
    %c0_68 = arith.constant 0 : index
    %80 = vector.load %arg4[%c8, %c0_67, %c0_68] : memref<9x16x128xbf16, #tpu.memory_space<vmem>>, vector<1x16x128xbf16>
    %81 = vector.shape_cast %80 : vector<1x16x128xbf16> to vector<16x128xbf16>
    %cst_69 = arith.constant dense<0.000000e+00> : vector<8x128xf32>
    %82 = tpu.matmul %79, %81, %cst_69 {dimension_numbers = #tpu.dot_dimension_numbers<[1], [0], [0], [1], [0, 0, 1, 1], [], []>} : vector<8x16xbf16>, vector<16x128xbf16>, vector<8x128xf32> -> vector<8x128xf32>
    %83 = arith.addf %74, %82 : vector<8x128xf32>
    %cst_70 = arith.constant 0.000000e+00 : f32
    %84 = vector.broadcast %cst_70 : f32 to vector<8x128xf32>
    %85 = arith.maximumf %83, %84 : vector<8x128xf32>
    %86 = arith.truncf %85 : vector<8x128xf32> to vector<8x128xbf16>
    %c0_71 = arith.constant 0 : index
    %c0_72 = arith.constant 0 : index
    %c0_73 = arith.constant 0 : index
    %c0_74 = arith.constant 0 : index
    %87 = vector.load %arg6[%c0_71, %c0_72, %c0_73, %c0_74] : memref<1x1x8x128xbf16, #tpu.memory_space<vmem>>, vector<1x1x8x128xbf16>
    %88 = vector.shape_cast %87 : vector<1x1x8x128xbf16> to vector<8x128xbf16>
    %89 = vector.shape_cast %86 : vector<8x128xbf16> to vector<1x1x8x128xbf16>
    tpu.vector_store %arg6[%c0_71, %c0_72, %c0_73, %c0_74], %89 {strides = array<i32>} : memref<1x1x8x128xbf16, #tpu.memory_space<vmem>>, vector<1x1x8x128xbf16>,
    return
  }
  func.func @transform_0(%arg0: i32, %arg1: i32, %arg2: i32) -> (i32, i32, i32, i32, i32) {
    %c0_i32 = arith.constant 0 : i32
    %c0_i32_0 = arith.constant 0 : i32
    %c0_i32_1 = arith.constant 0 : i32
    %c0_i32_2 = arith.constant 0 : i32
    %c0_i32_3 = arith.constant 0 : i32
    return %arg0, %c0_i32, %c0_i32_0, %c0_i32_1, %c0_i32_2 : i32, i32, i32, i32, i32
  }
  func.func @transform_1(%arg0: i32, %arg1: i32, %arg2: i32) -> (i32, i32, i32) {
    %c0_i32 = arith.constant 0 : i32
    %c0_i32_0 = arith.constant 0 : i32
    %c0_i32_1 = arith.constant 0 : i32
    return %c0_i32, %c0_i32_0, %arg1 : i32, i32, i32
  }
  func.func @transform_2(%arg0: i32, %arg1: i32, %arg2: i32) -> (i32, i32) {
    %c0_i32 = arith.constant 0 : i32
    %c0_i32_0 = arith.constant 0 : i32
    return %c0_i32, %arg1 : i32, i32
  }
  func.func @transform_3(%arg0: i32, %arg1: i32, %arg2: i32) -> (i32, i32, i32, i32) {
    %c0_i32 = arith.constant 0 : i32
    %c0_i32_0 = arith.constant 0 : i32
    return %arg0, %arg2, %c0_i32, %arg1 : i32, i32, i32, i32
  }
}

module attributes {stable_mosaic.version = 11 : i64} {
  func.func @_conv_tap_kernel(%arg0: i32, %arg1: i32, %arg2: i32, %arg3: memref<1x1x10x10x32xbf16, #tpu.memory_space<vmem>>, %arg4: memref<9x32x128xbf16, #tpu.memory_space<vmem>>, %arg5: memref<1x128xf32, #tpu.memory_space<vmem>>, %arg6: memref<1x1x8x128xbf16, #tpu.memory_space<vmem>>) attributes {dimension_semantics = [#tpu.dimension_semantics<parallel>, #tpu.dimension_semantics<parallel>, #tpu.dimension_semantics<arbitrary>], iteration_bounds = array<i64: 2, 1, 8>, scalar_prefetch = 0 : i64, scratch_operands = 0 : i64, tpu.core_type = #tpu.core_type<tc>, window_params = [{transform_indices = @transform_0, window_bounds = array<i64: 1, 1, 10, 10, 32>}, {transform_indices = @transform_1, window_bounds = array<i64: 9, 32, 128>}, {transform_indices = @transform_2, window_bounds = array<i64: 1, 128>}, {transform_indices = @transform_3, window_bounds = array<i64: 1, 1, 8, 128>}]} {
    %c0 = arith.constant 0 : index
    %c0_0 = arith.constant 0 : index
    %0 = vector.load %arg5[%c0, %c0_0] : memref<1x128xf32, #tpu.memory_space<vmem>>, vector<1x128xf32>
    %1 = vector.shape_cast %0 : vector<1x128xf32> to vector<1x128xf32>
    %2 = vector.broadcast %1 : vector<1x128xf32> to vector<8x128xf32>
    %c0_i32 = arith.constant 0 : i32
    %3 = arith.addi %arg2, %c0_i32 : i32
    %c0_1 = arith.constant 0 : index
    %c0_2 = arith.constant 0 : index
    %4 = arith.index_cast %3 : i32 to index
    %c0_3 = arith.constant 0 : index
    %c0_4 = arith.constant 0 : index
    %5 = vector.load %arg3[%c0_1, %c0_2, %4, %c0_3, %c0_4] : memref<1x1x10x10x32xbf16, #tpu.memory_space<vmem>>, vector<1x1x1x8x32xbf16>
    %6 = vector.shape_cast %5 : vector<1x1x1x8x32xbf16> to vector<1x8x32xbf16>
    %7 = vector.shape_cast %6 : vector<1x8x32xbf16> to vector<8x32xbf16>
    %c0_5 = arith.constant 0 : index
    %c0_6 = arith.constant 0 : index
    %c0_7 = arith.constant 0 : index
    %8 = vector.load %arg4[%c0_5, %c0_6, %c0_7] : memref<9x32x128xbf16, #tpu.memory_space<vmem>>, vector<1x32x128xbf16>
    %9 = vector.shape_cast %8 : vector<1x32x128xbf16> to vector<32x128xbf16>
    %cst = arith.constant dense<0.000000e+00> : vector<8x128xf32>
    %10 = tpu.matmul %7, %9, %cst {dimension_numbers = #tpu.dot_dimension_numbers<[1], [0], [0], [1], [0, 0, 1, 1], [], []>} : vector<8x32xbf16>, vector<32x128xbf16>, vector<8x128xf32> -> vector<8x128xf32>
    %11 = arith.addf %2, %10 : vector<8x128xf32>
    %c0_i32_8 = arith.constant 0 : i32
    %12 = arith.addi %arg2, %c0_i32_8 : i32
    %c0_9 = arith.constant 0 : index
    %c0_10 = arith.constant 0 : index
    %13 = arith.index_cast %12 : i32 to index
    %c1 = arith.constant 1 : index
    %c0_11 = arith.constant 0 : index
    %14 = vector.load %arg3[%c0_9, %c0_10, %13, %c1, %c0_11] : memref<1x1x10x10x32xbf16, #tpu.memory_space<vmem>>, vector<1x1x1x8x32xbf16>
    %15 = vector.shape_cast %14 : vector<1x1x1x8x32xbf16> to vector<1x8x32xbf16>
    %16 = vector.shape_cast %15 : vector<1x8x32xbf16> to vector<8x32xbf16>
    %c1_12 = arith.constant 1 : index
    %c0_13 = arith.constant 0 : index
    %c0_14 = arith.constant 0 : index
    %17 = vector.load %arg4[%c1_12, %c0_13, %c0_14] : memref<9x32x128xbf16, #tpu.memory_space<vmem>>, vector<1x32x128xbf16>
    %18 = vector.shape_cast %17 : vector<1x32x128xbf16> to vector<32x128xbf16>
    %cst_15 = arith.constant dense<0.000000e+00> : vector<8x128xf32>
    %19 = tpu.matmul %16, %18, %cst_15 {dimension_numbers = #tpu.dot_dimension_numbers<[1], [0], [0], [1], [0, 0, 1, 1], [], []>} : vector<8x32xbf16>, vector<32x128xbf16>, vector<8x128xf32> -> vector<8x128xf32>
    %20 = arith.addf %11, %19 : vector<8x128xf32>
    %c0_i32_16 = arith.constant 0 : i32
    %21 = arith.addi %arg2, %c0_i32_16 : i32
    %c0_17 = arith.constant 0 : index
    %c0_18 = arith.constant 0 : index
    %22 = arith.index_cast %21 : i32 to index
    %c2 = arith.constant 2 : index
    %c0_19 = arith.constant 0 : index
    %23 = vector.load %arg3[%c0_17, %c0_18, %22, %c2, %c0_19] : memref<1x1x10x10x32xbf16, #tpu.memory_space<vmem>>, vector<1x1x1x8x32xbf16>
    %24 = vector.shape_cast %23 : vector<1x1x1x8x32xbf16> to vector<1x8x32xbf16>
    %25 = vector.shape_cast %24 : vector<1x8x32xbf16> to vector<8x32xbf16>
    %c2_20 = arith.constant 2 : index
    %c0_21 = arith.constant 0 : index
    %c0_22 = arith.constant 0 : index
    %26 = vector.load %arg4[%c2_20, %c0_21, %c0_22] : memref<9x32x128xbf16, #tpu.memory_space<vmem>>, vector<1x32x128xbf16>
    %27 = vector.shape_cast %26 : vector<1x32x128xbf16> to vector<32x128xbf16>
    %cst_23 = arith.constant dense<0.000000e+00> : vector<8x128xf32>
    %28 = tpu.matmul %25, %27, %cst_23 {dimension_numbers = #tpu.dot_dimension_numbers<[1], [0], [0], [1], [0, 0, 1, 1], [], []>} : vector<8x32xbf16>, vector<32x128xbf16>, vector<8x128xf32> -> vector<8x128xf32>
    %29 = arith.addf %20, %28 : vector<8x128xf32>
    %c1_i32 = arith.constant 1 : i32
    %30 = arith.addi %arg2, %c1_i32 : i32
    %c0_24 = arith.constant 0 : index
    %c0_25 = arith.constant 0 : index
    %31 = arith.index_cast %30 : i32 to index
    %c0_26 = arith.constant 0 : index
    %c0_27 = arith.constant 0 : index
    %32 = vector.load %arg3[%c0_24, %c0_25, %31, %c0_26, %c0_27] : memref<1x1x10x10x32xbf16, #tpu.memory_space<vmem>>, vector<1x1x1x8x32xbf16>
    %33 = vector.shape_cast %32 : vector<1x1x1x8x32xbf16> to vector<1x8x32xbf16>
    %34 = vector.shape_cast %33 : vector<1x8x32xbf16> to vector<8x32xbf16>
    %c3 = arith.constant 3 : index
    %c0_28 = arith.constant 0 : index
    %c0_29 = arith.constant 0 : index
    %35 = vector.load %arg4[%c3, %c0_28, %c0_29] : memref<9x32x128xbf16, #tpu.memory_space<vmem>>, vector<1x32x128xbf16>
    %36 = vector.shape_cast %35 : vector<1x32x128xbf16> to vector<32x128xbf16>
    %cst_30 = arith.constant dense<0.000000e+00> : vector<8x128xf32>
    %37 = tpu.matmul %34, %36, %cst_30 {dimension_numbers = #tpu.dot_dimension_numbers<[1], [0], [0], [1], [0, 0, 1, 1], [], []>} : vector<8x32xbf16>, vector<32x128xbf16>, vector<8x128xf32> -> vector<8x128xf32>
    %38 = arith.addf %29, %37 : vector<8x128xf32>
    %c1_i32_31 = arith.constant 1 : i32
    %39 = arith.addi %arg2, %c1_i32_31 : i32
    %c0_32 = arith.constant 0 : index
    %c0_33 = arith.constant 0 : index
    %40 = arith.index_cast %39 : i32 to index
    %c1_34 = arith.constant 1 : index
    %c0_35 = arith.constant 0 : index
    %41 = vector.load %arg3[%c0_32, %c0_33, %40, %c1_34, %c0_35] : memref<1x1x10x10x32xbf16, #tpu.memory_space<vmem>>, vector<1x1x1x8x32xbf16>
    %42 = vector.shape_cast %41 : vector<1x1x1x8x32xbf16> to vector<1x8x32xbf16>
    %43 = vector.shape_cast %42 : vector<1x8x32xbf16> to vector<8x32xbf16>
    %c4 = arith.constant 4 : index
    %c0_36 = arith.constant 0 : index
    %c0_37 = arith.constant 0 : index
    %44 = vector.load %arg4[%c4, %c0_36, %c0_37] : memref<9x32x128xbf16, #tpu.memory_space<vmem>>, vector<1x32x128xbf16>
    %45 = vector.shape_cast %44 : vector<1x32x128xbf16> to vector<32x128xbf16>
    %cst_38 = arith.constant dense<0.000000e+00> : vector<8x128xf32>
    %46 = tpu.matmul %43, %45, %cst_38 {dimension_numbers = #tpu.dot_dimension_numbers<[1], [0], [0], [1], [0, 0, 1, 1], [], []>} : vector<8x32xbf16>, vector<32x128xbf16>, vector<8x128xf32> -> vector<8x128xf32>
    %47 = arith.addf %38, %46 : vector<8x128xf32>
    %c1_i32_39 = arith.constant 1 : i32
    %48 = arith.addi %arg2, %c1_i32_39 : i32
    %c0_40 = arith.constant 0 : index
    %c0_41 = arith.constant 0 : index
    %49 = arith.index_cast %48 : i32 to index
    %c2_42 = arith.constant 2 : index
    %c0_43 = arith.constant 0 : index
    %50 = vector.load %arg3[%c0_40, %c0_41, %49, %c2_42, %c0_43] : memref<1x1x10x10x32xbf16, #tpu.memory_space<vmem>>, vector<1x1x1x8x32xbf16>
    %51 = vector.shape_cast %50 : vector<1x1x1x8x32xbf16> to vector<1x8x32xbf16>
    %52 = vector.shape_cast %51 : vector<1x8x32xbf16> to vector<8x32xbf16>
    %c5 = arith.constant 5 : index
    %c0_44 = arith.constant 0 : index
    %c0_45 = arith.constant 0 : index
    %53 = vector.load %arg4[%c5, %c0_44, %c0_45] : memref<9x32x128xbf16, #tpu.memory_space<vmem>>, vector<1x32x128xbf16>
    %54 = vector.shape_cast %53 : vector<1x32x128xbf16> to vector<32x128xbf16>
    %cst_46 = arith.constant dense<0.000000e+00> : vector<8x128xf32>
    %55 = tpu.matmul %52, %54, %cst_46 {dimension_numbers = #tpu.dot_dimension_numbers<[1], [0], [0], [1], [0, 0, 1, 1], [], []>} : vector<8x32xbf16>, vector<32x128xbf16>, vector<8x128xf32> -> vector<8x128xf32>
    %56 = arith.addf %47, %55 : vector<8x128xf32>
    %c2_i32 = arith.constant 2 : i32
    %57 = arith.addi %arg2, %c2_i32 : i32
    %c0_47 = arith.constant 0 : index
    %c0_48 = arith.constant 0 : index
    %58 = arith.index_cast %57 : i32 to index
    %c0_49 = arith.constant 0 : index
    %c0_50 = arith.constant 0 : index
    %59 = vector.load %arg3[%c0_47, %c0_48, %58, %c0_49, %c0_50] : memref<1x1x10x10x32xbf16, #tpu.memory_space<vmem>>, vector<1x1x1x8x32xbf16>
    %60 = vector.shape_cast %59 : vector<1x1x1x8x32xbf16> to vector<1x8x32xbf16>
    %61 = vector.shape_cast %60 : vector<1x8x32xbf16> to vector<8x32xbf16>
    %c6 = arith.constant 6 : index
    %c0_51 = arith.constant 0 : index
    %c0_52 = arith.constant 0 : index
    %62 = vector.load %arg4[%c6, %c0_51, %c0_52] : memref<9x32x128xbf16, #tpu.memory_space<vmem>>, vector<1x32x128xbf16>
    %63 = vector.shape_cast %62 : vector<1x32x128xbf16> to vector<32x128xbf16>
    %cst_53 = arith.constant dense<0.000000e+00> : vector<8x128xf32>
    %64 = tpu.matmul %61, %63, %cst_53 {dimension_numbers = #tpu.dot_dimension_numbers<[1], [0], [0], [1], [0, 0, 1, 1], [], []>} : vector<8x32xbf16>, vector<32x128xbf16>, vector<8x128xf32> -> vector<8x128xf32>
    %65 = arith.addf %56, %64 : vector<8x128xf32>
    %c2_i32_54 = arith.constant 2 : i32
    %66 = arith.addi %arg2, %c2_i32_54 : i32
    %c0_55 = arith.constant 0 : index
    %c0_56 = arith.constant 0 : index
    %67 = arith.index_cast %66 : i32 to index
    %c1_57 = arith.constant 1 : index
    %c0_58 = arith.constant 0 : index
    %68 = vector.load %arg3[%c0_55, %c0_56, %67, %c1_57, %c0_58] : memref<1x1x10x10x32xbf16, #tpu.memory_space<vmem>>, vector<1x1x1x8x32xbf16>
    %69 = vector.shape_cast %68 : vector<1x1x1x8x32xbf16> to vector<1x8x32xbf16>
    %70 = vector.shape_cast %69 : vector<1x8x32xbf16> to vector<8x32xbf16>
    %c7 = arith.constant 7 : index
    %c0_59 = arith.constant 0 : index
    %c0_60 = arith.constant 0 : index
    %71 = vector.load %arg4[%c7, %c0_59, %c0_60] : memref<9x32x128xbf16, #tpu.memory_space<vmem>>, vector<1x32x128xbf16>
    %72 = vector.shape_cast %71 : vector<1x32x128xbf16> to vector<32x128xbf16>
    %cst_61 = arith.constant dense<0.000000e+00> : vector<8x128xf32>
    %73 = tpu.matmul %70, %72, %cst_61 {dimension_numbers = #tpu.dot_dimension_numbers<[1], [0], [0], [1], [0, 0, 1, 1], [], []>} : vector<8x32xbf16>, vector<32x128xbf16>, vector<8x128xf32> -> vector<8x128xf32>
    %74 = arith.addf %65, %73 : vector<8x128xf32>
    %c2_i32_62 = arith.constant 2 : i32
    %75 = arith.addi %arg2, %c2_i32_62 : i32
    %c0_63 = arith.constant 0 : index
    %c0_64 = arith.constant 0 : index
    %76 = arith.index_cast %75 : i32 to index
    %c2_65 = arith.constant 2 : index
    %c0_66 = arith.constant 0 : index
    %77 = vector.load %arg3[%c0_63, %c0_64, %76, %c2_65, %c0_66] : memref<1x1x10x10x32xbf16, #tpu.memory_space<vmem>>, vector<1x1x1x8x32xbf16>
    %78 = vector.shape_cast %77 : vector<1x1x1x8x32xbf16> to vector<1x8x32xbf16>
    %79 = vector.shape_cast %78 : vector<1x8x32xbf16> to vector<8x32xbf16>
    %c8 = arith.constant 8 : index
    %c0_67 = arith.constant 0 : index
    %c0_68 = arith.constant 0 : index
    %80 = vector.load %arg4[%c8, %c0_67, %c0_68] : memref<9x32x128xbf16, #tpu.memory_space<vmem>>, vector<1x32x128xbf16>
    %81 = vector.shape_cast %80 : vector<1x32x128xbf16> to vector<32x128xbf16>
    %cst_69 = arith.constant dense<0.000000e+00> : vector<8x128xf32>
    %82 = tpu.matmul %79, %81, %cst_69 {dimension_numbers = #tpu.dot_dimension_numbers<[1], [0], [0], [1], [0, 0, 1, 1], [], []>} : vector<8x32xbf16>, vector<32x128xbf16>, vector<8x128xf32> -> vector<8x128xf32>
    %83 = arith.addf %74, %82 : vector<8x128xf32>
    %cst_70 = arith.constant 0.000000e+00 : f32
    %84 = vector.broadcast %cst_70 : f32 to vector<8x128xf32>
    %85 = arith.maximumf %83, %84 : vector<8x128xf32>
    %86 = arith.truncf %85 : vector<8x128xf32> to vector<8x128xbf16>
    %c0_71 = arith.constant 0 : index
    %c0_72 = arith.constant 0 : index
    %c0_73 = arith.constant 0 : index
    %c0_74 = arith.constant 0 : index
    %87 = vector.load %arg6[%c0_71, %c0_72, %c0_73, %c0_74] : memref<1x1x8x128xbf16, #tpu.memory_space<vmem>>, vector<1x1x8x128xbf16>
    %88 = vector.shape_cast %87 : vector<1x1x8x128xbf16> to vector<8x128xbf16>
    %89 = vector.shape_cast %86 : vector<8x128xbf16> to vector<1x1x8x128xbf16>
    tpu.vector_store %arg6[%c0_71, %c0_72, %c0_73, %c0_74], %89 {strides = array<i32>} : memref<1x1x8x128xbf16, #tpu.memory_space<vmem>>, vector<1x1x8x128xbf16>,
    return
  }
  func.func @transform_0(%arg0: i32, %arg1: i32, %arg2: i32) -> (i32, i32, i32, i32, i32) {
    %c0_i32 = arith.constant 0 : i32
    %c0_i32_0 = arith.constant 0 : i32
    %c0_i32_1 = arith.constant 0 : i32
    %c0_i32_2 = arith.constant 0 : i32
    %c0_i32_3 = arith.constant 0 : i32
    return %arg0, %c0_i32, %c0_i32_0, %c0_i32_1, %c0_i32_2 : i32, i32, i32, i32, i32
  }
  func.func @transform_1(%arg0: i32, %arg1: i32, %arg2: i32) -> (i32, i32, i32) {
    %c0_i32 = arith.constant 0 : i32
    %c0_i32_0 = arith.constant 0 : i32
    %c0_i32_1 = arith.constant 0 : i32
    return %c0_i32, %c0_i32_0, %arg1 : i32, i32, i32
  }
  func.func @transform_2(%arg0: i32, %arg1: i32, %arg2: i32) -> (i32, i32) {
    %c0_i32 = arith.constant 0 : i32
    %c0_i32_0 = arith.constant 0 : i32
    return %c0_i32, %arg1 : i32, i32
  }
  func.func @transform_3(%arg0: i32, %arg1: i32, %arg2: i32) -> (i32, i32, i32, i32) {
    %c0_i32 = arith.constant 0 : i32
    %c0_i32_0 = arith.constant 0 : i32
    return %arg0, %arg2, %c0_i32, %arg1 : i32, i32, i32, i32
  }
}

module attributes {stable_mosaic.version = 11 : i64} {
  func.func @_conv_tap_kernel(%arg0: i32, %arg1: i32, %arg2: i32, %arg3: memref<1x4x5x5x32xbf16, #tpu.memory_space<vmem>>, %arg4: memref<9x32x128xbf16, #tpu.memory_space<vmem>>, %arg5: memref<1x128xf32, #tpu.memory_space<vmem>>, %arg6: memref<1x1x4x128xbf16, #tpu.memory_space<vmem>>) attributes {dimension_semantics = [#tpu.dimension_semantics<parallel>, #tpu.dimension_semantics<parallel>, #tpu.dimension_semantics<arbitrary>], iteration_bounds = array<i64: 2, 1, 4>, scalar_prefetch = 0 : i64, scratch_operands = 0 : i64, tpu.core_type = #tpu.core_type<tc>, window_params = [{transform_indices = @transform_0, window_bounds = array<i64: 1, 4, 5, 5, 32>}, {transform_indices = @transform_1, window_bounds = array<i64: 9, 32, 128>}, {transform_indices = @transform_2, window_bounds = array<i64: 1, 128>}, {transform_indices = @transform_3, window_bounds = array<i64: 1, 1, 4, 128>}]} {
    %c0 = arith.constant 0 : index
    %c0_0 = arith.constant 0 : index
    %0 = vector.load %arg5[%c0, %c0_0] : memref<1x128xf32, #tpu.memory_space<vmem>>, vector<1x128xf32>
    %1 = vector.shape_cast %0 : vector<1x128xf32> to vector<1x128xf32>
    %2 = vector.broadcast %1 : vector<1x128xf32> to vector<4x128xf32>
    %c0_i32 = arith.constant 0 : i32
    %3 = arith.addi %arg2, %c0_i32 : i32
    %c0_1 = arith.constant 0 : index
    %c0_2 = arith.constant 0 : index
    %4 = arith.index_cast %3 : i32 to index
    %c0_3 = arith.constant 0 : index
    %c0_4 = arith.constant 0 : index
    %5 = vector.load %arg3[%c0_1, %c0_2, %4, %c0_3, %c0_4] : memref<1x4x5x5x32xbf16, #tpu.memory_space<vmem>>, vector<1x1x1x4x32xbf16>
    %6 = vector.shape_cast %5 : vector<1x1x1x4x32xbf16> to vector<1x4x32xbf16>
    %7 = vector.shape_cast %6 : vector<1x4x32xbf16> to vector<4x32xbf16>
    %c0_5 = arith.constant 0 : index
    %c0_6 = arith.constant 0 : index
    %c0_7 = arith.constant 0 : index
    %8 = vector.load %arg4[%c0_5, %c0_6, %c0_7] : memref<9x32x128xbf16, #tpu.memory_space<vmem>>, vector<1x32x128xbf16>
    %9 = vector.shape_cast %8 : vector<1x32x128xbf16> to vector<32x128xbf16>
    %cst = arith.constant dense<0.000000e+00> : vector<4x128xf32>
    %10 = tpu.matmul %7, %9, %cst {dimension_numbers = #tpu.dot_dimension_numbers<[1], [0], [0], [1], [0, 0, 1, 1], [], []>} : vector<4x32xbf16>, vector<32x128xbf16>, vector<4x128xf32> -> vector<4x128xf32>
    %11 = arith.addf %2, %10 : vector<4x128xf32>
    %c0_i32_8 = arith.constant 0 : i32
    %12 = arith.addi %arg2, %c0_i32_8 : i32
    %c0_9 = arith.constant 0 : index
    %c1 = arith.constant 1 : index
    %13 = arith.index_cast %12 : i32 to index
    %c0_10 = arith.constant 0 : index
    %c0_11 = arith.constant 0 : index
    %14 = vector.load %arg3[%c0_9, %c1, %13, %c0_10, %c0_11] : memref<1x4x5x5x32xbf16, #tpu.memory_space<vmem>>, vector<1x1x1x4x32xbf16>
    %15 = vector.shape_cast %14 : vector<1x1x1x4x32xbf16> to vector<1x4x32xbf16>
    %16 = vector.shape_cast %15 : vector<1x4x32xbf16> to vector<4x32xbf16>
    %c1_12 = arith.constant 1 : index
    %c0_13 = arith.constant 0 : index
    %c0_14 = arith.constant 0 : index
    %17 = vector.load %arg4[%c1_12, %c0_13, %c0_14] : memref<9x32x128xbf16, #tpu.memory_space<vmem>>, vector<1x32x128xbf16>
    %18 = vector.shape_cast %17 : vector<1x32x128xbf16> to vector<32x128xbf16>
    %cst_15 = arith.constant dense<0.000000e+00> : vector<4x128xf32>
    %19 = tpu.matmul %16, %18, %cst_15 {dimension_numbers = #tpu.dot_dimension_numbers<[1], [0], [0], [1], [0, 0, 1, 1], [], []>} : vector<4x32xbf16>, vector<32x128xbf16>, vector<4x128xf32> -> vector<4x128xf32>
    %20 = arith.addf %11, %19 : vector<4x128xf32>
    %c0_i32_16 = arith.constant 0 : i32
    %21 = arith.addi %arg2, %c0_i32_16 : i32
    %c0_17 = arith.constant 0 : index
    %c0_18 = arith.constant 0 : index
    %22 = arith.index_cast %21 : i32 to index
    %c1_19 = arith.constant 1 : index
    %c0_20 = arith.constant 0 : index
    %23 = vector.load %arg3[%c0_17, %c0_18, %22, %c1_19, %c0_20] : memref<1x4x5x5x32xbf16, #tpu.memory_space<vmem>>, vector<1x1x1x4x32xbf16>
    %24 = vector.shape_cast %23 : vector<1x1x1x4x32xbf16> to vector<1x4x32xbf16>
    %25 = vector.shape_cast %24 : vector<1x4x32xbf16> to vector<4x32xbf16>
    %c2 = arith.constant 2 : index
    %c0_21 = arith.constant 0 : index
    %c0_22 = arith.constant 0 : index
    %26 = vector.load %arg4[%c2, %c0_21, %c0_22] : memref<9x32x128xbf16, #tpu.memory_space<vmem>>, vector<1x32x128xbf16>
    %27 = vector.shape_cast %26 : vector<1x32x128xbf16> to vector<32x128xbf16>
    %cst_23 = arith.constant dense<0.000000e+00> : vector<4x128xf32>
    %28 = tpu.matmul %25, %27, %cst_23 {dimension_numbers = #tpu.dot_dimension_numbers<[1], [0], [0], [1], [0, 0, 1, 1], [], []>} : vector<4x32xbf16>, vector<32x128xbf16>, vector<4x128xf32> -> vector<4x128xf32>
    %29 = arith.addf %20, %28 : vector<4x128xf32>
    %c0_i32_24 = arith.constant 0 : i32
    %30 = arith.addi %arg2, %c0_i32_24 : i32
    %c0_25 = arith.constant 0 : index
    %c2_26 = arith.constant 2 : index
    %31 = arith.index_cast %30 : i32 to index
    %c0_27 = arith.constant 0 : index
    %c0_28 = arith.constant 0 : index
    %32 = vector.load %arg3[%c0_25, %c2_26, %31, %c0_27, %c0_28] : memref<1x4x5x5x32xbf16, #tpu.memory_space<vmem>>, vector<1x1x1x4x32xbf16>
    %33 = vector.shape_cast %32 : vector<1x1x1x4x32xbf16> to vector<1x4x32xbf16>
    %34 = vector.shape_cast %33 : vector<1x4x32xbf16> to vector<4x32xbf16>
    %c3 = arith.constant 3 : index
    %c0_29 = arith.constant 0 : index
    %c0_30 = arith.constant 0 : index
    %35 = vector.load %arg4[%c3, %c0_29, %c0_30] : memref<9x32x128xbf16, #tpu.memory_space<vmem>>, vector<1x32x128xbf16>
    %36 = vector.shape_cast %35 : vector<1x32x128xbf16> to vector<32x128xbf16>
    %cst_31 = arith.constant dense<0.000000e+00> : vector<4x128xf32>
    %37 = tpu.matmul %34, %36, %cst_31 {dimension_numbers = #tpu.dot_dimension_numbers<[1], [0], [0], [1], [0, 0, 1, 1], [], []>} : vector<4x32xbf16>, vector<32x128xbf16>, vector<4x128xf32> -> vector<4x128xf32>
    %38 = arith.addf %29, %37 : vector<4x128xf32>
    %c0_i32_32 = arith.constant 0 : i32
    %39 = arith.addi %arg2, %c0_i32_32 : i32
    %c0_33 = arith.constant 0 : index
    %c3_34 = arith.constant 3 : index
    %40 = arith.index_cast %39 : i32 to index
    %c0_35 = arith.constant 0 : index
    %c0_36 = arith.constant 0 : index
    %41 = vector.load %arg3[%c0_33, %c3_34, %40, %c0_35, %c0_36] : memref<1x4x5x5x32xbf16, #tpu.memory_space<vmem>>, vector<1x1x1x4x32xbf16>
    %42 = vector.shape_cast %41 : vector<1x1x1x4x32xbf16> to vector<1x4x32xbf16>
    %43 = vector.shape_cast %42 : vector<1x4x32xbf16> to vector<4x32xbf16>
    %c4 = arith.constant 4 : index
    %c0_37 = arith.constant 0 : index
    %c0_38 = arith.constant 0 : index
    %44 = vector.load %arg4[%c4, %c0_37, %c0_38] : memref<9x32x128xbf16, #tpu.memory_space<vmem>>, vector<1x32x128xbf16>
    %45 = vector.shape_cast %44 : vector<1x32x128xbf16> to vector<32x128xbf16>
    %cst_39 = arith.constant dense<0.000000e+00> : vector<4x128xf32>
    %46 = tpu.matmul %43, %45, %cst_39 {dimension_numbers = #tpu.dot_dimension_numbers<[1], [0], [0], [1], [0, 0, 1, 1], [], []>} : vector<4x32xbf16>, vector<32x128xbf16>, vector<4x128xf32> -> vector<4x128xf32>
    %47 = arith.addf %38, %46 : vector<4x128xf32>
    %c0_i32_40 = arith.constant 0 : i32
    %48 = arith.addi %arg2, %c0_i32_40 : i32
    %c0_41 = arith.constant 0 : index
    %c2_42 = arith.constant 2 : index
    %49 = arith.index_cast %48 : i32 to index
    %c1_43 = arith.constant 1 : index
    %c0_44 = arith.constant 0 : index
    %50 = vector.load %arg3[%c0_41, %c2_42, %49, %c1_43, %c0_44] : memref<1x4x5x5x32xbf16, #tpu.memory_space<vmem>>, vector<1x1x1x4x32xbf16>
    %51 = vector.shape_cast %50 : vector<1x1x1x4x32xbf16> to vector<1x4x32xbf16>
    %52 = vector.shape_cast %51 : vector<1x4x32xbf16> to vector<4x32xbf16>
    %c5 = arith.constant 5 : index
    %c0_45 = arith.constant 0 : index
    %c0_46 = arith.constant 0 : index
    %53 = vector.load %arg4[%c5, %c0_45, %c0_46] : memref<9x32x128xbf16, #tpu.memory_space<vmem>>, vector<1x32x128xbf16>
    %54 = vector.shape_cast %53 : vector<1x32x128xbf16> to vector<32x128xbf16>
    %cst_47 = arith.constant dense<0.000000e+00> : vector<4x128xf32>
    %55 = tpu.matmul %52, %54, %cst_47 {dimension_numbers = #tpu.dot_dimension_numbers<[1], [0], [0], [1], [0, 0, 1, 1], [], []>} : vector<4x32xbf16>, vector<32x128xbf16>, vector<4x128xf32> -> vector<4x128xf32>
    %56 = arith.addf %47, %55 : vector<4x128xf32>
    %c1_i32 = arith.constant 1 : i32
    %57 = arith.addi %arg2, %c1_i32 : i32
    %c0_48 = arith.constant 0 : index
    %c0_49 = arith.constant 0 : index
    %58 = arith.index_cast %57 : i32 to index
    %c0_50 = arith.constant 0 : index
    %c0_51 = arith.constant 0 : index
    %59 = vector.load %arg3[%c0_48, %c0_49, %58, %c0_50, %c0_51] : memref<1x4x5x5x32xbf16, #tpu.memory_space<vmem>>, vector<1x1x1x4x32xbf16>
    %60 = vector.shape_cast %59 : vector<1x1x1x4x32xbf16> to vector<1x4x32xbf16>
    %61 = vector.shape_cast %60 : vector<1x4x32xbf16> to vector<4x32xbf16>
    %c6 = arith.constant 6 : index
    %c0_52 = arith.constant 0 : index
    %c0_53 = arith.constant 0 : index
    %62 = vector.load %arg4[%c6, %c0_52, %c0_53] : memref<9x32x128xbf16, #tpu.memory_space<vmem>>, vector<1x32x128xbf16>
    %63 = vector.shape_cast %62 : vector<1x32x128xbf16> to vector<32x128xbf16>
    %cst_54 = arith.constant dense<0.000000e+00> : vector<4x128xf32>
    %64 = tpu.matmul %61, %63, %cst_54 {dimension_numbers = #tpu.dot_dimension_numbers<[1], [0], [0], [1], [0, 0, 1, 1], [], []>} : vector<4x32xbf16>, vector<32x128xbf16>, vector<4x128xf32> -> vector<4x128xf32>
    %65 = arith.addf %56, %64 : vector<4x128xf32>
    %c1_i32_55 = arith.constant 1 : i32
    %66 = arith.addi %arg2, %c1_i32_55 : i32
    %c0_56 = arith.constant 0 : index
    %c1_57 = arith.constant 1 : index
    %67 = arith.index_cast %66 : i32 to index
    %c0_58 = arith.constant 0 : index
    %c0_59 = arith.constant 0 : index
    %68 = vector.load %arg3[%c0_56, %c1_57, %67, %c0_58, %c0_59] : memref<1x4x5x5x32xbf16, #tpu.memory_space<vmem>>, vector<1x1x1x4x32xbf16>
    %69 = vector.shape_cast %68 : vector<1x1x1x4x32xbf16> to vector<1x4x32xbf16>
    %70 = vector.shape_cast %69 : vector<1x4x32xbf16> to vector<4x32xbf16>
    %c7 = arith.constant 7 : index
    %c0_60 = arith.constant 0 : index
    %c0_61 = arith.constant 0 : index
    %71 = vector.load %arg4[%c7, %c0_60, %c0_61] : memref<9x32x128xbf16, #tpu.memory_space<vmem>>, vector<1x32x128xbf16>
    %72 = vector.shape_cast %71 : vector<1x32x128xbf16> to vector<32x128xbf16>
    %cst_62 = arith.constant dense<0.000000e+00> : vector<4x128xf32>
    %73 = tpu.matmul %70, %72, %cst_62 {dimension_numbers = #tpu.dot_dimension_numbers<[1], [0], [0], [1], [0, 0, 1, 1], [], []>} : vector<4x32xbf16>, vector<32x128xbf16>, vector<4x128xf32> -> vector<4x128xf32>
    %74 = arith.addf %65, %73 : vector<4x128xf32>
    %c1_i32_63 = arith.constant 1 : i32
    %75 = arith.addi %arg2, %c1_i32_63 : i32
    %c0_64 = arith.constant 0 : index
    %c0_65 = arith.constant 0 : index
    %76 = arith.index_cast %75 : i32 to index
    %c1_66 = arith.constant 1 : index
    %c0_67 = arith.constant 0 : index
    %77 = vector.load %arg3[%c0_64, %c0_65, %76, %c1_66, %c0_67] : memref<1x4x5x5x32xbf16, #tpu.memory_space<vmem>>, vector<1x1x1x4x32xbf16>
    %78 = vector.shape_cast %77 : vector<1x1x1x4x32xbf16> to vector<1x4x32xbf16>
    %79 = vector.shape_cast %78 : vector<1x4x32xbf16> to vector<4x32xbf16>
    %c8 = arith.constant 8 : index
    %c0_68 = arith.constant 0 : index
    %c0_69 = arith.constant 0 : index
    %80 = vector.load %arg4[%c8, %c0_68, %c0_69] : memref<9x32x128xbf16, #tpu.memory_space<vmem>>, vector<1x32x128xbf16>
    %81 = vector.shape_cast %80 : vector<1x32x128xbf16> to vector<32x128xbf16>
    %cst_70 = arith.constant dense<0.000000e+00> : vector<4x128xf32>
    %82 = tpu.matmul %79, %81, %cst_70 {dimension_numbers = #tpu.dot_dimension_numbers<[1], [0], [0], [1], [0, 0, 1, 1], [], []>} : vector<4x32xbf16>, vector<32x128xbf16>, vector<4x128xf32> -> vector<4x128xf32>
    %83 = arith.addf %74, %82 : vector<4x128xf32>
    %cst_71 = arith.constant 0.000000e+00 : f32
    %84 = vector.broadcast %cst_71 : f32 to vector<4x128xf32>
    %85 = arith.maximumf %83, %84 : vector<4x128xf32>
    %86 = arith.truncf %85 : vector<4x128xf32> to vector<4x128xbf16>
    %c0_72 = arith.constant 0 : index
    %c0_73 = arith.constant 0 : index
    %c0_74 = arith.constant 0 : index
    %c0_75 = arith.constant 0 : index
    %87 = vector.load %arg6[%c0_72, %c0_73, %c0_74, %c0_75] : memref<1x1x4x128xbf16, #tpu.memory_space<vmem>>, vector<1x1x4x128xbf16>
    %88 = vector.shape_cast %87 : vector<1x1x4x128xbf16> to vector<4x128xbf16>
    %89 = vector.shape_cast %86 : vector<4x128xbf16> to vector<1x1x4x128xbf16>
    tpu.vector_store %arg6[%c0_72, %c0_73, %c0_74, %c0_75], %89 {strides = array<i32>} : memref<1x1x4x128xbf16, #tpu.memory_space<vmem>>, vector<1x1x4x128xbf16>,
    return
  }
  func.func @transform_0(%arg0: i32, %arg1: i32, %arg2: i32) -> (i32, i32, i32, i32, i32) {
    %c0_i32 = arith.constant 0 : i32
    %c0_i32_0 = arith.constant 0 : i32
    %c0_i32_1 = arith.constant 0 : i32
    %c0_i32_2 = arith.constant 0 : i32
    %c0_i32_3 = arith.constant 0 : i32
    return %arg0, %c0_i32, %c0_i32_0, %c0_i32_1, %c0_i32_2 : i32, i32, i32, i32, i32
  }
  func.func @transform_1(%arg0: i32, %arg1: i32, %arg2: i32) -> (i32, i32, i32) {
    %c0_i32 = arith.constant 0 : i32
    %c0_i32_0 = arith.constant 0 : i32
    %c0_i32_1 = arith.constant 0 : i32
    return %c0_i32, %c0_i32_0, %arg1 : i32, i32, i32
  }
  func.func @transform_2(%arg0: i32, %arg1: i32, %arg2: i32) -> (i32, i32) {
    %c0_i32 = arith.constant 0 : i32
    %c0_i32_0 = arith.constant 0 : i32
    return %c0_i32, %arg1 : i32, i32
  }
  func.func @transform_3(%arg0: i32, %arg1: i32, %arg2: i32) -> (i32, i32, i32, i32) {
    %c0_i32 = arith.constant 0 : i32
    %c0_i32_0 = arith.constant 0 : i32
    return %arg0, %arg2, %c0_i32, %arg1 : i32, i32, i32, i32
  }
}

module attributes {stable_mosaic.version = 11 : i64} {
  func.func @_conv_tap_kernel(%arg0: i32, %arg1: i32, %arg2: i32, %arg3: memref<1x4x3x3x64xbf16, #tpu.memory_space<vmem>>, %arg4: memref<9x64x128xbf16, #tpu.memory_space<vmem>>, %arg5: memref<1x128xf32, #tpu.memory_space<vmem>>, %arg6: memref<1x1x2x128xbf16, #tpu.memory_space<vmem>>) attributes {dimension_semantics = [#tpu.dimension_semantics<parallel>, #tpu.dimension_semantics<parallel>, #tpu.dimension_semantics<arbitrary>], iteration_bounds = array<i64: 2, 1, 2>, scalar_prefetch = 0 : i64, scratch_operands = 0 : i64, tpu.core_type = #tpu.core_type<tc>, window_params = [{transform_indices = @transform_0, window_bounds = array<i64: 1, 4, 3, 3, 64>}, {transform_indices = @transform_1, window_bounds = array<i64: 9, 64, 128>}, {transform_indices = @transform_2, window_bounds = array<i64: 1, 128>}, {transform_indices = @transform_3, window_bounds = array<i64: 1, 1, 2, 128>}]} {
    %c0 = arith.constant 0 : index
    %c0_0 = arith.constant 0 : index
    %0 = vector.load %arg5[%c0, %c0_0] : memref<1x128xf32, #tpu.memory_space<vmem>>, vector<1x128xf32>
    %1 = vector.shape_cast %0 : vector<1x128xf32> to vector<1x128xf32>
    %2 = vector.broadcast %1 : vector<1x128xf32> to vector<2x128xf32>
    %c0_i32 = arith.constant 0 : i32
    %3 = arith.addi %arg2, %c0_i32 : i32
    %c0_1 = arith.constant 0 : index
    %c0_2 = arith.constant 0 : index
    %4 = arith.index_cast %3 : i32 to index
    %c0_3 = arith.constant 0 : index
    %c0_4 = arith.constant 0 : index
    %5 = vector.load %arg3[%c0_1, %c0_2, %4, %c0_3, %c0_4] : memref<1x4x3x3x64xbf16, #tpu.memory_space<vmem>>, vector<1x1x1x2x64xbf16>
    %6 = vector.shape_cast %5 : vector<1x1x1x2x64xbf16> to vector<1x2x64xbf16>
    %7 = vector.shape_cast %6 : vector<1x2x64xbf16> to vector<2x64xbf16>
    %c0_5 = arith.constant 0 : index
    %c0_6 = arith.constant 0 : index
    %c0_7 = arith.constant 0 : index
    %8 = vector.load %arg4[%c0_5, %c0_6, %c0_7] : memref<9x64x128xbf16, #tpu.memory_space<vmem>>, vector<1x64x128xbf16>
    %9 = vector.shape_cast %8 : vector<1x64x128xbf16> to vector<64x128xbf16>
    %cst = arith.constant dense<0.000000e+00> : vector<2x128xf32>
    %10 = tpu.matmul %7, %9, %cst {dimension_numbers = #tpu.dot_dimension_numbers<[1], [0], [0], [1], [0, 0, 1, 1], [], []>} : vector<2x64xbf16>, vector<64x128xbf16>, vector<2x128xf32> -> vector<2x128xf32>
    %11 = arith.addf %2, %10 : vector<2x128xf32>
    %c0_i32_8 = arith.constant 0 : i32
    %12 = arith.addi %arg2, %c0_i32_8 : i32
    %c0_9 = arith.constant 0 : index
    %c1 = arith.constant 1 : index
    %13 = arith.index_cast %12 : i32 to index
    %c0_10 = arith.constant 0 : index
    %c0_11 = arith.constant 0 : index
    %14 = vector.load %arg3[%c0_9, %c1, %13, %c0_10, %c0_11] : memref<1x4x3x3x64xbf16, #tpu.memory_space<vmem>>, vector<1x1x1x2x64xbf16>
    %15 = vector.shape_cast %14 : vector<1x1x1x2x64xbf16> to vector<1x2x64xbf16>
    %16 = vector.shape_cast %15 : vector<1x2x64xbf16> to vector<2x64xbf16>
    %c1_12 = arith.constant 1 : index
    %c0_13 = arith.constant 0 : index
    %c0_14 = arith.constant 0 : index
    %17 = vector.load %arg4[%c1_12, %c0_13, %c0_14] : memref<9x64x128xbf16, #tpu.memory_space<vmem>>, vector<1x64x128xbf16>
    %18 = vector.shape_cast %17 : vector<1x64x128xbf16> to vector<64x128xbf16>
    %cst_15 = arith.constant dense<0.000000e+00> : vector<2x128xf32>
    %19 = tpu.matmul %16, %18, %cst_15 {dimension_numbers = #tpu.dot_dimension_numbers<[1], [0], [0], [1], [0, 0, 1, 1], [], []>} : vector<2x64xbf16>, vector<64x128xbf16>, vector<2x128xf32> -> vector<2x128xf32>
    %20 = arith.addf %11, %19 : vector<2x128xf32>
    %c0_i32_16 = arith.constant 0 : i32
    %21 = arith.addi %arg2, %c0_i32_16 : i32
    %c0_17 = arith.constant 0 : index
    %c0_18 = arith.constant 0 : index
    %22 = arith.index_cast %21 : i32 to index
    %c1_19 = arith.constant 1 : index
    %c0_20 = arith.constant 0 : index
    %23 = vector.load %arg3[%c0_17, %c0_18, %22, %c1_19, %c0_20] : memref<1x4x3x3x64xbf16, #tpu.memory_space<vmem>>, vector<1x1x1x2x64xbf16>
    %24 = vector.shape_cast %23 : vector<1x1x1x2x64xbf16> to vector<1x2x64xbf16>
    %25 = vector.shape_cast %24 : vector<1x2x64xbf16> to vector<2x64xbf16>
    %c2 = arith.constant 2 : index
    %c0_21 = arith.constant 0 : index
    %c0_22 = arith.constant 0 : index
    %26 = vector.load %arg4[%c2, %c0_21, %c0_22] : memref<9x64x128xbf16, #tpu.memory_space<vmem>>, vector<1x64x128xbf16>
    %27 = vector.shape_cast %26 : vector<1x64x128xbf16> to vector<64x128xbf16>
    %cst_23 = arith.constant dense<0.000000e+00> : vector<2x128xf32>
    %28 = tpu.matmul %25, %27, %cst_23 {dimension_numbers = #tpu.dot_dimension_numbers<[1], [0], [0], [1], [0, 0, 1, 1], [], []>} : vector<2x64xbf16>, vector<64x128xbf16>, vector<2x128xf32> -> vector<2x128xf32>
    %29 = arith.addf %20, %28 : vector<2x128xf32>
    %c0_i32_24 = arith.constant 0 : i32
    %30 = arith.addi %arg2, %c0_i32_24 : i32
    %c0_25 = arith.constant 0 : index
    %c2_26 = arith.constant 2 : index
    %31 = arith.index_cast %30 : i32 to index
    %c0_27 = arith.constant 0 : index
    %c0_28 = arith.constant 0 : index
    %32 = vector.load %arg3[%c0_25, %c2_26, %31, %c0_27, %c0_28] : memref<1x4x3x3x64xbf16, #tpu.memory_space<vmem>>, vector<1x1x1x2x64xbf16>
    %33 = vector.shape_cast %32 : vector<1x1x1x2x64xbf16> to vector<1x2x64xbf16>
    %34 = vector.shape_cast %33 : vector<1x2x64xbf16> to vector<2x64xbf16>
    %c3 = arith.constant 3 : index
    %c0_29 = arith.constant 0 : index
    %c0_30 = arith.constant 0 : index
    %35 = vector.load %arg4[%c3, %c0_29, %c0_30] : memref<9x64x128xbf16, #tpu.memory_space<vmem>>, vector<1x64x128xbf16>
    %36 = vector.shape_cast %35 : vector<1x64x128xbf16> to vector<64x128xbf16>
    %cst_31 = arith.constant dense<0.000000e+00> : vector<2x128xf32>
    %37 = tpu.matmul %34, %36, %cst_31 {dimension_numbers = #tpu.dot_dimension_numbers<[1], [0], [0], [1], [0, 0, 1, 1], [], []>} : vector<2x64xbf16>, vector<64x128xbf16>, vector<2x128xf32> -> vector<2x128xf32>
    %38 = arith.addf %29, %37 : vector<2x128xf32>
    %c0_i32_32 = arith.constant 0 : i32
    %39 = arith.addi %arg2, %c0_i32_32 : i32
    %c0_33 = arith.constant 0 : index
    %c3_34 = arith.constant 3 : index
    %40 = arith.index_cast %39 : i32 to index
    %c0_35 = arith.constant 0 : index
    %c0_36 = arith.constant 0 : index
    %41 = vector.load %arg3[%c0_33, %c3_34, %40, %c0_35, %c0_36] : memref<1x4x3x3x64xbf16, #tpu.memory_space<vmem>>, vector<1x1x1x2x64xbf16>
    %42 = vector.shape_cast %41 : vector<1x1x1x2x64xbf16> to vector<1x2x64xbf16>
    %43 = vector.shape_cast %42 : vector<1x2x64xbf16> to vector<2x64xbf16>
    %c4 = arith.constant 4 : index
    %c0_37 = arith.constant 0 : index
    %c0_38 = arith.constant 0 : index
    %44 = vector.load %arg4[%c4, %c0_37, %c0_38] : memref<9x64x128xbf16, #tpu.memory_space<vmem>>, vector<1x64x128xbf16>
    %45 = vector.shape_cast %44 : vector<1x64x128xbf16> to vector<64x128xbf16>
    %cst_39 = arith.constant dense<0.000000e+00> : vector<2x128xf32>
    %46 = tpu.matmul %43, %45, %cst_39 {dimension_numbers = #tpu.dot_dimension_numbers<[1], [0], [0], [1], [0, 0, 1, 1], [], []>} : vector<2x64xbf16>, vector<64x128xbf16>, vector<2x128xf32> -> vector<2x128xf32>
    %47 = arith.addf %38, %46 : vector<2x128xf32>
    %c0_i32_40 = arith.constant 0 : i32
    %48 = arith.addi %arg2, %c0_i32_40 : i32
    %c0_41 = arith.constant 0 : index
    %c2_42 = arith.constant 2 : index
    %49 = arith.index_cast %48 : i32 to index
    %c1_43 = arith.constant 1 : index
    %c0_44 = arith.constant 0 : index
    %50 = vector.load %arg3[%c0_41, %c2_42, %49, %c1_43, %c0_44] : memref<1x4x3x3x64xbf16, #tpu.memory_space<vmem>>, vector<1x1x1x2x64xbf16>
    %51 = vector.shape_cast %50 : vector<1x1x1x2x64xbf16> to vector<1x2x64xbf16>
    %52 = vector.shape_cast %51 : vector<1x2x64xbf16> to vector<2x64xbf16>
    %c5 = arith.constant 5 : index
    %c0_45 = arith.constant 0 : index
    %c0_46 = arith.constant 0 : index
    %53 = vector.load %arg4[%c5, %c0_45, %c0_46] : memref<9x64x128xbf16, #tpu.memory_space<vmem>>, vector<1x64x128xbf16>
    %54 = vector.shape_cast %53 : vector<1x64x128xbf16> to vector<64x128xbf16>
    %cst_47 = arith.constant dense<0.000000e+00> : vector<2x128xf32>
    %55 = tpu.matmul %52, %54, %cst_47 {dimension_numbers = #tpu.dot_dimension_numbers<[1], [0], [0], [1], [0, 0, 1, 1], [], []>} : vector<2x64xbf16>, vector<64x128xbf16>, vector<2x128xf32> -> vector<2x128xf32>
    %56 = arith.addf %47, %55 : vector<2x128xf32>
    %c1_i32 = arith.constant 1 : i32
    %57 = arith.addi %arg2, %c1_i32 : i32
    %c0_48 = arith.constant 0 : index
    %c0_49 = arith.constant 0 : index
    %58 = arith.index_cast %57 : i32 to index
    %c0_50 = arith.constant 0 : index
    %c0_51 = arith.constant 0 : index
    %59 = vector.load %arg3[%c0_48, %c0_49, %58, %c0_50, %c0_51] : memref<1x4x3x3x64xbf16, #tpu.memory_space<vmem>>, vector<1x1x1x2x64xbf16>
    %60 = vector.shape_cast %59 : vector<1x1x1x2x64xbf16> to vector<1x2x64xbf16>
    %61 = vector.shape_cast %60 : vector<1x2x64xbf16> to vector<2x64xbf16>
    %c6 = arith.constant 6 : index
    %c0_52 = arith.constant 0 : index
    %c0_53 = arith.constant 0 : index
    %62 = vector.load %arg4[%c6, %c0_52, %c0_53] : memref<9x64x128xbf16, #tpu.memory_space<vmem>>, vector<1x64x128xbf16>
    %63 = vector.shape_cast %62 : vector<1x64x128xbf16> to vector<64x128xbf16>
    %cst_54 = arith.constant dense<0.000000e+00> : vector<2x128xf32>
    %64 = tpu.matmul %61, %63, %cst_54 {dimension_numbers = #tpu.dot_dimension_numbers<[1], [0], [0], [1], [0, 0, 1, 1], [], []>} : vector<2x64xbf16>, vector<64x128xbf16>, vector<2x128xf32> -> vector<2x128xf32>
    %65 = arith.addf %56, %64 : vector<2x128xf32>
    %c1_i32_55 = arith.constant 1 : i32
    %66 = arith.addi %arg2, %c1_i32_55 : i32
    %c0_56 = arith.constant 0 : index
    %c1_57 = arith.constant 1 : index
    %67 = arith.index_cast %66 : i32 to index
    %c0_58 = arith.constant 0 : index
    %c0_59 = arith.constant 0 : index
    %68 = vector.load %arg3[%c0_56, %c1_57, %67, %c0_58, %c0_59] : memref<1x4x3x3x64xbf16, #tpu.memory_space<vmem>>, vector<1x1x1x2x64xbf16>
    %69 = vector.shape_cast %68 : vector<1x1x1x2x64xbf16> to vector<1x2x64xbf16>
    %70 = vector.shape_cast %69 : vector<1x2x64xbf16> to vector<2x64xbf16>
    %c7 = arith.constant 7 : index
    %c0_60 = arith.constant 0 : index
    %c0_61 = arith.constant 0 : index
    %71 = vector.load %arg4[%c7, %c0_60, %c0_61] : memref<9x64x128xbf16, #tpu.memory_space<vmem>>, vector<1x64x128xbf16>
    %72 = vector.shape_cast %71 : vector<1x64x128xbf16> to vector<64x128xbf16>
    %cst_62 = arith.constant dense<0.000000e+00> : vector<2x128xf32>
    %73 = tpu.matmul %70, %72, %cst_62 {dimension_numbers = #tpu.dot_dimension_numbers<[1], [0], [0], [1], [0, 0, 1, 1], [], []>} : vector<2x64xbf16>, vector<64x128xbf16>, vector<2x128xf32> -> vector<2x128xf32>
    %74 = arith.addf %65, %73 : vector<2x128xf32>
    %c1_i32_63 = arith.constant 1 : i32
    %75 = arith.addi %arg2, %c1_i32_63 : i32
    %c0_64 = arith.constant 0 : index
    %c0_65 = arith.constant 0 : index
    %76 = arith.index_cast %75 : i32 to index
    %c1_66 = arith.constant 1 : index
    %c0_67 = arith.constant 0 : index
    %77 = vector.load %arg3[%c0_64, %c0_65, %76, %c1_66, %c0_67] : memref<1x4x3x3x64xbf16, #tpu.memory_space<vmem>>, vector<1x1x1x2x64xbf16>
    %78 = vector.shape_cast %77 : vector<1x1x1x2x64xbf16> to vector<1x2x64xbf16>
    %79 = vector.shape_cast %78 : vector<1x2x64xbf16> to vector<2x64xbf16>
    %c8 = arith.constant 8 : index
    %c0_68 = arith.constant 0 : index
    %c0_69 = arith.constant 0 : index
    %80 = vector.load %arg4[%c8, %c0_68, %c0_69] : memref<9x64x128xbf16, #tpu.memory_space<vmem>>, vector<1x64x128xbf16>
    %81 = vector.shape_cast %80 : vector<1x64x128xbf16> to vector<64x128xbf16>
    %cst_70 = arith.constant dense<0.000000e+00> : vector<2x128xf32>
    %82 = tpu.matmul %79, %81, %cst_70 {dimension_numbers = #tpu.dot_dimension_numbers<[1], [0], [0], [1], [0, 0, 1, 1], [], []>} : vector<2x64xbf16>, vector<64x128xbf16>, vector<2x128xf32> -> vector<2x128xf32>
    %83 = arith.addf %74, %82 : vector<2x128xf32>
    %cst_71 = arith.constant 0.000000e+00 : f32
    %84 = vector.broadcast %cst_71 : f32 to vector<2x128xf32>
    %85 = arith.maximumf %83, %84 : vector<2x128xf32>
    %86 = arith.truncf %85 : vector<2x128xf32> to vector<2x128xbf16>
    %c0_72 = arith.constant 0 : index
    %c0_73 = arith.constant 0 : index
    %c0_74 = arith.constant 0 : index
    %c0_75 = arith.constant 0 : index
    %87 = vector.load %arg6[%c0_72, %c0_73, %c0_74, %c0_75] : memref<1x1x2x128xbf16, #tpu.memory_space<vmem>>, vector<1x1x2x128xbf16>
    %88 = vector.shape_cast %87 : vector<1x1x2x128xbf16> to vector<2x128xbf16>
    %89 = vector.shape_cast %86 : vector<2x128xbf16> to vector<1x1x2x128xbf16>
    tpu.vector_store %arg6[%c0_72, %c0_73, %c0_74, %c0_75], %89 {strides = array<i32>} : memref<1x1x2x128xbf16, #tpu.memory_space<vmem>>, vector<1x1x2x128xbf16>,
    return
  }
  func.func @transform_0(%arg0: i32, %arg1: i32, %arg2: i32) -> (i32, i32, i32, i32, i32) {
    %c0_i32 = arith.constant 0 : i32
    %c0_i32_0 = arith.constant 0 : i32
    %c0_i32_1 = arith.constant 0 : i32
    %c0_i32_2 = arith.constant 0 : i32
    %c0_i32_3 = arith.constant 0 : i32
    return %arg0, %c0_i32, %c0_i32_0, %c0_i32_1, %c0_i32_2 : i32, i32, i32, i32, i32
  }
  func.func @transform_1(%arg0: i32, %arg1: i32, %arg2: i32) -> (i32, i32, i32) {
    %c0_i32 = arith.constant 0 : i32
    %c0_i32_0 = arith.constant 0 : i32
    %c0_i32_1 = arith.constant 0 : i32
    return %c0_i32, %c0_i32_0, %arg1 : i32, i32, i32
  }
  func.func @transform_2(%arg0: i32, %arg1: i32, %arg2: i32) -> (i32, i32) {
    %c0_i32 = arith.constant 0 : i32
    %c0_i32_0 = arith.constant 0 : i32
    return %c0_i32, %arg1 : i32, i32
  }
  func.func @transform_3(%arg0: i32, %arg1: i32, %arg2: i32) -> (i32, i32, i32, i32) {
    %c0_i32 = arith.constant 0 : i32
    %c0_i32_0 = arith.constant 0 : i32
    return %arg0, %arg2, %c0_i32, %arg1 : i32, i32, i32, i32
  }
}

module attributes {stable_mosaic.version = 11 : i64} {
  func.func @_gap_fc_kernel(%arg0: i32, %arg1: memref<2x1x256xbf16, #tpu.memory_space<vmem>>, %arg2: memref<256x128xbf16, #tpu.memory_space<vmem>>, %arg3: memref<1x128xf32, #tpu.memory_space<vmem>>, %arg4: memref<2x128xf32, #tpu.memory_space<vmem>>) attributes {dimension_semantics = [#tpu.dimension_semantics<arbitrary>], iteration_bounds = array<i64: 1>, scalar_prefetch = 0 : i64, scratch_operands = 0 : i64, tpu.core_type = #tpu.core_type<tc>, window_params = [{pipeline_mode = #tpu.pipeline_mode<synchronous>, transform_indices = @transform_0, window_bounds = array<i64: 2, 1, 256>}, {pipeline_mode = #tpu.pipeline_mode<synchronous>, transform_indices = @transform_1, window_bounds = array<i64: 256, 128>}, {pipeline_mode = #tpu.pipeline_mode<synchronous>, transform_indices = @transform_2, window_bounds = array<i64: 1, 128>}, {pipeline_mode = #tpu.pipeline_mode<synchronous>, transform_indices = @transform_3, window_bounds = array<i64: 2, 128>}]} {
    %c0 = arith.constant 0 : index
    %c0_0 = arith.constant 0 : index
    %c0_1 = arith.constant 0 : index
    %0 = vector.load %arg1[%c0, %c0_0, %c0_1] : memref<2x1x256xbf16, #tpu.memory_space<vmem>>, vector<2x1x256xbf16>
    %1 = arith.extf %0 : vector<2x1x256xbf16> to vector<2x1x256xf32>
    %cst = arith.constant dense<0.000000e+00> : vector<2x256xf32>
    %2 = vector.multi_reduction <add>, %1, %cst [1] : vector<2x1x256xf32> to vector<2x256xf32>
    %cst_2 = arith.constant 1.000000e+00 : f32
    %3 = vector.broadcast %cst_2 : f32 to vector<2x256xf32>
    %4 = arith.mulf %2, %3 : vector<2x256xf32>
    %5 = arith.truncf %4 : vector<2x256xf32> to vector<2x256xbf16>
    %c0_3 = arith.constant 0 : index
    %c0_4 = arith.constant 0 : index
    %6 = vector.load %arg2[%c0_3, %c0_4] : memref<256x128xbf16, #tpu.memory_space<vmem>>, vector<256x128xbf16>
    %cst_5 = arith.constant dense<0.000000e+00> : vector<2x128xf32>
    %7 = tpu.matmul %5, %6, %cst_5 {dimension_numbers = #tpu.dot_dimension_numbers<[1], [0], [0], [1], [0, 0, 1, 1], [], []>} : vector<2x256xbf16>, vector<256x128xbf16>, vector<2x128xf32> -> vector<2x128xf32>
    %c0_6 = arith.constant 0 : index
    %c0_7 = arith.constant 0 : index
    %8 = vector.load %arg3[%c0_6, %c0_7] : memref<1x128xf32, #tpu.memory_space<vmem>>, vector<1x128xf32>
    %9 = vector.broadcast %8 : vector<1x128xf32> to vector<2x128xf32>
    %10 = arith.addf %7, %9 : vector<2x128xf32>
    %c0_8 = arith.constant 0 : index
    %c0_9 = arith.constant 0 : index
    %11 = vector.load %arg4[%c0_8, %c0_9] : memref<2x128xf32, #tpu.memory_space<vmem>>, vector<2x128xf32>
    tpu.vector_store %arg4[%c0_8, %c0_9], %10 {strides = array<i32>} : memref<2x128xf32, #tpu.memory_space<vmem>>, vector<2x128xf32>,
    return
  }
  func.func @transform_0(%arg0: i32) -> (i32, i32, i32) {
    %c0_i32 = arith.constant 0 : i32
    %c0_i32_0 = arith.constant 0 : i32
    %c0_i32_1 = arith.constant 0 : i32
    %c0_i32_2 = arith.constant 0 : i32
    return %c0_i32, %c0_i32_0, %c0_i32_1 : i32, i32, i32
  }
  func.func @transform_1(%arg0: i32) -> (i32, i32) {
    %c0_i32 = arith.constant 0 : i32
    %c0_i32_0 = arith.constant 0 : i32
    %c0_i32_1 = arith.constant 0 : i32
    return %c0_i32, %c0_i32_0 : i32, i32
  }
  func.func @transform_2(%arg0: i32) -> (i32, i32) {
    %c0_i32 = arith.constant 0 : i32
    %c0_i32_0 = arith.constant 0 : i32
    %c0_i32_1 = arith.constant 0 : i32
    return %c0_i32, %c0_i32_0 : i32, i32
  }
  func.func @transform_3(%arg0: i32) -> (i32, i32) {
    %c0_i32 = arith.constant 0 : i32
    %c0_i32_0 = arith.constant 0 : i32
    %c0_i32_1 = arith.constant 0 : i32
    return %c0_i32, %c0_i32_0 : i32, i32
  }
}

module attributes {stable_mosaic.version = 11 : i64} {
  func.func @_conv_tap_kernel(%arg0: i32, %arg1: i32, %arg2: i32, %arg3: memref<1x4x2x2x128xbf16, #tpu.memory_space<vmem>>, %arg4: memref<9x128x256xbf16, #tpu.memory_space<vmem>>, %arg5: memref<1x256xf32, #tpu.memory_space<vmem>>, %arg6: memref<1x1x1x256xbf16, #tpu.memory_space<vmem>>) attributes {dimension_semantics = [#tpu.dimension_semantics<parallel>, #tpu.dimension_semantics<parallel>, #tpu.dimension_semantics<arbitrary>], iteration_bounds = array<i64: 2, 1, 1>, scalar_prefetch = 0 : i64, scratch_operands = 0 : i64, tpu.core_type = #tpu.core_type<tc>, window_params = [{transform_indices = @transform_0, window_bounds = array<i64: 1, 4, 2, 2, 128>}, {transform_indices = @transform_1, window_bounds = array<i64: 9, 128, 256>}, {transform_indices = @transform_2, window_bounds = array<i64: 1, 256>}, {transform_indices = @transform_3, window_bounds = array<i64: 1, 1, 1, 256>}]} {
    %c0 = arith.constant 0 : index
    %c0_0 = arith.constant 0 : index
    %0 = vector.load %arg5[%c0, %c0_0] : memref<1x256xf32, #tpu.memory_space<vmem>>, vector<1x256xf32>
    %c0_i32 = arith.constant 0 : i32
    %1 = arith.addi %arg2, %c0_i32 : i32
    %c0_1 = arith.constant 0 : index
    %c0_2 = arith.constant 0 : index
    %2 = arith.index_cast %1 : i32 to index
    %c0_3 = arith.constant 0 : index
    %c0_4 = arith.constant 0 : index
    %3 = vector.load %arg3[%c0_1, %c0_2, %2, %c0_3, %c0_4] : memref<1x4x2x2x128xbf16, #tpu.memory_space<vmem>>, vector<1x1x1x1x128xbf16>
    %4 = vector.shape_cast %3 : vector<1x1x1x1x128xbf16> to vector<1x1x128xbf16>
    %5 = vector.shape_cast %4 : vector<1x1x128xbf16> to vector<1x128xbf16>
    %c0_5 = arith.constant 0 : index
    %c0_6 = arith.constant 0 : index
    %c0_7 = arith.constant 0 : index
    %6 = vector.load %arg4[%c0_5, %c0_6, %c0_7] : memref<9x128x256xbf16, #tpu.memory_space<vmem>>, vector<1x128x256xbf16>
    %7 = vector.shape_cast %6 : vector<1x128x256xbf16> to vector<128x256xbf16>
    %cst = arith.constant dense<0.000000e+00> : vector<1x256xf32>
    %8 = tpu.matmul %5, %7, %cst {dimension_numbers = #tpu.dot_dimension_numbers<[1], [0], [0], [1], [0, 0, 1, 1], [], []>} : vector<1x128xbf16>, vector<128x256xbf16>, vector<1x256xf32> -> vector<1x256xf32>
    %9 = arith.addf %0, %8 : vector<1x256xf32>
    %c0_i32_8 = arith.constant 0 : i32
    %10 = arith.addi %arg2, %c0_i32_8 : i32
    %c0_9 = arith.constant 0 : index
    %c1 = arith.constant 1 : index
    %11 = arith.index_cast %10 : i32 to index
    %c0_10 = arith.constant 0 : index
    %c0_11 = arith.constant 0 : index
    %12 = vector.load %arg3[%c0_9, %c1, %11, %c0_10, %c0_11] : memref<1x4x2x2x128xbf16, #tpu.memory_space<vmem>>, vector<1x1x1x1x128xbf16>
    %13 = vector.shape_cast %12 : vector<1x1x1x1x128xbf16> to vector<1x1x128xbf16>
    %14 = vector.shape_cast %13 : vector<1x1x128xbf16> to vector<1x128xbf16>
    %c1_12 = arith.constant 1 : index
    %c0_13 = arith.constant 0 : index
    %c0_14 = arith.constant 0 : index
    %15 = vector.load %arg4[%c1_12, %c0_13, %c0_14] : memref<9x128x256xbf16, #tpu.memory_space<vmem>>, vector<1x128x256xbf16>
    %16 = vector.shape_cast %15 : vector<1x128x256xbf16> to vector<128x256xbf16>
    %cst_15 = arith.constant dense<0.000000e+00> : vector<1x256xf32>
    %17 = tpu.matmul %14, %16, %cst_15 {dimension_numbers = #tpu.dot_dimension_numbers<[1], [0], [0], [1], [0, 0, 1, 1], [], []>} : vector<1x128xbf16>, vector<128x256xbf16>, vector<1x256xf32> -> vector<1x256xf32>
    %18 = arith.addf %9, %17 : vector<1x256xf32>
    %c0_i32_16 = arith.constant 0 : i32
    %19 = arith.addi %arg2, %c0_i32_16 : i32
    %c0_17 = arith.constant 0 : index
    %c0_18 = arith.constant 0 : index
    %20 = arith.index_cast %19 : i32 to index
    %c1_19 = arith.constant 1 : index
    %c0_20 = arith.constant 0 : index
    %21 = vector.load %arg3[%c0_17, %c0_18, %20, %c1_19, %c0_20] : memref<1x4x2x2x128xbf16, #tpu.memory_space<vmem>>, vector<1x1x1x1x128xbf16>
    %22 = vector.shape_cast %21 : vector<1x1x1x1x128xbf16> to vector<1x1x128xbf16>
    %23 = vector.shape_cast %22 : vector<1x1x128xbf16> to vector<1x128xbf16>
    %c2 = arith.constant 2 : index
    %c0_21 = arith.constant 0 : index
    %c0_22 = arith.constant 0 : index
    %24 = vector.load %arg4[%c2, %c0_21, %c0_22] : memref<9x128x256xbf16, #tpu.memory_space<vmem>>, vector<1x128x256xbf16>
    %25 = vector.shape_cast %24 : vector<1x128x256xbf16> to vector<128x256xbf16>
    %cst_23 = arith.constant dense<0.000000e+00> : vector<1x256xf32>
    %26 = tpu.matmul %23, %25, %cst_23 {dimension_numbers = #tpu.dot_dimension_numbers<[1], [0], [0], [1], [0, 0, 1, 1], [], []>} : vector<1x128xbf16>, vector<128x256xbf16>, vector<1x256xf32> -> vector<1x256xf32>
    %27 = arith.addf %18, %26 : vector<1x256xf32>
    %c0_i32_24 = arith.constant 0 : i32
    %28 = arith.addi %arg2, %c0_i32_24 : i32
    %c0_25 = arith.constant 0 : index
    %c2_26 = arith.constant 2 : index
    %29 = arith.index_cast %28 : i32 to index
    %c0_27 = arith.constant 0 : index
    %c0_28 = arith.constant 0 : index
    %30 = vector.load %arg3[%c0_25, %c2_26, %29, %c0_27, %c0_28] : memref<1x4x2x2x128xbf16, #tpu.memory_space<vmem>>, vector<1x1x1x1x128xbf16>
    %31 = vector.shape_cast %30 : vector<1x1x1x1x128xbf16> to vector<1x1x128xbf16>
    %32 = vector.shape_cast %31 : vector<1x1x128xbf16> to vector<1x128xbf16>
    %c3 = arith.constant 3 : index
    %c0_29 = arith.constant 0 : index
    %c0_30 = arith.constant 0 : index
    %33 = vector.load %arg4[%c3, %c0_29, %c0_30] : memref<9x128x256xbf16, #tpu.memory_space<vmem>>, vector<1x128x256xbf16>
    %34 = vector.shape_cast %33 : vector<1x128x256xbf16> to vector<128x256xbf16>
    %cst_31 = arith.constant dense<0.000000e+00> : vector<1x256xf32>
    %35 = tpu.matmul %32, %34, %cst_31 {dimension_numbers = #tpu.dot_dimension_numbers<[1], [0], [0], [1], [0, 0, 1, 1], [], []>} : vector<1x128xbf16>, vector<128x256xbf16>, vector<1x256xf32> -> vector<1x256xf32>
    %36 = arith.addf %27, %35 : vector<1x256xf32>
    %c0_i32_32 = arith.constant 0 : i32
    %37 = arith.addi %arg2, %c0_i32_32 : i32
    %c0_33 = arith.constant 0 : index
    %c3_34 = arith.constant 3 : index
    %38 = arith.index_cast %37 : i32 to index
    %c0_35 = arith.constant 0 : index
    %c0_36 = arith.constant 0 : index
    %39 = vector.load %arg3[%c0_33, %c3_34, %38, %c0_35, %c0_36] : memref<1x4x2x2x128xbf16, #tpu.memory_space<vmem>>, vector<1x1x1x1x128xbf16>
    %40 = vector.shape_cast %39 : vector<1x1x1x1x128xbf16> to vector<1x1x128xbf16>
    %41 = vector.shape_cast %40 : vector<1x1x128xbf16> to vector<1x128xbf16>
    %c4 = arith.constant 4 : index
    %c0_37 = arith.constant 0 : index
    %c0_38 = arith.constant 0 : index
    %42 = vector.load %arg4[%c4, %c0_37, %c0_38] : memref<9x128x256xbf16, #tpu.memory_space<vmem>>, vector<1x128x256xbf16>
    %43 = vector.shape_cast %42 : vector<1x128x256xbf16> to vector<128x256xbf16>
    %cst_39 = arith.constant dense<0.000000e+00> : vector<1x256xf32>
    %44 = tpu.matmul %41, %43, %cst_39 {dimension_numbers = #tpu.dot_dimension_numbers<[1], [0], [0], [1], [0, 0, 1, 1], [], []>} : vector<1x128xbf16>, vector<128x256xbf16>, vector<1x256xf32> -> vector<1x256xf32>
    %45 = arith.addf %36, %44 : vector<1x256xf32>
    %c0_i32_40 = arith.constant 0 : i32
    %46 = arith.addi %arg2, %c0_i32_40 : i32
    %c0_41 = arith.constant 0 : index
    %c2_42 = arith.constant 2 : index
    %47 = arith.index_cast %46 : i32 to index
    %c1_43 = arith.constant 1 : index
    %c0_44 = arith.constant 0 : index
    %48 = vector.load %arg3[%c0_41, %c2_42, %47, %c1_43, %c0_44] : memref<1x4x2x2x128xbf16, #tpu.memory_space<vmem>>, vector<1x1x1x1x128xbf16>
    %49 = vector.shape_cast %48 : vector<1x1x1x1x128xbf16> to vector<1x1x128xbf16>
    %50 = vector.shape_cast %49 : vector<1x1x128xbf16> to vector<1x128xbf16>
    %c5 = arith.constant 5 : index
    %c0_45 = arith.constant 0 : index
    %c0_46 = arith.constant 0 : index
    %51 = vector.load %arg4[%c5, %c0_45, %c0_46] : memref<9x128x256xbf16, #tpu.memory_space<vmem>>, vector<1x128x256xbf16>
    %52 = vector.shape_cast %51 : vector<1x128x256xbf16> to vector<128x256xbf16>
    %cst_47 = arith.constant dense<0.000000e+00> : vector<1x256xf32>
    %53 = tpu.matmul %50, %52, %cst_47 {dimension_numbers = #tpu.dot_dimension_numbers<[1], [0], [0], [1], [0, 0, 1, 1], [], []>} : vector<1x128xbf16>, vector<128x256xbf16>, vector<1x256xf32> -> vector<1x256xf32>
    %54 = arith.addf %45, %53 : vector<1x256xf32>
    %c1_i32 = arith.constant 1 : i32
    %55 = arith.addi %arg2, %c1_i32 : i32
    %c0_48 = arith.constant 0 : index
    %c0_49 = arith.constant 0 : index
    %56 = arith.index_cast %55 : i32 to index
    %c0_50 = arith.constant 0 : index
    %c0_51 = arith.constant 0 : index
    %57 = vector.load %arg3[%c0_48, %c0_49, %56, %c0_50, %c0_51] : memref<1x4x2x2x128xbf16, #tpu.memory_space<vmem>>, vector<1x1x1x1x128xbf16>
    %58 = vector.shape_cast %57 : vector<1x1x1x1x128xbf16> to vector<1x1x128xbf16>
    %59 = vector.shape_cast %58 : vector<1x1x128xbf16> to vector<1x128xbf16>
    %c6 = arith.constant 6 : index
    %c0_52 = arith.constant 0 : index
    %c0_53 = arith.constant 0 : index
    %60 = vector.load %arg4[%c6, %c0_52, %c0_53] : memref<9x128x256xbf16, #tpu.memory_space<vmem>>, vector<1x128x256xbf16>
    %61 = vector.shape_cast %60 : vector<1x128x256xbf16> to vector<128x256xbf16>
    %cst_54 = arith.constant dense<0.000000e+00> : vector<1x256xf32>
    %62 = tpu.matmul %59, %61, %cst_54 {dimension_numbers = #tpu.dot_dimension_numbers<[1], [0], [0], [1], [0, 0, 1, 1], [], []>} : vector<1x128xbf16>, vector<128x256xbf16>, vector<1x256xf32> -> vector<1x256xf32>
    %63 = arith.addf %54, %62 : vector<1x256xf32>
    %c1_i32_55 = arith.constant 1 : i32
    %64 = arith.addi %arg2, %c1_i32_55 : i32
    %c0_56 = arith.constant 0 : index
    %c1_57 = arith.constant 1 : index
    %65 = arith.index_cast %64 : i32 to index
    %c0_58 = arith.constant 0 : index
    %c0_59 = arith.constant 0 : index
    %66 = vector.load %arg3[%c0_56, %c1_57, %65, %c0_58, %c0_59] : memref<1x4x2x2x128xbf16, #tpu.memory_space<vmem>>, vector<1x1x1x1x128xbf16>
    %67 = vector.shape_cast %66 : vector<1x1x1x1x128xbf16> to vector<1x1x128xbf16>
    %68 = vector.shape_cast %67 : vector<1x1x128xbf16> to vector<1x128xbf16>
    %c7 = arith.constant 7 : index
    %c0_60 = arith.constant 0 : index
    %c0_61 = arith.constant 0 : index
    %69 = vector.load %arg4[%c7, %c0_60, %c0_61] : memref<9x128x256xbf16, #tpu.memory_space<vmem>>, vector<1x128x256xbf16>
    %70 = vector.shape_cast %69 : vector<1x128x256xbf16> to vector<128x256xbf16>
    %cst_62 = arith.constant dense<0.000000e+00> : vector<1x256xf32>
    %71 = tpu.matmul %68, %70, %cst_62 {dimension_numbers = #tpu.dot_dimension_numbers<[1], [0], [0], [1], [0, 0, 1, 1], [], []>} : vector<1x128xbf16>, vector<128x256xbf16>, vector<1x256xf32> -> vector<1x256xf32>
    %72 = arith.addf %63, %71 : vector<1x256xf32>
    %c1_i32_63 = arith.constant 1 : i32
    %73 = arith.addi %arg2, %c1_i32_63 : i32
    %c0_64 = arith.constant 0 : index
    %c0_65 = arith.constant 0 : index
    %74 = arith.index_cast %73 : i32 to index
    %c1_66 = arith.constant 1 : index
    %c0_67 = arith.constant 0 : index
    %75 = vector.load %arg3[%c0_64, %c0_65, %74, %c1_66, %c0_67] : memref<1x4x2x2x128xbf16, #tpu.memory_space<vmem>>, vector<1x1x1x1x128xbf16>
    %76 = vector.shape_cast %75 : vector<1x1x1x1x128xbf16> to vector<1x1x128xbf16>
    %77 = vector.shape_cast %76 : vector<1x1x128xbf16> to vector<1x128xbf16>
    %c8 = arith.constant 8 : index
    %c0_68 = arith.constant 0 : index
    %c0_69 = arith.constant 0 : index
    %78 = vector.load %arg4[%c8, %c0_68, %c0_69] : memref<9x128x256xbf16, #tpu.memory_space<vmem>>, vector<1x128x256xbf16>
    %79 = vector.shape_cast %78 : vector<1x128x256xbf16> to vector<128x256xbf16>
    %cst_70 = arith.constant dense<0.000000e+00> : vector<1x256xf32>
    %80 = tpu.matmul %77, %79, %cst_70 {dimension_numbers = #tpu.dot_dimension_numbers<[1], [0], [0], [1], [0, 0, 1, 1], [], []>} : vector<1x128xbf16>, vector<128x256xbf16>, vector<1x256xf32> -> vector<1x256xf32>
    %81 = arith.addf %72, %80 : vector<1x256xf32>
    %cst_71 = arith.constant 0.000000e+00 : f32
    %82 = vector.broadcast %cst_71 : f32 to vector<1x256xf32>
    %83 = arith.maximumf %81, %82 : vector<1x256xf32>
    %84 = arith.truncf %83 : vector<1x256xf32> to vector<1x256xbf16>
    %c0_72 = arith.constant 0 : index
    %c0_73 = arith.constant 0 : index
    %c0_74 = arith.constant 0 : index
    %c0_75 = arith.constant 0 : index
    %85 = vector.load %arg6[%c0_72, %c0_73, %c0_74, %c0_75] : memref<1x1x1x256xbf16, #tpu.memory_space<vmem>>, vector<1x1x1x256xbf16>
    %86 = vector.shape_cast %85 : vector<1x1x1x256xbf16> to vector<1x256xbf16>
    %87 = vector.shape_cast %84 : vector<1x256xbf16> to vector<1x1x1x256xbf16>
    tpu.vector_store %arg6[%c0_72, %c0_73, %c0_74, %c0_75], %87 {strides = array<i32>} : memref<1x1x1x256xbf16, #tpu.memory_space<vmem>>, vector<1x1x1x256xbf16>,
    return
  }
  func.func @transform_0(%arg0: i32, %arg1: i32, %arg2: i32) -> (i32, i32, i32, i32, i32) {
    %c0_i32 = arith.constant 0 : i32
    %c0_i32_0 = arith.constant 0 : i32
    %c0_i32_1 = arith.constant 0 : i32
    %c0_i32_2 = arith.constant 0 : i32
    %c0_i32_3 = arith.constant 0 : i32
    return %arg0, %c0_i32, %c0_i32_0, %c0_i32_1, %c0_i32_2 : i32, i32, i32, i32, i32
  }
  func.func @transform_1(%arg0: i32, %arg1: i32, %arg2: i32) -> (i32, i32, i32) {
    %c0_i32 = arith.constant 0 : i32
    %c0_i32_0 = arith.constant 0 : i32
    %c0_i32_1 = arith.constant 0 : i32
    return %c0_i32, %c0_i32_0, %arg1 : i32, i32, i32
  }
  func.func @transform_2(%arg0: i32, %arg1: i32, %arg2: i32) -> (i32, i32) {
    %c0_i32 = arith.constant 0 : i32
    %c0_i32_0 = arith.constant 0 : i32
    return %c0_i32, %arg1 : i32, i32
  }
  func.func @transform_3(%arg0: i32, %arg1: i32, %arg2: i32) -> (i32, i32, i32, i32) {
    %c0_i32 = arith.constant 0 : i32
    %c0_i32_0 = arith.constant 0 : i32
    return %arg0, %arg2, %c0_i32, %arg1 : i32, i32, i32, i32
  }
}

</mosaic_0001>

<bundles_post_ra>
// kernel: forward.7
= control target key start
LH: loop header
LB: loop body
LE: loop exit
PB: predicated region body
PF: predicated region fallthrough
CT: control target
= control target key end

     0   :  { %s1316_s12 = smov 0   ;;  %s1318_s13 = smov 0   ;;  %s1492_s0 = inlined_call_operand.vmem [shape: bf16[2,1,10,10,32], index: 0, kind: input, shape index: {}]   ;;  %s1493_s1 = inlined_call_operand.vmem [shape: bf16[9,32,128], index: 1, kind: input, shape index: {}]   ;;  %s1494_s2 = inlined_call_operand.vmem [shape: f32[1,128], index: 2, kind: input, shape index: {}]   ;;  %s1495_s3 = inlined_call_operand.vmem [shape: bf16[2,8,8,128], index: 3, kind: output, shape index: {}]  }
   0x1   :  { %s1320_s14 = smov 0   ;;  %s1322_s15 = smov 0  }
   0x2   :  { %s1324_s16 = smov 0  }
   0x3 LB: > { %s25_s17 = sadd.s32 1, %s1284_s14  ;;  %s32_s18 = sadd.s32 1, %s1288_s15  ;;  %s1292_s16 = sphi %s1324_s16, %s13_s16   ;;  %s1288_s15 = sphi %s1322_s15, %s1499_s15   ;;  %s1284_s14 = sphi %s1320_s14, %s1498_s14   ;;  %s1280_s13 = sphi %s1318_s13, %s1497_s13   ;;  %s1276_s12 = sphi %s1316_s12, %s1496_s12  }
   0x4   : > { %p26_p0 = scmp.ge.s32.totalorder %s25_s17, 8  ;;  %p1003_p1 = scmp.ge.s32.totalorder %s1292_s16, 1 }
   0x5   : > { %p177_p2 = scmp.lt.s32.totalorder %s1292_s16, 17 }
   0x6   : > { %s1501_s17 = smov (%p26_p0, %s25_s17), 0  ;;  %s1503_s18 = smov (!%p26_p0, %s32_s18), %s1288_s15 }
   0x7   : > { %p178_p3 = pnand %p1003_p1, %p177_p2  ;;  %p34_p4 = scmp.ge.s32.totalorder %s1503_s18, 2 }
   0x8   : > { %p214_p5 = scmp.lt.s32.totalorder (!%p178_p3), %s1280_s13, 1  ;;  %s1087_s28 = sshll.u32 (!%p178_p3), %s1276_s12, 3 }
   0x9   : > { %s1505_s18 = smov (%p34_p4, %s1503_s18), 0  ;;  %181 = sbr.rel (%p178_p3) target bundleno = 255 (0xff), region = 32 }
   0xa   : > { %p228_p6 = scmp.lt.s32.totalorder (!%p178_p3), %s1276_s12, 7 }
   0xe   : > { %v1230_v0 = vld [vmem:[%s1493_s1 + $0x8] sm:$0xff]   ;;  %v1294_v1 = vmov 0.0   ;;  %v1231_v2 = vld [vmem:[%s1493_s1] sm:$0xff]   ;;  %vm1295_vm0 = vmmov 0   ;;  %v1232_v3 = vld [vmem:[%s1493_s1 + $0x18] sm:$0xff]   ;;  %s1507_s13 = smov (!%p214_p5, %s1280_s13), 1 }
   0xf   : > { %1115 = vmatprep.subr.bf16.mxu0 %v1294_v1  ;;  %1123 = vmatprep.subr.bf16.mxu1 %v1294_v1  ;;  %v1234_v4 = vld [vmem:[%s1493_s1 + $0x10] sm:$0xff]   ;;  %s1187_s27 = smul.u32 80, %s1507_s13  ;;  %vm265_vm1 = vcmask 261120   ;;  %v1233_v5 = vld [vmem:[%s1493_s1 + $0x28] sm:$0xff]   ;;  %v1235_v11 = vld [vmem:[%s1493_s1 + $0x20] sm:$0xff]   ;;  %s1509_s12 = smov (!%p228_p6, %s1276_s12), 7 }
  0x10   : > { %1116 = vmatpush3.bf16.msra.mxu0 %v1230_v0  ;;  %1119 = vmatprep.mubr.msk.bf16.mxu0 %vm1295_vm0, %v1294_v1  ;;  %v1237_v17 = vld [vmem:[%s1493_s1 + $0x38] sm:$0xff]   ;;  %v1239_v21 = vld [vmem:[%s1493_s1 + $0x48] sm:$0xff]   ;;  %v1240_v24 = vld [vmem:[%s1493_s1 + $0x30] sm:$0xff]   ;;  %s1005_s23 = sshll.u32 %s1507_s13, 3 }
  0x11   : > { %1117 = vmatprep.subr.bf16.mxu0 %v1294_v1  ;;  %1127 = vmatprep.mubr.msk.bf16.mxu1 %vm1295_vm0, %v1294_v1  ;;  %s218_s4 = scalar_lea.vmem %s1492_s0, %s1187_s27  ;;  %v1241_v27 = vld [vmem:[%s1493_s1 + $0x40] sm:$0xff]   ;;  %v1242_v29 = vld [vmem:[%s1493_s1 + $0x58] sm:$0xff]   ;;  %v1244_v31 = vld [vmem:[%s1493_s1 + $0x68] sm:$0xff]   ;;  %s234_s24 = sadd.s32 %s1005_s23, %s1509_s12 }
  0x12   : > { %1124 = vmatpush3.bf16.msra.mxu1 %v1232_v3  ;;  %s1379_s7 = scalar_lea.vmem %s218_s4, %s1087_s28  ;;  %v1245_v37 = vld [vmem:[%s1493_s1 + $0x50] sm:$0xff]   ;;  %v1246_v38 = vld [vmem:[%s1493_s1 + $0x60] sm:$0xff]   ;;  %v1248_v40 = vld [vmem:[%s1493_s1 + $0x78] sm:$0xff]   ;;  %s1006_s25 = sshll.u32 %s234_s24, 2 }
  0x13   : > { %1125 = vmatprep.subr.bf16.mxu1 %v1294_v1  ;;  %v248_v6 = vld [vmem:[%s1379_s7] sm:$0xf]  ;;  %v311_v8 = vld [vmem:[%s1379_s7 + $0x4] sm:$0x1]  ;;  %v1038_v15 = vld [vmem:[%s1379_s7 + $0x8] sm:$0xf]  ;;  %s236_s28 = scalar_lea.vmem %s1495_s3, %s1006_s25 }
  0x14   : > { %1118 = vmatpush3.bf16.msra.mxu0 %v1231_v2  ;;  %v310_v7 = vld [vmem:[%s1379_s7] sm:$0xf]  ;;  %v1039_v16 = vld [vmem:[%s1379_s7 + $0xc] sm:$0x1]  ;;  %v1030_v28 = vld [vmem:[%s1379_s7 + $0x8] sm:$0xf] }
  0x15   : > { %1131 = vmatprep.subr.bf16.mxu0 %v1294_v1  ;;  %v1017_v9 = vcombine.low %v310_v7, %v311_v8  ;;  %v385_v10 = vld [vmem:[%s1379_s7] sm:$0xe]  ;;  %v1044_v18 = vcombine.low %v1038_v15, %v1039_v16  ;;  %v1048_v32 = vld [vmem:[%s1379_s7 + $0x8] sm:$0xe]  ;;  %v1066_v33 = vld [vmem:[%s1379_s7 + $0x10] sm:$0xf] }
  0x16   : > { %1126 = vmatpush3.bf16.msra.mxu1 %v1234_v4  ;;  %v1025_v12 = vcombine.low %v385_v10, %v311_v8  ;;  %v1067_v34 = vld [vmem:[%s1379_s7 + $0x14] sm:$0x1]  ;;  %v1053_v35 = vcombine.low %v1048_v32, %v1039_v16  ;;  %v1058_v42 = vld [vmem:[%s1379_s7 + $0x10] sm:$0xf]  ;;  %v1249_v43 = vld [vmem:[%s1493_s1 + $0x88] sm:$0xff]  }
  0x17   : > { %1139 = vmatprep.subr.bf16.mxu1 %v1294_v1  ;;  %1120 = vmatmul.mubr.msk.bf16.vlgmr.msra.gmra.mxu0 %vm265_vm1, %v248_v6  ;;  %v323_v13 = vshrl.u32 %v1017_v9, 16  ;;  %v325_v14 = vshll.u32 %v1017_v9, 16  ;;  %v532_v22 = vshll.u32 %v1044_v18, 16  ;;  %v530_v25 = vshrl.u32 %v1044_v18, 16  ;;  %v1076_v44 = vld [vmem:[%s1379_s7 + $0x10] sm:$0xe] }
  0x18   : > { %1132 = vmatpush3.bf16.msra.mxu0 %v1233_v5  ;;  %1135 = vmatprep.mubr.msk.bf16.mxu0 %vm1295_vm0, %v1294_v1  ;;  %v394_v20 = vrot.slane %v1025_v12, 1  ;;  %v1072_v36 = vcombine.low %v1066_v33, %v1067_v34  ;;  %v601_v39 = vrot.slane %v1053_v35, 1  ;;  %v1081_v47 = vcombine.low %v1076_v44, %v1067_v34  ;;  %v1250_v48 = vld [vmem:[%s1493_s1 + $0x70] sm:$0xff]   ;;  %v1251_v49 = vld [vmem:[%s1493_s1 + $0x80] sm:$0xff]  }
  0x19   : > { %1133 = vmatprep.subr.bf16.mxu0 %v1294_v1  ;;  %v327_v19 = vrot.slane %v325_v14, 1  ;;  %v534_v26 = vrot.slane %v532_v22, 1  ;;  %v1007_v58 = vld [vmem:[%s1494_s2] ss:$0 sm:$0xff] }
  0x1a   : > { %v739_v41 = vshll.u32 %v1072_v36, 16  ;;  %v737_v45 = vshrl.u32 %v1072_v36, 16  ;;  %v808_v51 = vrot.slane %v1081_v47, 1 }
  0x1b   : > { %v328_v23 = vor.u32 %v327_v19, %v323_v13  ;;  %v535_v30 = vor.u32 %v534_v26, %v530_v25 }
  0x1c   : > { %1134 = vmatpush3.bf16.msra.mxu0 %v1235_v11  ;;  %v741_v46 = vrot.slane %v739_v41, 1 }
  0x1d   : > { %1147 = vmatprep.subr.bf16.mxu0 %v1294_v1  ;;  %1128 = vmatmul.mubr.msk.bf16.vlgmr.msra.gmra.mxu1 %vm265_vm1, %v328_v23 }
  0x1e   : > { %1140 = vmatpush3.bf16.msra.mxu1 %v1237_v17  ;;  %1143 = vmatprep.mubr.msk.bf16.mxu1 %vm1295_vm0, %v1294_v1  ;;  %v742_v50 = vor.u32 %v741_v46, %v737_v45 }
  0x1f   : > { %1136 = vmatmul.mubr.msk.bf16.vlgmr.msra.gmra.mxu0 %vm265_vm1, %v394_v20  ;;  %1141 = vmatprep.subr.bf16.mxu1 %v1294_v1 }
  0x20   : > { %1148 = vmatpush3.bf16.msra.mxu0 %v1239_v21  ;;  %1151 = vmatprep.mubr.msk.bf16.mxu0 %vm1295_vm0, %v1294_v1 }
  0x21   : > { %1149 = vmatprep.subr.bf16.mxu0 %v1294_v1 }
  0x22   : > { %1142 = vmatpush3.bf16.msra.mxu1 %v1240_v24 }
  0x23   : > { %1155 = vmatprep.subr.bf16.mxu1 %v1294_v1 }
  0x24   : > { %1150 = vmatpush3.bf16.msra.mxu0 %v1241_v27 }
  0x25   : > { %1163 = vmatprep.subr.bf16.mxu0 %v1294_v1  ;;  %1144 = vmatmul.mubr.msk.bf16.vlgmr.msra.gmra.mxu1 %vm265_vm1, %v1030_v28 }
  0x26   : > { %1156 = vmatpush3.bf16.msra.mxu1 %v1242_v29  ;;  %1159 = vmatprep.mubr.msk.bf16.mxu1 %vm1295_vm0, %v1294_v1 }
  0x27   : > { %1152 = vmatmul.mubr.msk.bf16.vlgmr.msra.gmra.mxu0 %vm265_vm1, %v535_v30  ;;  %1157 = vmatprep.subr.bf16.mxu1 %v1294_v1 }
  0x28   : > { %1164 = vmatpush3.bf16.msra.mxu0 %v1244_v31  ;;  %1167 = vmatprep.mubr.msk.bf16.mxu0 %vm1295_vm0, %v1294_v1 }
  0x29   : > { %1165 = vmatprep.subr.bf16.mxu0 %v1294_v1 }
  0x2a   : > { %1158 = vmatpush3.bf16.msra.mxu1 %v1245_v37 }
  0x2b   : > { %1171 = vmatprep.subr.bf16.mxu1 %v1294_v1 }
  0x2c   : > { %1166 = vmatpush3.bf16.msra.mxu0 %v1246_v38 }
  0x2d   : > { %1179 = vmatprep.subr.bf16.mxu0 %v1294_v1  ;;  %1160 = vmatmul.mubr.msk.bf16.vlgmr.msra.gmra.mxu1 %vm265_vm1, %v601_v39 }
  0x2e   : > { %1172 = vmatpush3.bf16.msra.mxu1 %v1248_v40  ;;  %1175 = vmatprep.mubr.msk.bf16.mxu1 %vm1295_vm0, %v1294_v1 }
  0x2f   : > { %1168 = vmatmul.mubr.msk.bf16.vlgmr.msra.gmra.mxu0 %vm265_vm1, %v1058_v42  ;;  %1173 = vmatprep.subr.bf16.mxu1 %v1294_v1 }
  0x30   : > { %1180 = vmatpush3.bf16.msra.mxu0 %v1249_v43  ;;  %1183 = vmatprep.mubr.msk.bf16.mxu0 %vm1295_vm0, %v1294_v1 }
  0x31   : > { %1181 = vmatprep.subr.bf16.mxu0 %v1294_v1 }
  0x32   : > { %1174 = vmatpush3.bf16.msra.mxu1 %v1250_v48 }
  0x34   : > { %1182 = vmatpush3.bf16.msra.mxu0 %v1251_v49 }
  0x35   : > { %1176 = vmatmul.mubr.msk.bf16.vlgmr.msra.gmra.mxu1 %vm265_vm1, %v742_v50 }
  0x37   : > { %1184 = vmatmul.mubr.msk.bf16.vlgmr.msra.gmra.mxu0 %vm265_vm1, %v808_v51 }
  0xd7   : > { %v303_v52 = vpop.f32.mrf.mxu0 }
  0xd8   : > { %v309_v63 = vadd.f32 %v1007_v58, %v303_v52 }
  0xd9   : > { %v1121_v53 = vpop.f32.mrf.mxu0 }
  0xdb   : > { %v306_v54 = vpop.f32.mrf.mxu0 }
  0xdd   : > { %v1122_v55 = vpop.f32.mrf.mxu0  ;;  %v378_v56 = vpop.f32.mrf.mxu1 }
  0xde   : > { %v384_v2 = vadd.f32 %v378_v56, %v309_v63 }
  0xdf   : > { %v444_v57 = vpop.f32.mrf.mxu0  ;;  %v1129_v59 = vpop.f32.mrf.mxu1 }
  0xe0   : > { %v450_v7 = vadd.f32 %v444_v57, %v384_v2 }
  0xe1   : > { %v1137_v60 = vpop.f32.mrf.mxu0  ;;  %v381_v61 = vpop.f32.mrf.mxu1 }
  0xe3   : > { %v447_v62 = vpop.f32.mrf.mxu0  ;;  %v1130_v0 = vpop.f32.mrf.mxu1 }
  0xe5   : > { %v1138_v1 = vpop.f32.mrf.mxu0  ;;  %v510_v3 = vpop.f32.mrf.mxu1 }
  0xe6   : > { %v516_v10 = vadd.f32 %v510_v3, %v450_v7 }
  0xe7   : > { %v585_v4 = vpop.f32.mrf.mxu0  ;;  %v1145_v5 = vpop.f32.mrf.mxu1 }
  0xe8   : > { %v591_v15 = vadd.f32 %v585_v4, %v516_v10 }
  0xe9   : > { %v1153_v6 = vpop.f32.mrf.mxu0  ;;  %v513_v8 = vpop.f32.mrf.mxu1 }
  0xeb   : > { %v588_v9 = vpop.f32.mrf.mxu0  ;;  %v1146_v11 = vpop.f32.mrf.mxu1 }
  0xed   : > { %v1154_v12 = vpop.f32.mrf.mxu0  ;;  %v651_v13 = vpop.f32.mrf.mxu1 }
  0xee   : > { %v657_v18 = vadd.f32 %v651_v13, %v591_v15 }
  0xef   : > { %v717_v14 = vpop.f32.mrf.mxu0  ;;  %v1161_v16 = vpop.f32.mrf.mxu1 }
  0xf0   : > { %v723_v23 = vadd.f32 %v717_v14, %v657_v18 }
  0xf1   : > { %v1169_v17 = vpop.f32.mrf.mxu0  ;;  %v654_v19 = vpop.f32.mrf.mxu1 }
  0xf3   : > { %v720_v20 = vpop.f32.mrf.mxu0  ;;  %v1162_v21 = vpop.f32.mrf.mxu1 }
  0xf5   : > { %v1170_v22 = vpop.f32.mrf.mxu0  ;;  %v792_v24 = vpop.f32.mrf.mxu1 }
  0xf6   : > { %v798_v26 = vadd.f32 %v792_v24, %v723_v23 }
  0xf7   : > { %v858_v25 = vpop.f32.mrf.mxu0  ;;  %v1177_v27 = vpop.f32.mrf.mxu1 }
  0xf8   : > { %v864_v29 = vadd.f32 %v858_v25, %v798_v26 }
  0xf9   : > { %v1185_v28 = vpop.f32.mrf.mxu0  ;;  %v795_v30 = vpop.f32.mrf.mxu1 }
  0xfa   : > { %v865_v32 = vmax.f32 %v864_v29, 0.0 }
  0xfb   : > { %v861_v31 = vpop.f32.mrf.mxu0  ;;  %v1178_v33 = vpop.f32.mrf.mxu1 }
  0xfc   : > { %v866_v35 = vpack.c.bf16 %v865_v32, %v865_v32 }
  0xfd   : > { %v1186_v34 = vpop.f32.mrf.mxu0 }
  0xfe   : > { %867 = vst [vmem:[%s236_s28] sm:$0xf] %v866_v35 }
  0xff PF: > { %s13_s16 = sadd.s32 1, %s1292_s16   ;;  %s1496_s12 = smov %s1284_s14 }
 0x100   : > { %p10_p7 = scmp.ge.s32.totalorder %s13_s16, 18   ;;  %s1497_s13 = smov %s1288_s15 }
 0x101   : > { %s1498_s14 = smov %s1501_s17  ;;  %s1499_s15 = smov %s1505_s18 }
 0x102   :  { %12 = sbr.rel (!%p10_p7) target bundleno = 3 (0x3), region = 79 }

// kernel: forward.6
= control target key start
LH: loop header
LB: loop body
LE: loop exit
PB: predicated region body
PF: predicated region fallthrough
CT: control target
= control target key end

     0   :  { %s1183_s12 = smov 0   ;;  %s1185_s13 = smov 0   ;;  %s1323_s0 = inlined_call_operand.vmem [shape: bf16[2,1,10,10,16], index: 0, kind: input, shape index: {}]   ;;  %s1324_s1 = inlined_call_operand.vmem [shape: bf16[9,16,128], index: 1, kind: input, shape index: {}]   ;;  %s1325_s2 = inlined_call_operand.vmem [shape: f32[1,128], index: 2, kind: input, shape index: {}]   ;;  %s1326_s3 = inlined_call_operand.vmem [shape: bf16[2,8,8,128], index: 3, kind: output, shape index: {}]  }
   0x1   :  { %s1187_s14 = smov 0   ;;  %s1189_s15 = smov 0  }
   0x2   :  { %s1191_s16 = smov 0  }
   0x3 LB: > { %s25_s17 = sadd.s32 1, %s1151_s14  ;;  %s32_s18 = sadd.s32 1, %s1155_s15  ;;  %s1159_s16 = sphi %s1191_s16, %s13_s16   ;;  %s1155_s15 = sphi %s1189_s15, %s1330_s15   ;;  %s1151_s14 = sphi %s1187_s14, %s1329_s14   ;;  %s1147_s13 = sphi %s1185_s13, %s1328_s13   ;;  %s1143_s12 = sphi %s1183_s12, %s1327_s12  }
   0x4   : > { %p26_p0 = scmp.ge.s32.totalorder %s25_s17, 8  ;;  %p931_p1 = scmp.ge.s32.totalorder %s1159_s16, 1 }
   0x5   : > { %p177_p2 = scmp.lt.s32.totalorder %s1159_s16, 17 }
   0x6   : > { %s1332_s17 = smov (%p26_p0, %s25_s17), 0  ;;  %s1334_s18 = smov (!%p26_p0, %s32_s18), %s1155_s15 }
   0x7   : > { %p178_p3 = pnand %p931_p1, %p177_p2  ;;  %p34_p4 = scmp.ge.s32.totalorder %s1334_s18, 2 }
   0x8   : > { %p214_p5 = scmp.lt.s32.totalorder (!%p178_p3), %s1147_s13, 1  ;;  %s990_s24 = sshll.u32 (!%p178_p3), %s1143_s12, 3 }
   0x9   : > { %s1336_s18 = smov (%p34_p4, %s1334_s18), 0  ;;  %181 = sbr.rel (%p178_p3) target bundleno = 255 (0xff), region = 32 }
   0xa   : > { %p228_p6 = scmp.lt.s32.totalorder (!%p178_p3), %s1143_s12, 7 }
   0xe   : > { %v1106_v0 = vld [vmem:[%s1324_s1] sm:$0xff]   ;;  %v1161_v1 = vmov 0.0   ;;  %vm1162_vm0 = vmmov 0   ;;  %s1338_s13 = smov (!%p214_p5, %s1147_s13), 1  ;;  %v1108_v2 = vld [vmem:[%s1324_s1 + $0x8] sm:$0xff]   ;;  %vm257_vm1 = vcmask 130048  }
   0xf   : > { %1009 = vmatprep.subr.bf16.mxu0 %v1161_v1  ;;  %1015 = vmatprep.subr.bf16.mxu1 %v1161_v1  ;;  %s1063_s23 = smul.u32 80, %s1338_s13  ;;  %v1107_v3 = vld [vmem:[%s1324_s1 + $0x10] sm:$0xff]   ;;  %v1111_v18 = vld [vmem:[%s1324_s1 + $0x18] sm:$0xff]   ;;  %v1112_v19 = vld [vmem:[%s1324_s1 + $0x20] sm:$0xff]   ;;  %s1340_s12 = smov (!%p228_p6, %s1143_s12), 7 }
  0x10   : > { %1010 = vmatpush3.bf16.msra.mxu0 %v1106_v0  ;;  %1011 = vmatprep.mubr.msk.bf16.mxu0 %vm1162_vm0, %v1161_v1  ;;  %v1114_v25 = vld [vmem:[%s1324_s1 + $0x28] sm:$0xff]   ;;  %v1115_v26 = vld [vmem:[%s1324_s1 + $0x30] sm:$0xff]   ;;  %v1117_v33 = vld [vmem:[%s1324_s1 + $0x38] sm:$0xff]   ;;  %s933_s25 = sshll.u32 %s1338_s13, 3 }
  0x11   : > { %1021 = vmatprep.subr.bf16.mxu0 %v1161_v1  ;;  %1017 = vmatprep.mubr.msk.bf16.mxu1 %vm1162_vm0, %v1161_v1  ;;  %s218_s27 = scalar_lea.vmem %s1323_s0, %s1063_s23  ;;  %v1118_v36 = vld [vmem:[%s1324_s1 + $0x40] sm:$0xff]   ;;  %s234_s26 = sadd.s32 %s933_s25, %s1340_s12 }
  0x12   : > { %1016 = vmatpush3.bf16.msra.mxu1 %v1108_v2  ;;  %s1239_s30 = scalar_lea.vmem %s218_s27, %s990_s24  ;;  %v935_v49 = vld [vmem:[%s1325_s2] ss:$0 sm:$0xff]  ;;  %s934_s27 = sshll.u32 %s234_s26, 2 }
  0x13   : > { %1027 = vmatprep.subr.bf16.mxu1 %v1161_v1  ;;  %v248_v4 = vld [vmem:[%s1239_s30] sm:$0xf]  ;;  %v303_v6 = vld [vmem:[%s1239_s30 + $0x4] sm:$0x1]  ;;  %v956_v9 = vld [vmem:[%s1239_s30 + $0x8] sm:$0xf] }
  0x14   : > { %v302_v5 = vld [vmem:[%s1239_s30] sm:$0xf]  ;;  %1012 = vmatmul.mubr.msk.bf16.vlgmr.msra.gmra.mxu0 %vm257_vm1, %v248_v4  ;;  %v957_v11 = vld [vmem:[%s1239_s30 + $0xc] sm:$0x1]  ;;  %v951_v23 = vld [vmem:[%s1239_s30 + $0x8] sm:$0xf] }
  0x15   : > { %v942_v7 = vcombine.low %v302_v5, %v303_v6  ;;  %v369_v8 = vld [vmem:[%s1239_s30] sm:$0xe]  ;;  %1022 = vmatpush3.bf16.msra.mxu0 %v1107_v3  ;;  %1023 = vmatprep.mubr.msk.bf16.mxu0 %vm1162_vm0, %v1161_v1  ;;  %v960_v14 = vcombine.low %v956_v9, %v957_v11  ;;  %v963_v27 = vld [vmem:[%s1239_s30 + $0x8] sm:$0xe]  ;;  %v975_v28 = vld [vmem:[%s1239_s30 + $0x10] sm:$0xf] }
  0x16   : > { %v947_v10 = vcombine.low %v369_v8, %v303_v6  ;;  %1033 = vmatprep.subr.bf16.mxu0 %v1161_v1  ;;  %v976_v29 = vld [vmem:[%s1239_s30 + $0x14] sm:$0x1]  ;;  %v966_v30 = vcombine.low %v963_v27, %v957_v11  ;;  %v970_v35 = vld [vmem:[%s1239_s30 + $0x10] sm:$0xf] }
  0x17   : > { %v313_v12 = vshrl.u32 %v942_v7, 16  ;;  %v315_v13 = vshll.u32 %v942_v7, 16  ;;  %v498_v17 = vshll.u32 %v960_v14, 16  ;;  %v496_v21 = vshrl.u32 %v960_v14, 16  ;;  %v982_v37 = vld [vmem:[%s1239_s30 + $0x10] sm:$0xe]  ;;  %s236_s30 = scalar_lea.vmem %s1326_s3, %s934_s27 }
  0x18   : > { %v376_v16 = vrot.slane %v947_v10, 1  ;;  %v979_v31 = vcombine.low %v975_v28, %v976_v29  ;;  %v559_v32 = vrot.slane %v966_v30, 1  ;;  %v985_v40 = vcombine.low %v982_v37, %v976_v29 }
  0x19   : > { %v317_v15 = vrot.slane %v315_v13, 1  ;;  %v500_v22 = vrot.slane %v498_v17, 1 }
  0x1a   : > { %v681_v34 = vshll.u32 %v979_v31, 16  ;;  %v679_v38 = vshrl.u32 %v979_v31, 16  ;;  %v742_v42 = vrot.slane %v985_v40, 1 }
  0x1b   : > { %v318_v20 = vor.u32 %v317_v15, %v313_v12  ;;  %v501_v24 = vor.u32 %v500_v22, %v496_v21 }
  0x1c   : > { %1024 = vmatmul.mubr.msk.bf16.vlgmr.msra.gmra.mxu0 %vm257_vm1, %v376_v16  ;;  %v683_v39 = vrot.slane %v681_v34, 1 }
  0x1d   : > { %1018 = vmatmul.mubr.msk.bf16.vlgmr.msra.gmra.mxu1 %vm257_vm1, %v318_v20  ;;  %1034 = vmatpush3.bf16.msra.mxu0 %v1112_v19 }
  0x1e   : > { %1028 = vmatpush3.bf16.msra.mxu1 %v1111_v18  ;;  %1029 = vmatprep.mubr.msk.bf16.mxu1 %vm1162_vm0, %v1161_v1  ;;  %v684_v41 = vor.u32 %v683_v39, %v679_v38 }
  0x1f   : > { %1035 = vmatprep.mubr.msk.bf16.mxu0 %vm1162_vm0, %v1161_v1  ;;  %1039 = vmatprep.subr.bf16.mxu1 %v1161_v1 }
  0x20   : > { %1045 = vmatprep.subr.bf16.mxu0 %v1161_v1 }
  0x24   : > { %1036 = vmatmul.mubr.msk.bf16.vlgmr.msra.gmra.mxu0 %vm257_vm1, %v501_v24 }
  0x25   : > { %1030 = vmatmul.mubr.msk.bf16.vlgmr.msra.gmra.mxu1 %vm257_vm1, %v951_v23  ;;  %1046 = vmatpush3.bf16.msra.mxu0 %v1115_v26 }
  0x26   : > { %1040 = vmatpush3.bf16.msra.mxu1 %v1114_v25  ;;  %1041 = vmatprep.mubr.msk.bf16.mxu1 %vm1162_vm0, %v1161_v1 }
  0x27   : > { %1047 = vmatprep.mubr.msk.bf16.mxu0 %vm1162_vm0, %v1161_v1  ;;  %1051 = vmatprep.subr.bf16.mxu1 %v1161_v1 }
  0x28   : > { %1057 = vmatprep.subr.bf16.mxu0 %v1161_v1 }
  0x2c   : > { %1048 = vmatmul.mubr.msk.bf16.vlgmr.msra.gmra.mxu0 %vm257_vm1, %v970_v35 }
  0x2d   : > { %1042 = vmatmul.mubr.msk.bf16.vlgmr.msra.gmra.mxu1 %vm257_vm1, %v559_v32  ;;  %1058 = vmatpush3.bf16.msra.mxu0 %v1118_v36 }
  0x2e   : > { %1052 = vmatpush3.bf16.msra.mxu1 %v1117_v33  ;;  %1053 = vmatprep.mubr.msk.bf16.mxu1 %vm1162_vm0, %v1161_v1 }
  0x2f   : > { %1059 = vmatprep.mubr.msk.bf16.mxu0 %vm1162_vm0, %v1161_v1 }
  0x34   : > { %1060 = vmatmul.mubr.msk.bf16.vlgmr.msra.gmra.mxu0 %vm257_vm1, %v742_v42 }
  0x35   : > { %1054 = vmatmul.mubr.msk.bf16.vlgmr.msra.gmra.mxu1 %vm257_vm1, %v684_v41 }
  0xd4   : > { %v295_v43 = vpop.f32.mrf.mxu0 }
  0xd5   : > { %v301_v54 = vadd.f32 %v935_v49, %v295_v43 }
  0xd6   : > { %v1013_v44 = vpop.f32.mrf.mxu0 }
  0xd8   : > { %v298_v45 = vpop.f32.mrf.mxu0 }
  0xda   : > { %v1014_v46 = vpop.f32.mrf.mxu0 }
  0xdc   : > { %v420_v48 = vpop.f32.mrf.mxu0 }
  0xdd   : > { %v362_v47 = vpop.f32.mrf.mxu1 }
  0xde   : > { %v1025_v51 = vpop.f32.mrf.mxu0  ;;  %v368_v57 = vadd.f32 %v362_v47, %v301_v54 }
  0xdf   : > { %v1019_v50 = vpop.f32.mrf.mxu1 }
  0xe0   : > { %v423_v53 = vpop.f32.mrf.mxu0  ;;  %v426_v62 = vadd.f32 %v420_v48, %v368_v57 }
  0xe1   : > { %v365_v52 = vpop.f32.mrf.mxu1 }
  0xe2   : > { %v1026_v56 = vpop.f32.mrf.mxu0 }
  0xe3   : > { %v1020_v55 = vpop.f32.mrf.mxu1 }
  0xe4   : > { %v545_v59 = vpop.f32.mrf.mxu0 }
  0xe5   : > { %v478_v58 = vpop.f32.mrf.mxu1 }
  0xe6   : > { %v1037_v61 = vpop.f32.mrf.mxu0  ;;  %v484_v1 = vadd.f32 %v478_v58, %v426_v62 }
  0xe7   : > { %v1031_v60 = vpop.f32.mrf.mxu1 }
  0xe8   : > { %v548_v0 = vpop.f32.mrf.mxu0  ;;  %v551_v6 = vadd.f32 %v545_v59, %v484_v1 }
  0xe9   : > { %v481_v63 = vpop.f32.mrf.mxu1 }
  0xea   : > { %v1038_v3 = vpop.f32.mrf.mxu0 }
  0xeb   : > { %v1032_v2 = vpop.f32.mrf.mxu1 }
  0xec   : > { %v661_v5 = vpop.f32.mrf.mxu0 }
  0xed   : > { %v603_v4 = vpop.f32.mrf.mxu1 }
  0xee   : > { %v1049_v8 = vpop.f32.mrf.mxu0  ;;  %v609_v9 = vadd.f32 %v603_v4, %v551_v6 }
  0xef   : > { %v1043_v7 = vpop.f32.mrf.mxu1 }
  0xf0   : > { %v664_v11 = vpop.f32.mrf.mxu0  ;;  %v667_v14 = vadd.f32 %v661_v5, %v609_v9 }
  0xf1   : > { %v606_v10 = vpop.f32.mrf.mxu1 }
  0xf2   : > { %v1050_v13 = vpop.f32.mrf.mxu0 }
  0xf3   : > { %v1044_v12 = vpop.f32.mrf.mxu1 }
  0xf4   : > { %v786_v16 = vpop.f32.mrf.mxu0 }
  0xf5   : > { %v728_v15 = vpop.f32.mrf.mxu1 }
  0xf6   : > { %v734_v17 = vadd.f32 %v728_v15, %v667_v14  ;;  %v1061_v19 = vpop.f32.mrf.mxu0 }
  0xf7   : > { %v1055_v18 = vpop.f32.mrf.mxu1 }
  0xf8   : > { %v792_v20 = vadd.f32 %v786_v16, %v734_v17  ;;  %v789_v22 = vpop.f32.mrf.mxu0 }
  0xf9   : > { %v731_v21 = vpop.f32.mrf.mxu1 }
  0xfa   : > { %v793_v23 = vmax.f32 %v792_v20, 0.0  ;;  %v1062_v25 = vpop.f32.mrf.mxu0 }
  0xfb   : > { %v1056_v24 = vpop.f32.mrf.mxu1 }
  0xfc   : > { %v794_v26 = vpack.c.bf16 %v793_v23, %v793_v23 }
  0xfe   : > { %795 = vst [vmem:[%s236_s30] sm:$0xf] %v794_v26 }
  0xff PF: > { %s13_s16 = sadd.s32 1, %s1159_s16   ;;  %s1327_s12 = smov %s1151_s14 }
 0x100   : > { %p10_p7 = scmp.ge.s32.totalorder %s13_s16, 18   ;;  %s1328_s13 = smov %s1155_s15 }
 0x101   : > { %s1329_s14 = smov %s1332_s17  ;;  %s1330_s15 = smov %s1336_s18 }
 0x102   :  { %12 = sbr.rel (!%p10_p7) target bundleno = 3 (0x3), region = 79 }

// kernel: forward.8
= control target key start
LH: loop header
LB: loop body
LE: loop exit
PB: predicated region body
PF: predicated region fallthrough
CT: control target
= control target key end

     0   :  { %s1304_s12 = smov 0   ;;  %s1306_s13 = smov 0   ;;  %s1477_s0 = inlined_call_operand.vmem [shape: bf16[2,4,5,5,32], index: 0, kind: input, shape index: {}]   ;;  %s1478_s1 = inlined_call_operand.vmem [shape: bf16[9,32,128], index: 1, kind: input, shape index: {}]   ;;  %s1479_s2 = inlined_call_operand.vmem [shape: f32[1,128], index: 2, kind: input, shape index: {}]   ;;  %s1480_s3 = inlined_call_operand.vmem [shape: bf16[2,4,4,128], index: 3, kind: output, shape index: {}]  }
   0x1   :  { %s1308_s14 = smov 0   ;;  %s1310_s15 = smov 0  }
   0x2   :  { %s1312_s16 = smov 0  }
   0x3 LB: > { %s25_s17 = sadd.s32 1, %s1272_s14  ;;  %s32_s18 = sadd.s32 1, %s1276_s15  ;;  %s1280_s16 = sphi %s1312_s16, %s13_s16   ;;  %s1276_s15 = sphi %s1310_s15, %s1484_s15   ;;  %s1272_s14 = sphi %s1308_s14, %s1483_s14   ;;  %s1268_s13 = sphi %s1306_s13, %s1482_s13   ;;  %s1264_s12 = sphi %s1304_s12, %s1481_s12  }
   0x4   : > { %p26_p0 = scmp.ge.s32.totalorder %s25_s17, 4  ;;  %p997_p1 = scmp.ge.s32.totalorder %s1280_s16, 1 }
   0x5   : > { %p177_p2 = scmp.lt.s32.totalorder %s1280_s16, 9 }
   0x6   : > { %s1486_s17 = smov (%p26_p0, %s25_s17), 0  ;;  %s1488_s18 = smov (!%p26_p0, %s32_s18), %s1276_s15 }
   0x7   : > { %p178_p3 = pnand %p997_p1, %p177_p2  ;;  %p34_p4 = scmp.ge.s32.totalorder %s1488_s18, 2 }
   0x8   : > { %p214_p5 = scmp.lt.s32.totalorder (!%p178_p3), %s1268_s13, 1  ;;  %s1002_s28 = sshll.u32 (!%p178_p3), %s1264_s12, 2 }
   0x9   : > { %s1490_s18 = smov (%p34_p4, %s1488_s18), 0  ;;  %181 = sbr.rel (%p178_p3) target bundleno = 255 (0xff), region = 32 }
   0xa   : > { %p228_p6 = scmp.lt.s32.totalorder (!%p178_p3), %s1264_s12, 3 }
   0xe   : > { %v1221_v0 = vld [vmem:[%s1478_s1 + $0x8] sm:$0xff]   ;;  %v1282_v1 = vmov 0.0   ;;  %v1222_v2 = vld [vmem:[%s1478_s1 + $0x18] sm:$0xff]   ;;  %v1223_v3 = vld [vmem:[%s1478_s1] sm:$0xff]   ;;  %vm1283_vm0 = vmmov 0   ;;  %s1492_s13 = smov (!%p214_p5, %s1268_s13), 1 }
   0xf   : > { %1106 = vmatprep.subr.bf16.mxu0 %v1282_v1  ;;  %1114 = vmatprep.subr.bf16.mxu1 %v1282_v1  ;;  %v1224_v4 = vld [vmem:[%s1478_s1 + $0x10] sm:$0xff]   ;;  %s1178_s27 = smul.u32 80, %s1492_s13  ;;  %v1225_v5 = vld [vmem:[%s1478_s1 + $0x28] sm:$0xff]   ;;  %vm264_vm1 = vcmask 261120   ;;  %v1226_v6 = vld [vmem:[%s1478_s1 + $0x38] sm:$0xff]   ;;  %s1494_s12 = smov (!%p228_p6, %s1264_s12), 3 }
  0x10   : > { %1107 = vmatpush3.bf16.msra.mxu0 %v1221_v0  ;;  %1110 = vmatprep.mubr.msk.bf16.mxu0 %vm1283_vm0, %v1282_v1  ;;  %v1227_v9 = vld [vmem:[%s1478_s1 + $0x20] sm:$0xff]   ;;  %v1228_v11 = vld [vmem:[%s1478_s1 + $0x30] sm:$0xff]   ;;  %v1230_v15 = vld [vmem:[%s1478_s1 + $0x48] sm:$0xff]   ;;  %s999_s23 = sshll.u32 %s1492_s13, 2 }
  0x11   : > { %1115 = vmatpush3.bf16.msra.mxu1 %v1222_v2  ;;  %1108 = vmatprep.subr.bf16.mxu0 %v1282_v1  ;;  %s218_s6 = scalar_lea.vmem %s1477_s0, %s1178_s27  ;;  %v1231_v18 = vld [vmem:[%s1478_s1 + $0x58] sm:$0xff]   ;;  %v1232_v21 = vld [vmem:[%s1478_s1 + $0x40] sm:$0xff]   ;;  %v1233_v24 = vld [vmem:[%s1478_s1 + $0x50] sm:$0xff]   ;;  %s234_s24 = sadd.s32 %s999_s23, %s1494_s12 }
  0x12   : > { %1116 = vmatprep.subr.bf16.mxu1 %v1282_v1  ;;  %1118 = vmatprep.mubr.msk.bf16.mxu1 %vm1283_vm0, %v1282_v1  ;;  %s1371_s9 = scalar_lea.vmem %s218_s6, %s1002_s28  ;;  %v1235_v27 = vld [vmem:[%s1478_s1 + $0x68] sm:$0xff]   ;;  %v1236_v28 = vld [vmem:[%s1478_s1 + $0x78] sm:$0xff]   ;;  %v1237_v30 = vld [vmem:[%s1478_s1 + $0x60] sm:$0xff]   ;;  %s1000_s25 = sshll.u32 %s234_s24, 1 }
  0x13   : > { %v247_v7 = vld [vmem:[%s1371_s9] sm:$0x3]  ;;  %v1007_v8 = vld [vmem:[%s1371_s9 + $0x14] sm:$0x3]  ;;  %v1024_v14 = vld [vmem:[%s1371_s9 + $0x28] sm:$0x3]  ;;  %s236_s28 = scalar_lea.vmem %s1480_s3, %s1000_s25 }
  0x14   : > { %1109 = vmatpush3.bf16.msra.mxu0 %v1223_v3  ;;  %v1229_v10 = vld [vmem:[%s1371_s9] ss:$0 sps:$4 sm:$0x77]   ;;  %v1234_v17 = vld [vmem:[%s1371_s9 + $0x28] ss:$0 sps:$4 sm:$0x77]  }
  0x15   : > { %1117 = vmatpush3.bf16.msra.mxu1 %v1224_v4  ;;  %1122 = vmatprep.subr.bf16.mxu0 %v1282_v1  ;;  %v384_v12 = vshrl.u32 %v1229_v10, 16  ;;  %v386_v13 = vshll.u32 %v1229_v10, 16  ;;  %v588_v20 = vshll.u32 %v1234_v17, 16  ;;  %v586_v22 = vshrl.u32 %v1234_v17, 16  ;;  %v1033_v26 = vld [vmem:[%s1371_s9 + $0x3c] sm:$0x3] }
  0x16   : > { %1130 = vmatprep.subr.bf16.mxu1 %v1282_v1  ;;  %v1241_v29 = vld [vmem:[%s1371_s9 + $0x4] ss:$0 sps:$4 sm:$0x77]   ;;  %v1238_v31 = vld [vmem:[%s1478_s1 + $0x70] sm:$0xff]   ;;  %v1060_v34 = vld [vmem:[%s1371_s9 + $0x18] sm:$0x3] }
  0x17   : > { %1111 = vmatmul.mubr.msk.bf16.vlgmr.msra.gmra.mxu0 %vm264_vm1, %v247_v7  ;;  %v388_v16 = vrot.slane %v386_v13, 1  ;;  %v590_v23 = vrot.slane %v588_v20, 1  ;;  %v790_v32 = vshll.u32 %v1241_v29, 16  ;;  %v1051_v33 = vld [vmem:[%s1371_s9 + $0x4] sm:$0x3]  ;;  %v1239_v35 = vld [vmem:[%s1478_s1 + $0x88] sm:$0xff]  }
  0x18   : > { %1119 = vmatmul.mubr.msk.bf16.vlgmr.msra.gmra.mxu1 %vm264_vm1, %v1007_v8  ;;  %1123 = vmatpush3.bf16.msra.mxu0 %v1225_v5  ;;  %v788_v36 = vshrl.u32 %v1241_v29, 16  ;;  %v1240_v38 = vld [vmem:[%s1478_s1 + $0x80] sm:$0xff]  }
  0x19   : > { %1131 = vmatpush3.bf16.msra.mxu1 %v1226_v6  ;;  %1124 = vmatprep.subr.bf16.mxu0 %v1282_v1  ;;  %v389_v19 = vor.u32 %v388_v16, %v384_v12  ;;  %v591_v25 = vor.u32 %v590_v23, %v586_v22  ;;  %v792_v37 = vrot.slane %v790_v32, 1  ;;  %v1001_v46 = vld [vmem:[%s1479_s2] ss:$0 sm:$0xff] }
  0x1a   : > { %1132 = vmatprep.subr.bf16.mxu1 %v1282_v1  ;;  %1126 = vmatprep.mubr.msk.bf16.mxu0 %vm1283_vm0, %v1282_v1 }
  0x1b   : > { %1134 = vmatprep.mubr.msk.bf16.mxu1 %vm1283_vm0, %v1282_v1  ;;  %v793_v39 = vor.u32 %v792_v37, %v788_v36 }
  0x1c   : > { %1125 = vmatpush3.bf16.msra.mxu0 %v1227_v9 }
  0x1d   : > { %1133 = vmatpush3.bf16.msra.mxu1 %v1228_v11  ;;  %1138 = vmatprep.subr.bf16.mxu0 %v1282_v1 }
  0x1e   : > { %1146 = vmatprep.subr.bf16.mxu1 %v1282_v1 }
  0x1f   : > { %1127 = vmatmul.mubr.msk.bf16.vlgmr.msra.gmra.mxu0 %vm264_vm1, %v389_v19 }
  0x20   : > { %1135 = vmatmul.mubr.msk.bf16.vlgmr.msra.gmra.mxu1 %vm264_vm1, %v1024_v14  ;;  %1139 = vmatpush3.bf16.msra.mxu0 %v1230_v15 }
  0x21   : > { %1147 = vmatpush3.bf16.msra.mxu1 %v1231_v18  ;;  %1140 = vmatprep.subr.bf16.mxu0 %v1282_v1 }
  0x22   : > { %1148 = vmatprep.subr.bf16.mxu1 %v1282_v1  ;;  %1142 = vmatprep.mubr.msk.bf16.mxu0 %vm1283_vm0, %v1282_v1 }
  0x23   : > { %1150 = vmatprep.mubr.msk.bf16.mxu1 %vm1283_vm0, %v1282_v1 }
  0x24   : > { %1141 = vmatpush3.bf16.msra.mxu0 %v1232_v21 }
  0x25   : > { %1149 = vmatpush3.bf16.msra.mxu1 %v1233_v24  ;;  %1154 = vmatprep.subr.bf16.mxu0 %v1282_v1 }
  0x26   : > { %1162 = vmatprep.subr.bf16.mxu1 %v1282_v1 }
  0x27   : > { %1143 = vmatmul.mubr.msk.bf16.vlgmr.msra.gmra.mxu0 %vm264_vm1, %v1033_v26 }
  0x28   : > { %1151 = vmatmul.mubr.msk.bf16.vlgmr.msra.gmra.mxu1 %vm264_vm1, %v591_v25  ;;  %1155 = vmatpush3.bf16.msra.mxu0 %v1235_v27 }
  0x29   : > { %1163 = vmatpush3.bf16.msra.mxu1 %v1236_v28  ;;  %1156 = vmatprep.subr.bf16.mxu0 %v1282_v1 }
  0x2a   : > { %1164 = vmatprep.subr.bf16.mxu1 %v1282_v1  ;;  %1158 = vmatprep.mubr.msk.bf16.mxu0 %vm1283_vm0, %v1282_v1 }
  0x2b   : > { %1166 = vmatprep.mubr.msk.bf16.mxu1 %vm1283_vm0, %v1282_v1 }
  0x2c   : > { %1157 = vmatpush3.bf16.msra.mxu0 %v1237_v30 }
  0x2d   : > { %1165 = vmatpush3.bf16.msra.mxu1 %v1238_v31  ;;  %1170 = vmatprep.subr.bf16.mxu0 %v1282_v1 }
  0x2f   : > { %1159 = vmatmul.mubr.msk.bf16.vlgmr.msra.gmra.mxu0 %vm264_vm1, %v1051_v33 }
  0x30   : > { %1167 = vmatmul.mubr.msk.bf16.vlgmr.msra.gmra.mxu1 %vm264_vm1, %v1060_v34  ;;  %1171 = vmatpush3.bf16.msra.mxu0 %v1239_v35 }
  0x31   : > { %1174 = vmatprep.mubr.msk.bf16.mxu0 %vm1283_vm0, %v1282_v1  ;;  %1172 = vmatprep.subr.bf16.mxu0 %v1282_v1 }
  0x34   : > { %1173 = vmatpush3.bf16.msra.mxu0 %v1240_v38 }
  0x37   : > { %1175 = vmatmul.mubr.msk.bf16.vlgmr.msra.gmra.mxu0 %vm264_vm1, %v793_v39 }
  0xd7   : > { %v302_v40 = vpop.f32.mrf.mxu0 }
  0xd8   : > { %v367_v41 = vpop.f32.mrf.mxu1  ;;  %v308_v51 = vadd.f32 %v1001_v46, %v302_v40 }
  0xd9   : > { %v1112_v42 = vpop.f32.mrf.mxu0 }
  0xda   : > { %v1120_v43 = vpop.f32.mrf.mxu1  ;;  %v373_v56 = vadd.f32 %v367_v41, %v308_v51 }
  0xdb   : > { %v305_v44 = vpop.f32.mrf.mxu0 }
  0xdc   : > { %v370_v45 = vpop.f32.mrf.mxu1 }
  0xdd   : > { %v1113_v47 = vpop.f32.mrf.mxu0 }
  0xde   : > { %v1121_v48 = vpop.f32.mrf.mxu1 }
  0xdf   : > { %v439_v49 = vpop.f32.mrf.mxu0 }
  0xe0   : > { %v504_v50 = vpop.f32.mrf.mxu1  ;;  %v445_v59 = vadd.f32 %v439_v49, %v373_v56 }
  0xe1   : > { %v1128_v52 = vpop.f32.mrf.mxu0 }
  0xe2   : > { %v1136_v53 = vpop.f32.mrf.mxu1  ;;  %v510_v0 = vadd.f32 %v504_v50, %v445_v59 }
  0xe3   : > { %v442_v54 = vpop.f32.mrf.mxu0 }
  0xe4   : > { %v507_v55 = vpop.f32.mrf.mxu1 }
  0xe5   : > { %v1129_v57 = vpop.f32.mrf.mxu0 }
  0xe6   : > { %v1137_v58 = vpop.f32.mrf.mxu1 }
  0xe7   : > { %v569_v60 = vpop.f32.mrf.mxu0 }
  0xe8   : > { %v641_v61 = vpop.f32.mrf.mxu1  ;;  %v575_v3 = vadd.f32 %v569_v60, %v510_v0 }
  0xe9   : > { %v1144_v62 = vpop.f32.mrf.mxu0 }
  0xea   : > { %v1152_v63 = vpop.f32.mrf.mxu1  ;;  %v647_v8 = vadd.f32 %v641_v61, %v575_v3 }
  0xeb   : > { %v572_v1 = vpop.f32.mrf.mxu0 }
  0xec   : > { %v644_v2 = vpop.f32.mrf.mxu1 }
  0xed   : > { %v1145_v4 = vpop.f32.mrf.mxu0 }
  0xee   : > { %v1153_v5 = vpop.f32.mrf.mxu1 }
  0xef   : > { %v706_v6 = vpop.f32.mrf.mxu0 }
  0xf0   : > { %v771_v7 = vpop.f32.mrf.mxu1  ;;  %v712_v11 = vadd.f32 %v706_v6, %v647_v8 }
  0xf1   : > { %v1160_v9 = vpop.f32.mrf.mxu0 }
  0xf2   : > { %v1168_v10 = vpop.f32.mrf.mxu1  ;;  %v777_v16 = vadd.f32 %v771_v7, %v712_v11 }
  0xf3   : > { %v709_v12 = vpop.f32.mrf.mxu0 }
  0xf4   : > { %v774_v13 = vpop.f32.mrf.mxu1 }
  0xf5   : > { %v1161_v14 = vpop.f32.mrf.mxu0 }
  0xf6   : > { %v1169_v15 = vpop.f32.mrf.mxu1 }
  0xf7   : > { %v843_v17 = vpop.f32.mrf.mxu0 }
  0xf8   : > { %v849_v18 = vadd.f32 %v843_v17, %v777_v16 }
  0xf9   : > { %v1176_v19 = vpop.f32.mrf.mxu0 }
  0xfa   : > { %v850_v20 = vmax.f32 %v849_v18, 0.0 }
  0xfb   : > { %v846_v21 = vpop.f32.mrf.mxu0 }
  0xfc   : > { %v851_v22 = vpack.c.bf16 %v850_v20, %v850_v20 }
  0xfd   : > { %v1177_v23 = vpop.f32.mrf.mxu0 }
  0xfe   : > { %852 = vst [vmem:[%s236_s28] sm:$0x3] %v851_v22 }
  0xff PF: > { %s13_s16 = sadd.s32 1, %s1280_s16   ;;  %s1481_s12 = smov %s1272_s14 }
 0x100   : > { %p10_p7 = scmp.ge.s32.totalorder %s13_s16, 10   ;;  %s1482_s13 = smov %s1276_s15 }
 0x101   : > { %s1483_s14 = smov %s1486_s17  ;;  %s1484_s15 = smov %s1490_s18 }
 0x102   :  { %12 = sbr.rel (!%p10_p7) target bundleno = 3 (0x3), region = 82 }

// kernel: forward.11
= control target key start
LH: loop header
LB: loop body
LE: loop exit
PB: predicated region body
PF: predicated region fallthrough
CT: control target
= control target key end

     0   :  { %v24_v5 = vlaneseq  ;;  %s414_s0 = inlined_call_operand.vmem [shape: bf16[2,1,256], index: 0, kind: input, shape index: {}]   ;;  %s415_s1 = inlined_call_operand.vmem [shape: bf16[256,128], index: 1, kind: input, shape index: {}]   ;;  %s416_s2 = inlined_call_operand.vmem [shape: f32[1,128], index: 2, kind: input, shape index: {}]   ;;  %s417_s3 = inlined_call_operand.hbm [shape: f32[2,128], index: 3, kind: output, shape index: {}]  }
   0x1   :  { %v295_v0 = vld [vmem:[%s415_s1 + $0x78] sm:$0xff]   ;;  %v297_v2 = vld [vmem:[%s415_s1 + $0x70] sm:$0xff]   ;;  %v299_v4 = vld [vmem:[%s415_s1 + $0x68] sm:$0xff]  }
   0x2   :  { %v296_v1 = vld [vmem:[%s415_s1 + $0x38] sm:$0xff]   ;;  %272 = vmatprep.subr.bf16.mxu0 %v295_v0  ;;  %v298_v3 = vld [vmem:[%s415_s1 + $0x30] sm:$0xff]   ;;  %v300_v6 = vld [vmem:[%s415_s1 + $0x28] sm:$0xff]   ;;  %v25_v8 = vshrl.u32 %v24_v5, 7 }
   0x3   :  { %273 = vmatpush3.bf16.msra.mxu0 %v296_v1  ;;  %v301_v7 = vld [vmem:[%s415_s1 + $0x60] sm:$0xff]   ;;  %v303_v10 = vld [vmem:[%s415_s1 + $0x58] sm:$0xff]   ;;  %v305_v13 = vld [vmem:[%s415_s1 + $0x50] sm:$0xff]  }
   0x4   :  { %274 = vmatprep.subr.bf16.mxu0 %v297_v2  ;;  %v302_v9 = vld [vmem:[%s415_s1 + $0x20] sm:$0xff]   ;;  %v304_v11 = vld [vmem:[%s415_s1 + $0x18] sm:$0xff]   ;;  %v30_v12 = vsub.s32 2, %v25_v8  ;;  %v26_v14 = vsub.s32 0, %v25_v8 }
   0x5   :  { %v16_v15 = vld [vmem:[%s414_s0] sm:$0x3]  ;;  %v17_v16 = vld [vmem:[%s414_s0 + $0x2] sm:$0x3] }
   0x7   :  { %275 = vmatpush3.bf16.msra.mxu0 %v298_v3 }
   0x8   :  { %276 = vmatprep.subr.bf16.mxu0 %v299_v4 }
   0xb   :  { %277 = vmatpush3.bf16.msra.mxu0 %v300_v6 }
   0xc   :  { %278 = vmatprep.subr.bf16.mxu0 %v301_v7 }
   0xf   :  { %279 = vmatpush3.bf16.msra.mxu0 %v302_v9 }
  0x10   :  { %280 = vmatprep.subr.bf16.mxu0 %v303_v10 }
  0x11   :  { %8 = vsyncpa [#allocation3], 0  ;;  %v18_v17 = vunpack.c.l.bf16 %v16_v15  ;;  %v19_v18 = vunpack.c.l.bf16 %v17_v16  ;;  %v306_v19 = vld [vmem:[%s415_s1 + $0x10] sm:$0xff]   ;;  %v307_v24 = vld [vmem:[%s415_s1 + $0x48] sm:$0xff]   ;;  %vm96_vm0 = vcmask 1041409   ;;  %s333_s22 = smov [#allocation2]  }
  0x12   :  { %v308_v29 = vld [vmem:[%s415_s1 + $0x8] sm:$0xff]   ;;  %v309_v34 = vld [vmem:[%s415_s1 + $0x40] sm:$0xff]   ;;  %s247_s23 = sshll.u32 %s333_s22, 4  ;;  %s248_s23 = int_to_ptr.vmem [resolvable:$true] %s247_s23 }
  0x13   :  { %281 = vmatpush3.bf16.msra.mxu0 %v304_v11  ;;  %v31_v20 = vrot.slane %v18_v17, %v30_v12  ;;  %v39_v21 = vrot.slane %v19_v18, %v30_v12  ;;  %v27_v22 = vrot.slane %v18_v17, %v26_v14  ;;  %v35_v23 = vrot.slane %v19_v18, %v26_v14  ;;  %v310_v37 = vld [vmem:[%s415_s1] sm:$0xff]   ;;  %s311_s1 = scalar_lea.vmem %s248_s23, 32  ;;  %p316_p1 = scmp.lt.s32.totalorder %s248_s23, %s248_s23 }
  0x14   :  { %282 = vmatprep.subr.bf16.mxu0 %v305_v13  ;;  %v255_v44 = vld [vmem:[%s416_s2] ss:$0 sm:$0xff]  ;;  %p312_p0 = scmp.ne.s32.totalorder %s248_s23, %s311_s1  ;;  %p317_p2 = scmp.lt.s32.totalorder %s311_s1, %s311_s1 }
  0x15   :  { %v45_v25 = vpack.c.bf16 %v31_v20, %v31_v20  ;;  %v47_v26 = vpack.c.bf16 %v39_v21, %v39_v21  ;;  %v44_v27 = vpack.c.bf16 %v27_v22, %v27_v22  ;;  %v46_v28 = vpack.c.bf16 %v35_v23, %v35_v23 }
  0x16   :  { %p318_p3 = por %p317_p2, %p316_p1 }
  0x17   :  { %283 = vmatpush3.bf16.msra.mxu0 %v306_v19  ;;  %v92_v30 = vunpack.c.l.b16 %v45_v25  ;;  %v94_v31 = vunpack.c.l.b16 %v47_v26  ;;  %v91_v32 = vunpack.c.l.b16 %v44_v27  ;;  %v93_v33 = vunpack.c.l.b16 %v46_v28 }
  0x18   :  { %284 = vmatprep.subr.bf16.mxu0 %v307_v24  ;;  %p319_p4 = pnand %p318_p3, %p312_p0 }
  0x19   :  { %v98_v35 = vrot.slane %v94_v31, 7  ;;  %v95_v36 = vrot.slane %v93_v33, 7 }
  0x1b   :  { %285 = vmatpush3.bf16.msra.mxu0 %v308_v29  ;;  %v99_v38 = vsel %vm96_vm0, %v98_v35, %v92_v30  ;;  %v97_v39 = vsel %vm96_vm0, %v95_v36, %v91_v32 }
  0x1c   :  { %286 = vmatprep.subr.bf16.mxu0 %v309_v34  ;;  %v101_v40 = vpack.c.b16 %v99_v38, %v99_v38  ;;  %v100_v41 = vpack.c.b16 %v97_v39, %v97_v39 }
  0x1e   :  { %232 = vmatprep.mubr.bf16.mxu0 %v101_v40 }
  0x1f   :  { %287 = vmatpush3.bf16.msra.mxu0 %v310_v37 }
  0x22   :  { %233 = vmatmul.mubr.bf16.vlgmr.msra.gmra.mxu0 %v100_v41 }
  0xe2   :  { %v288_v42 = vpop.f32.mrf.mxu0 }
  0xe4   :  { %v289_v43 = vpop.f32.mrf.mxu0 }
  0xe5   :  { %v290_v45 = vadd.f32 %v289_v43, %v288_v42 }
  0xe6   :  { %v291_v46 = vpop.f32.mrf.mxu0 }
  0xe7   :  { %v235_v47 = vadd.f32 %v290_v45, %v255_v44 }
  0xe8   :  { %v292_v48 = vpop.f32.mrf.mxu0 }
  0xe9   :  { %240 = vst [vmem:[#allocation2] sm:$0x3] %v235_v47 }
  0xea   :  { %322 = shalt.err (!%p319_p4)
}
  0xeb   :  { %250 = dma.vmem_to_hbm [thread:$0]  %s248_s23, 32, %s417_s3, [#allocation3]  }
  0xec   :  { %331 = dma.done.wait [#allocation3], 32  }
  0xed   :  { %332 = vsyncadd [#allocation3], 4294967264 }
  0xee   :  { %254 = vsyncpa [#allocation3], 1 }

// kernel: forward.9
= control target key start
LH: loop header
LB: loop body
LE: loop exit
PB: predicated region body
PF: predicated region fallthrough
CT: control target
= control target key end

     0   :  { %s1573_s12 = smov 0   ;;  %s1575_s13 = smov 0   ;;  %s1818_s0 = inlined_call_operand.vmem [shape: bf16[2,4,3,3,64], index: 0, kind: input, shape index: {}]   ;;  %s1819_s1 = inlined_call_operand.vmem [shape: bf16[9,64,128], index: 1, kind: input, shape index: {}]   ;;  %s1820_s2 = inlined_call_operand.vmem [shape: f32[1,128], index: 2, kind: input, shape index: {}]   ;;  %s1821_s3 = inlined_call_operand.vmem [shape: bf16[2,2,2,128], index: 3, kind: output, shape index: {}]  }
   0x1   :  { %s1577_s14 = smov 0   ;;  %s1579_s15 = smov 0  }
   0x2   :  { %s1581_s16 = smov 0  }
   0x3 LB: > { %s25_s17 = sadd.s32 1, %s1541_s14  ;;  %s32_s18 = sadd.s32 1, %s1545_s15  ;;  %s1549_s16 = sphi %s1581_s16, %s13_s16   ;;  %s1545_s15 = sphi %s1579_s15, %s1825_s15   ;;  %s1541_s14 = sphi %s1577_s14, %s1824_s14   ;;  %s1537_s13 = sphi %s1575_s13, %s1823_s13   ;;  %s1533_s12 = sphi %s1573_s12, %s1822_s12  }
   0x4   : > { %p26_p0 = scmp.ge.s32.totalorder %s25_s17, 2  ;;  %p1148_p1 = scmp.ge.s32.totalorder %s1549_s16, 1 }
   0x5   : > { %p177_p2 = scmp.lt.s32.totalorder %s1549_s16, 5 }
   0x6   : > { %s1827_s17 = smov (%p26_p0, %s25_s17), 0  ;;  %s1829_s18 = smov (!%p26_p0, %s32_s18), %s1545_s15 }
   0x7   : > { %p178_p3 = pnand %p1148_p1, %p177_p2  ;;  %p34_p4 = scmp.ge.s32.totalorder %s1829_s18, 2 }
   0x8   : > { %p213_p5 = scmp.lt.s32.totalorder (!%p178_p3), %s1537_s13, 1  ;;  %s1152_s8 = sshll.u32 (!%p178_p3), %s1533_s12, 1 }
   0x9   : > { %s1831_s18 = smov (%p34_p4, %s1829_s18), 0  ;;  %181 = sbr.rel (%p178_p3) target bundleno = 295 (0x127), region = 32 }
   0xa   : > { %p227_p6 = scmp.lt.s32.totalorder (!%p178_p3), %s1533_s12, 1 }
   0xe   : > { %v1475_v0 = vld [vmem:[%s1819_s1 + $0x18] sm:$0xff]   ;;  %v1551_v1 = vmov 0.0   ;;  %v1477_v3 = vld [vmem:[%s1819_s1 + $0x10] sm:$0xff]   ;;  %vm1552_vm0 = vmmov 0   ;;  %s1833_s13 = smov (!%p213_p5, %s1537_s13), 1  ;;  %v1479_v5 = vld [vmem:[%s1819_s1 + $0x8] sm:$0xff]  }
   0xf   : > { %1324 = vmatprep.subr.bf16.mxu0 %v1551_v1  ;;  %1336 = vmatprep.subr.bf16.mxu1 %v1551_v1  ;;  %v1476_v2 = vld [vmem:[%s1819_s1 + $0x38] sm:$0xff]   ;;  %v1478_v4 = vld [vmem:[%s1819_s1 + $0x30] sm:$0xff]   ;;  %s1432_s29 = smul.u32 24, %s1833_s13  ;;  %v1480_v6 = vld [vmem:[%s1819_s1 + $0x28] sm:$0xff]   ;;  %vm278_vm1 = vcmask 523264   ;;  %s1835_s12 = smov (!%p227_p6, %s1533_s12), 1 }
  0x10   : > { %1325 = vmatpush3.bf16.msra.mxu0 %v1475_v0  ;;  %1332 = vmatprep.mubr.msk.bf16.mxu0 %vm1552_vm0, %v1551_v1  ;;  %v1481_v7 = vld [vmem:[%s1819_s1] sm:$0xff]   ;;  %v1483_v9 = vld [vmem:[%s1819_s1 + $0x58] sm:$0xff]   ;;  %v1485_v13 = vld [vmem:[%s1819_s1 + $0x50] sm:$0xff]   ;;  %s1150_s21 = sshll.u32 %s1833_s13, 1 }
  0x11   : > { %1337 = vmatpush3.bf16.msra.mxu1 %v1476_v2  ;;  %1326 = vmatprep.subr.bf16.mxu0 %v1551_v1  ;;  %s217_s7 = scalar_lea.vmem %s1818_s0, %s1432_s29  ;;  %v1482_v8 = vld [vmem:[%s1819_s1 + $0x20] sm:$0xff]   ;;  %v1484_v10 = vld [vmem:[%s1819_s1 + $0x78] sm:$0xff]   ;;  %v1486_v14 = vld [vmem:[%s1819_s1 + $0x70] sm:$0xff]   ;;  %s233_s22 = sadd.s32 %s1150_s21, %s1835_s12 }
  0x12   : > { %1338 = vmatprep.subr.bf16.mxu1 %v1551_v1  ;;  %1344 = vmatprep.mubr.msk.bf16.mxu1 %vm1552_vm0, %v1551_v1  ;;  %s1647_s20 = scalar_lea.vmem %s217_s7, %s1152_s8  ;;  %v1487_v17 = vld [vmem:[%s1819_s1 + $0x48] sm:$0xff]   ;;  %v1489_v21 = vld [vmem:[%s1819_s1 + $0x40] sm:$0xff]   ;;  %v1491_v23 = vld [vmem:[%s1819_s1 + $0x98] sm:$0xff]   ;;  %s234_s25 = scalar_lea.vmem %s1821_s3, %s233_s22 }
  0x13   : > { %v245_v11 = vld [vmem:[%s1647_s20] sm:$0x1]  ;;  %v1159_v12 = vld [vmem:[%s1647_s20 + $0x6] sm:$0x1]  ;;  %v1488_v18 = vld [vmem:[%s1819_s1 + $0x68] sm:$0xff]  }
  0x14   : > { %1327 = vmatpush3.bf16.msra.mxu0 %v1477_v3  ;;  %v1181_v15 = vld.sshfl [vmem:[%s1647_s20] sm:$0x3 pattern:$0x76325410]  ;;  %v1188_v25 = vld [vmem:[%s1647_s20 + $0xc] sm:$0x1] }
  0x15   : > { %1339 = vmatpush3.bf16.msra.mxu1 %v1478_v4  ;;  %1328 = vmatprep.subr.bf16.mxu0 %v1551_v1  ;;  %v425_v16 = vshll.u32 %v1181_v15, 16  ;;  %v423_v19 = vshrl.u32 %v1181_v15, 16  ;;  %v1490_v22 = vld [vmem:[%s1819_s1 + $0x60] sm:$0xff]   ;;  %v1492_v26 = vld [vmem:[%s1819_s1 + $0xb8] sm:$0xff]   ;;  %v1493_v27 = vld [vmem:[%s1819_s1 + $0x90] sm:$0xff]  }
  0x16   : > { %1340 = vmatprep.subr.bf16.mxu1 %v1551_v1  ;;  %v1226_v28 = vld.sshfl [vmem:[%s1647_s20 + $0xc] sm:$0x3 pattern:$0x76325410]  ;;  %v1494_v29 = vld [vmem:[%s1819_s1 + $0xb0] sm:$0xff]   ;;  %v1497_v33 = vld [vmem:[%s1819_s1 + $0x80] sm:$0xff]  }
  0x17   : > { %v427_v20 = vrot.slane %v425_v16, 1  ;;  %v1495_v30 = vld [vmem:[%s1819_s1 + $0x88] sm:$0xff]   ;;  %v680_v31 = vshll.u32 %v1226_v28, 16  ;;  %v678_v34 = vshrl.u32 %v1226_v28, 16  ;;  %v1498_v36 = vld [vmem:[%s1819_s1 + $0xa0] sm:$0xff]   ;;  %v1499_v38 = vld [vmem:[%s1819_s1 + $0xd8] sm:$0xff]  }
  0x18   : > { %1329 = vmatpush3.bf16.msra.mxu0 %v1479_v5  ;;  %v1496_v32 = vld [vmem:[%s1819_s1 + $0xa8] sm:$0xff]   ;;  %v1203_v37 = vld [vmem:[%s1647_s20 + $0x12] sm:$0x1]  ;;  %v1500_v40 = vld [vmem:[%s1819_s1 + $0xf8] sm:$0xff]  }
  0x19   : > { %1341 = vmatpush3.bf16.msra.mxu1 %v1480_v6  ;;  %1330 = vmatprep.subr.bf16.mxu0 %v1551_v1  ;;  %v428_v24 = vor.u32 %v427_v20, %v423_v19  ;;  %v682_v35 = vrot.slane %v680_v31, 1  ;;  %v1501_v41 = vld [vmem:[%s1819_s1 + $0xd0] sm:$0xff]   ;;  %v1503_v43 = vld [vmem:[%s1819_s1 + $0xc8] sm:$0xff]   ;;  %v1505_v45 = vld [vmem:[%s1819_s1 + $0xc0] sm:$0xff]  }
  0x1a   : > { %1342 = vmatprep.subr.bf16.mxu1 %v1551_v1  ;;  %v1502_v42 = vld [vmem:[%s1819_s1 + $0xf0] sm:$0xff]   ;;  %v1504_v44 = vld [vmem:[%s1819_s1 + $0xe8] sm:$0xff]   ;;  %v1506_v46 = vld [vmem:[%s1819_s1 + $0xe0] sm:$0xff]  }
  0x1b   : > { %v683_v39 = vor.u32 %v682_v35, %v678_v34  ;;  %v1233_v47 = vld [vmem:[%s1647_s20 + $0x2] sm:$0x1]  ;;  %v1507_v48 = vld [vmem:[%s1819_s1 + $0x118] sm:$0xff]   ;;  %v1248_v49 = vld [vmem:[%s1647_s20 + $0x8] sm:$0x1] }
  0x1c   : > { %1331 = vmatpush3.bf16.msra.mxu0 %v1481_v7  ;;  %v1508_v50 = vld [vmem:[%s1819_s1 + $0x110] sm:$0xff]   ;;  %v1271_v51 = vld.sshfl [vmem:[%s1647_s20 + $0x2] sm:$0x3 pattern:$0x76325410]  ;;  %v1509_v53 = vld [vmem:[%s1819_s1 + $0x108] sm:$0xff]  }
  0x1d   : > { %1343 = vmatpush3.bf16.msra.mxu1 %v1482_v8  ;;  %1348 = vmatprep.subr.bf16.mxu0 %v1551_v1  ;;  %v935_v52 = vshll.u32 %v1271_v51, 16  ;;  %v933_v54 = vshrl.u32 %v1271_v51, 16  ;;  %v1510_v56 = vld [vmem:[%s1819_s1 + $0x100] sm:$0xff]  }
  0x1e   : > { %1360 = vmatprep.subr.bf16.mxu1 %v1551_v1  ;;  %v1151_v16 = vld [vmem:[%s1820_s2] ss:$0 sm:$0xff] }
  0x1f   : > { %1333 = vmatmul.mubr.msk.bf16.vlgmr.msra.gmra.mxu0 %vm278_vm1, %v245_v11  ;;  %v937_v55 = vrot.slane %v935_v52, 1 }
  0x20   : > { %1349 = vmatpush3.bf16.msra.mxu0 %v1483_v9  ;;  %1345 = vmatmul.mubr.msk.bf16.vlgmr.msra.gmra.mxu1 %vm278_vm1, %v1159_v12 }
  0x21   : > { %1361 = vmatpush3.bf16.msra.mxu1 %v1484_v10  ;;  %1350 = vmatprep.subr.bf16.mxu0 %v1551_v1  ;;  %v938_v57 = vor.u32 %v937_v55, %v933_v54 }
  0x22   : > { %1362 = vmatprep.subr.bf16.mxu1 %v1551_v1  ;;  %1356 = vmatprep.mubr.msk.bf16.mxu0 %vm1552_vm0, %v1551_v1 }
  0x23   : > { %1368 = vmatprep.mubr.msk.bf16.mxu1 %vm1552_vm0, %v1551_v1 }
  0x24   : > { %1351 = vmatpush3.bf16.msra.mxu0 %v1485_v13 }
  0x25   : > { %1363 = vmatpush3.bf16.msra.mxu1 %v1486_v14  ;;  %1352 = vmatprep.subr.bf16.mxu0 %v1551_v1 }
  0x26   : > { %1364 = vmatprep.subr.bf16.mxu1 %v1551_v1 }
  0x28   : > { %1353 = vmatpush3.bf16.msra.mxu0 %v1487_v17 }
  0x29   : > { %1365 = vmatpush3.bf16.msra.mxu1 %v1488_v18  ;;  %1354 = vmatprep.subr.bf16.mxu0 %v1551_v1 }
  0x2a   : > { %1366 = vmatprep.subr.bf16.mxu1 %v1551_v1 }
  0x2c   : > { %1355 = vmatpush3.bf16.msra.mxu0 %v1489_v21 }
  0x2d   : > { %1367 = vmatpush3.bf16.msra.mxu1 %v1490_v22  ;;  %1372 = vmatprep.subr.bf16.mxu0 %v1551_v1 }
  0x2e   : > { %1384 = vmatprep.subr.bf16.mxu1 %v1551_v1 }
  0x2f   : > { %1357 = vmatmul.mubr.msk.bf16.vlgmr.msra.gmra.mxu0 %vm278_vm1, %v428_v24 }
  0x30   : > { %1373 = vmatpush3.bf16.msra.mxu0 %v1491_v23  ;;  %1369 = vmatmul.mubr.msk.bf16.vlgmr.msra.gmra.mxu1 %vm278_vm1, %v1188_v25 }
  0x31   : > { %1385 = vmatpush3.bf16.msra.mxu1 %v1492_v26  ;;  %1374 = vmatprep.subr.bf16.mxu0 %v1551_v1 }
  0x32   : > { %1386 = vmatprep.subr.bf16.mxu1 %v1551_v1  ;;  %1380 = vmatprep.mubr.msk.bf16.mxu0 %vm1552_vm0, %v1551_v1 }
  0x33   : > { %1392 = vmatprep.mubr.msk.bf16.mxu1 %vm1552_vm0, %v1551_v1 }
  0x34   : > { %1375 = vmatpush3.bf16.msra.mxu0 %v1493_v27 }
  0x35   : > { %1387 = vmatpush3.bf16.msra.mxu1 %v1494_v29  ;;  %1376 = vmatprep.subr.bf16.mxu0 %v1551_v1 }
  0x36   : > { %1388 = vmatprep.subr.bf16.mxu1 %v1551_v1 }
  0x38   : > { %1377 = vmatpush3.bf16.msra.mxu0 %v1495_v30 }
  0x39   : > { %1389 = vmatpush3.bf16.msra.mxu1 %v1496_v32  ;;  %1378 = vmatprep.subr.bf16.mxu0 %v1551_v1 }
  0x3a   : > { %1390 = vmatprep.subr.bf16.mxu1 %v1551_v1 }
  0x3c   : > { %1379 = vmatpush3.bf16.msra.mxu0 %v1497_v33 }
  0x3d   : > { %1391 = vmatpush3.bf16.msra.mxu1 %v1498_v36  ;;  %1396 = vmatprep.subr.bf16.mxu0 %v1551_v1 }
  0x3e   : > { %1408 = vmatprep.subr.bf16.mxu1 %v1551_v1 }
  0x3f   : > { %1381 = vmatmul.mubr.msk.bf16.vlgmr.msra.gmra.mxu0 %vm278_vm1, %v1203_v37 }
  0x40   : > { %1397 = vmatpush3.bf16.msra.mxu0 %v1499_v38  ;;  %1393 = vmatmul.mubr.msk.bf16.vlgmr.msra.gmra.mxu1 %vm278_vm1, %v683_v39 }
  0x41   : > { %1409 = vmatpush3.bf16.msra.mxu1 %v1500_v40  ;;  %1398 = vmatprep.subr.bf16.mxu0 %v1551_v1 }
  0x42   : > { %1410 = vmatprep.subr.bf16.mxu1 %v1551_v1  ;;  %1404 = vmatprep.mubr.msk.bf16.mxu0 %vm1552_vm0, %v1551_v1 }
  0x43   : > { %1416 = vmatprep.mubr.msk.bf16.mxu1 %vm1552_vm0, %v1551_v1 }
  0x44   : > { %1399 = vmatpush3.bf16.msra.mxu0 %v1501_v41 }
  0x45   : > { %1411 = vmatpush3.bf16.msra.mxu1 %v1502_v42  ;;  %1400 = vmatprep.subr.bf16.mxu0 %v1551_v1 }
  0x46   : > { %1412 = vmatprep.subr.bf16.mxu1 %v1551_v1 }
  0x48   : > { %1401 = vmatpush3.bf16.msra.mxu0 %v1503_v43 }
  0x49   : > { %1413 = vmatpush3.bf16.msra.mxu1 %v1504_v44  ;;  %1402 = vmatprep.subr.bf16.mxu0 %v1551_v1 }
  0x4a   : > { %1414 = vmatprep.subr.bf16.mxu1 %v1551_v1 }
  0x4c   : > { %1403 = vmatpush3.bf16.msra.mxu0 %v1505_v45 }
  0x4d   : > { %1415 = vmatpush3.bf16.msra.mxu1 %v1506_v46  ;;  %1420 = vmatprep.subr.bf16.mxu0 %v1551_v1 }
  0x4f   : > { %1405 = vmatmul.mubr.msk.bf16.vlgmr.msra.gmra.mxu0 %vm278_vm1, %v1233_v47 }
  0x50   : > { %1421 = vmatpush3.bf16.msra.mxu0 %v1507_v48  ;;  %1417 = vmatmul.mubr.msk.bf16.vlgmr.msra.gmra.mxu1 %vm278_vm1, %v1248_v49 }
  0x51   : > { %1422 = vmatprep.subr.bf16.mxu0 %v1551_v1  ;;  %1428 = vmatprep.mubr.msk.bf16.mxu0 %vm1552_vm0, %v1551_v1 }
  0x54   : > { %1423 = vmatpush3.bf16.msra.mxu0 %v1508_v50 }
  0x55   : > { %1424 = vmatprep.subr.bf16.mxu0 %v1551_v1 }
  0x58   : > { %1425 = vmatpush3.bf16.msra.mxu0 %v1509_v53 }
  0x59   : > { %1426 = vmatprep.subr.bf16.mxu0 %v1551_v1 }
  0x5c   : > { %1427 = vmatpush3.bf16.msra.mxu0 %v1510_v56 }
  0x5f   : > { %1429 = vmatmul.mubr.msk.bf16.vlgmr.msra.gmra.mxu0 %vm278_vm1, %v938_v57 }
  0xdf   : > { %v316_v58 = vpop.f32.mrf.mxu0 }
  0xe0   : > { %v397_v59 = vpop.f32.mrf.mxu1  ;;  %v322_v19 = vadd.f32 %v1151_v16, %v316_v58 }
  0xe1   : > { %v1334_v60 = vpop.f32.mrf.mxu0 }
  0xe2   : > { %v1346_v61 = vpop.f32.mrf.mxu1  ;;  %v403_v20 = vadd.f32 %v397_v59, %v322_v19 }
  0xe3   : > { %v319_v62 = vpop.f32.mrf.mxu0 }
  0xe4   : > { %v400_v63 = vpop.f32.mrf.mxu1 }
  0xe5   : > { %v1335_v0 = vpop.f32.mrf.mxu0 }
  0xe6   : > { %v1347_v2 = vpop.f32.mrf.mxu1 }
  0xef   : > { %v490_v3 = vpop.f32.mrf.mxu0 }
  0xf0   : > { %v571_v4 = vpop.f32.mrf.mxu1  ;;  %v496_v21 = vadd.f32 %v490_v3, %v403_v20 }
  0xf1   : > { %v1358_v5 = vpop.f32.mrf.mxu0 }
  0xf2   : > { %v1370_v6 = vpop.f32.mrf.mxu1  ;;  %v577_v25 = vadd.f32 %v571_v4, %v496_v21 }
  0xf3   : > { %v493_v7 = vpop.f32.mrf.mxu0 }
  0xf4   : > { %v574_v8 = vpop.f32.mrf.mxu1 }
  0xf5   : > { %v1359_v9 = vpop.f32.mrf.mxu0 }
  0xf6   : > { %v1371_v1 = vpop.f32.mrf.mxu1 }
  0xff   : > { %v652_v10 = vpop.f32.mrf.mxu0 }
 0x100   : > { %v745_v11 = vpop.f32.mrf.mxu1  ;;  %v658_v28 = vadd.f32 %v652_v10, %v577_v25 }
 0x101   : > { %v1382_v12 = vpop.f32.mrf.mxu0 }
 0x102   : > { %v1394_v13 = vpop.f32.mrf.mxu1  ;;  %v751_v32 = vadd.f32 %v745_v11, %v658_v28 }
 0x103   : > { %v655_v14 = vpop.f32.mrf.mxu0 }
 0x104   : > { %v748_v15 = vpop.f32.mrf.mxu1 }
 0x105   : > { %v1383_v17 = vpop.f32.mrf.mxu0 }
 0x106   : > { %v1395_v18 = vpop.f32.mrf.mxu1 }
 0x10f   : > { %v826_v22 = vpop.f32.mrf.mxu0 }
 0x110   : > { %v907_v23 = vpop.f32.mrf.mxu1  ;;  %v832_v33 = vadd.f32 %v826_v22, %v751_v32 }
 0x111   : > { %v1406_v24 = vpop.f32.mrf.mxu0 }
 0x112   : > { %v1418_v26 = vpop.f32.mrf.mxu1  ;;  %v913_v34 = vadd.f32 %v907_v23, %v832_v33 }
 0x113   : > { %v829_v27 = vpop.f32.mrf.mxu0 }
 0x114   : > { %v910_v29 = vpop.f32.mrf.mxu1 }
 0x115   : > { %v1407_v30 = vpop.f32.mrf.mxu0 }
 0x116   : > { %v1419_v31 = vpop.f32.mrf.mxu1 }
 0x11f   : > { %v1000_v35 = vpop.f32.mrf.mxu0 }
 0x120   : > { %v1006_v36 = vadd.f32 %v1000_v35, %v913_v34 }
 0x121   : > { %v1430_v37 = vpop.f32.mrf.mxu0 }
 0x122   : > { %v1007_v38 = vmax.f32 %v1006_v36, 0.0 }
 0x123   : > { %v1003_v39 = vpop.f32.mrf.mxu0 }
 0x124   : > { %v1008_v40 = vpack.c.bf16 %v1007_v38, %v1007_v38 }
 0x125   : > { %v1431_v41 = vpop.f32.mrf.mxu0 }
 0x126   : > { %1009 = vst [vmem:[%s234_s25] sm:$0x1] %v1008_v40 }
 0x127 PF: > { %s13_s16 = sadd.s32 1, %s1549_s16   ;;  %s1822_s12 = smov %s1541_s14 }
 0x128   : > { %p10_p7 = scmp.ge.s32.totalorder %s13_s16, 6   ;;  %s1823_s13 = smov %s1545_s15 }
 0x129   : > { %s1824_s14 = smov %s1827_s17  ;;  %s1825_s15 = smov %s1831_s18 }
 0x12a   :  { %12 = sbr.rel (!%p10_p7) target bundleno = 3 (0x3), region = 82 }

// kernel: forward.10
= control target key start
LH: loop header
LB: loop body
LE: loop exit
PB: predicated region body
PF: predicated region fallthrough
CT: control target
= control target key end

     0   :  { %s2494_s12 = smov 0   ;;  %s2496_s13 = smov 0   ;;  %s3020_s0 = inlined_call_operand.vmem [shape: bf16[2,4,2,2,128], index: 0, kind: input, shape index: {}]   ;;  %s3021_s1 = inlined_call_operand.vmem [shape: bf16[9,128,256], index: 1, kind: input, shape index: {}]   ;;  %s3022_s2 = inlined_call_operand.vmem [shape: f32[1,256], index: 2, kind: input, shape index: {}]   ;;  %s3023_s3 = inlined_call_operand.vmem [shape: bf16[2,1,1,256], index: 3, kind: output, shape index: {}]  }
   0x1   :  { %s2498_s14 = smov 0  }
   0x2 LB: > { %s32_s15 = sadd.s32 1, %s2466_s13  ;;  %p1918_p0 = scmp.ge.s32.totalorder %s2470_s14, 1  ;;  %s2470_s14 = sphi %s2498_s14, %s13_s14   ;;  %s2466_s13 = sphi %s2496_s13, %s3025_s13   ;;  %s2462_s12 = sphi %s2494_s12, %s3024_s12  }
   0x3   : > { %p34_p1 = scmp.ge.s32.totalorder %s32_s15, 2  ;;  %p180_p2 = scmp.lt.s32.totalorder %s2470_s14, 3 }
   0x5   : > { %s3027_s15 = smov (%p34_p1, %s32_s15), 0  ;;  %p181_p3 = pnand %p1918_p0, %p180_p2 }
   0x6   : > { %p219_p4 = scmp.lt.s32.totalorder (!%p181_p3), %s2462_s12, 1 }
   0x7   : > { %184 = sbr.rel (%p181_p3) target bundleno = 389 (0x185), region = 32 }
   0xc   : > { %v2232_v0 = vld [vmem:[%s3021_s1 + $0x74] ss:$8 sps:$4 sm:$0xff]   ;;  %v2234_v1 = vld [vmem:[%s3021_s1 + $0x70] ss:$8 sps:$4 sm:$0xff]   ;;  %v2472_v2 = vmov 0   ;;  %s3029_s12 = smov (!%p219_p4, %s2462_s12), 1  ;;  %v394_v55 = vlaneseq }
   0xd   : > { %379 = vmatprep.mubr.bf16.mxu0 %v2472_v2  ;;  %539 = vmatprep.mubr.bf16.mxu1 %v2472_v2  ;;  %v2235_v3 = vld [vmem:[%s3021_s1 + $0xf4] ss:$8 sps:$4 sm:$0xff]   ;;  %v2237_v4 = vld [vmem:[%s3021_s1 + $0xf0] ss:$8 sps:$4 sm:$0xff]   ;;  %v2238_v5 = vld [vmem:[%s3021_s1 + $0x64] ss:$8 sps:$4 sm:$0xff]  }
   0xe   : > { %347 = vmatprep.subr.bf16.mxu0 %v2232_v0  ;;  %v2240_v6 = vld [vmem:[%s3021_s1 + $0x60] ss:$8 sps:$4 sm:$0xff]   ;;  %507 = vmatprep.subr.bf16.mxu1 %v2235_v3  ;;  %v2241_v7 = vld [vmem:[%s3021_s1 + $0xe4] ss:$8 sps:$4 sm:$0xff]   ;;  %v2244_v9 = vld [vmem:[%s3021_s1 + $0x54] ss:$8 sps:$4 sm:$0xff]  }
   0xf   : > { %348 = vmatpush1.bf16.msra.mxu0 %v2234_v1  ;;  %508 = vmatpush1.bf16.msra.mxu1 %v2237_v4  ;;  %v2243_v8 = vld [vmem:[%s3021_s1 + $0xe0] ss:$8 sps:$4 sm:$0xff]   ;;  %v2246_v10 = vld [vmem:[%s3021_s1 + $0x50] ss:$8 sps:$4 sm:$0xff]   ;;  %v2247_v11 = vld [vmem:[%s3021_s1 + $0xd4] ss:$8 sps:$4 sm:$0xff]  }
  0x10   : > { %349 = vmatprep.subr.bf16.mxu0 %v2238_v5  ;;  %509 = vmatprep.subr.bf16.mxu1 %v2241_v7  ;;  %v2250_v12 = vld [vmem:[%s3021_s1 + $0x44] ss:$8 sps:$4 sm:$0xff]   ;;  %v2249_v13 = vld [vmem:[%s3021_s1 + $0xd0] ss:$8 sps:$4 sm:$0xff]   ;;  %v2252_v15 = vld [vmem:[%s3021_s1 + $0x40] ss:$8 sps:$4 sm:$0xff]  }
  0x11   : > { %v2253_v14 = vld [vmem:[%s3021_s1 + $0xc4] ss:$8 sps:$4 sm:$0xff]   ;;  %v2256_v16 = vld [vmem:[%s3021_s1 + $0x34] ss:$8 sps:$4 sm:$0xff]   ;;  %v2255_v17 = vld [vmem:[%s3021_s1 + $0xc0] ss:$8 sps:$4 sm:$0xff]  }
  0x12   : > { %v2259_v18 = vld [vmem:[%s3021_s1 + $0xb4] ss:$8 sps:$4 sm:$0xff]   ;;  %v2258_v19 = vld [vmem:[%s3021_s1 + $0x30] ss:$8 sps:$4 sm:$0xff]   ;;  %v2262_v20 = vld [vmem:[%s3021_s1 + $0x24] ss:$8 sps:$4 sm:$0xff]  }
  0x13   : > { %350 = vmatpush1.bf16.msra.mxu0 %v2240_v6  ;;  %510 = vmatpush1.bf16.msra.mxu1 %v2243_v8  ;;  %v2261_v21 = vld [vmem:[%s3021_s1 + $0xb0] ss:$8 sps:$4 sm:$0xff]   ;;  %v2265_v22 = vld [vmem:[%s3021_s1 + $0xa4] ss:$8 sps:$4 sm:$0xff]   ;;  %v2264_v23 = vld [vmem:[%s3021_s1 + $0x20] ss:$8 sps:$4 sm:$0xff]  }
  0x14   : > { %351 = vmatprep.subr.bf16.mxu0 %v2244_v9  ;;  %511 = vmatprep.subr.bf16.mxu1 %v2247_v11  ;;  %v2268_v24 = vld [vmem:[%s3021_s1 + $0x14] ss:$8 sps:$4 sm:$0xff]   ;;  %v2267_v25 = vld [vmem:[%s3021_s1 + $0xa0] ss:$8 sps:$4 sm:$0xff]   ;;  %v2270_v27 = vld [vmem:[%s3021_s1 + $0x10] ss:$8 sps:$4 sm:$0xff]  }
  0x15   : > { %v2271_v26 = vld [vmem:[%s3021_s1 + $0x94] ss:$8 sps:$4 sm:$0xff]   ;;  %s1919_s24 = sshll.u32 %s3029_s12, 3  ;;  %v2274_v28 = vld [vmem:[%s3021_s1 + $0x4] ss:$8 sps:$4 sm:$0xff]   ;;  %v2692_v61 = vshrl.u32 %v394_v55, 7 }
  0x16   : > { %v2273_v29 = vld [vmem:[%s3021_s1 + $0x90] ss:$8 sps:$4 sm:$0xff]   ;;  %v2277_v30 = vld [vmem:[%s3021_s1 + $0x84] ss:$8 sps:$4 sm:$0xff]   ;;  %s2614_s6 = scalar_lea.vmem %s3020_s0, %s1919_s24  ;;  %v2276_v31 = vld [vmem:[%s3021_s1] ss:$8 sps:$4 sm:$0xff]  }
  0x17   : > { %352 = vmatpush1.bf16.msra.mxu0 %v2246_v10  ;;  %512 = vmatpush1.bf16.msra.mxu1 %v2249_v13  ;;  %v2282_v32 = vld [vmem:[%s3021_s1 + $0x174] ss:$8 sps:$4 sm:$0xff]   ;;  %v2279_v33 = vld [vmem:[%s3021_s1 + $0x80] ss:$8 sps:$4 sm:$0xff]   ;;  %v2280_v36 = vld [vmem:[%s3021_s1 + $0x170] ss:$8 sps:$4 sm:$0xff]  }
  0x18   : > { %353 = vmatprep.subr.bf16.mxu0 %v2250_v12  ;;  %513 = vmatprep.subr.bf16.mxu1 %v2253_v14  ;;  %v250_v34 = vld [vmem:[%s2614_s6] sm:$0x1]  ;;  %v2285_v35 = vld [vmem:[%s3021_s1 + $0x1f4] ss:$8 sps:$4 sm:$0xff]   ;;  %v2288_v37 = vld [vmem:[%s3021_s1 + $0x164] ss:$8 sps:$4 sm:$0xff]  }
  0x19   : > { %v1937_v38 = vld [vmem:[%s2614_s6 + $0x2] sm:$0x1]  ;;  %v2283_v39 = vld [vmem:[%s3021_s1 + $0x1f0] ss:$8 sps:$4 sm:$0xff]   ;;  %v2291_v40 = vld [vmem:[%s3021_s1 + $0x1e4] ss:$8 sps:$4 sm:$0xff]  }
  0x1a   : > { %v2286_v41 = vld [vmem:[%s3021_s1 + $0x160] ss:$8 sps:$4 sm:$0xff]   ;;  %v2294_v42 = vld [vmem:[%s3021_s1 + $0x154] ss:$8 sps:$4 sm:$0xff]   ;;  %v2292_v45 = vld [vmem:[%s3021_s1 + $0x150] ss:$8 sps:$4 sm:$0xff]  }
  0x1b   : > { %354 = vmatpush1.bf16.msra.mxu0 %v2252_v15  ;;  %514 = vmatpush1.bf16.msra.mxu1 %v2255_v17  ;;  %v2289_v43 = vld [vmem:[%s3021_s1 + $0x1e0] ss:$8 sps:$4 sm:$0xff]   ;;  %v2297_v44 = vld [vmem:[%s3021_s1 + $0x1d4] ss:$8 sps:$4 sm:$0xff]   ;;  %v2300_v46 = vld [vmem:[%s3021_s1 + $0x144] ss:$8 sps:$4 sm:$0xff]  }
  0x1c   : > { %355 = vmatprep.subr.bf16.mxu0 %v2256_v16  ;;  %515 = vmatprep.subr.bf16.mxu1 %v2259_v18  ;;  %v2295_v47 = vld [vmem:[%s3021_s1 + $0x1d0] ss:$8 sps:$4 sm:$0xff]   ;;  %v2303_v48 = vld [vmem:[%s3021_s1 + $0x1c4] ss:$8 sps:$4 sm:$0xff]   ;;  %v2298_v49 = vld [vmem:[%s3021_s1 + $0x140] ss:$8 sps:$4 sm:$0xff]  }
  0x1d   : > { %v2306_v50 = vld [vmem:[%s3021_s1 + $0x134] ss:$8 sps:$4 sm:$0xff]   ;;  %v2301_v51 = vld [vmem:[%s3021_s1 + $0x1c0] ss:$8 sps:$4 sm:$0xff]   ;;  %v2473_v53 = vmov 1966171168  }
  0x1e   : > { %v2309_v52 = vld [vmem:[%s3021_s1 + $0x1b4] ss:$8 sps:$4 sm:$0xff]   ;;  %v392_v54 = vunpack.c.l.s4 %v2473_v53  ;;  %v2304_v56 = vld [vmem:[%s3021_s1 + $0x130] ss:$8 sps:$4 sm:$0xff]   ;;  %v2312_v57 = vld [vmem:[%s3021_s1 + $0x124] ss:$8 sps:$4 sm:$0xff]  }
  0x1f   : > { %356 = vmatpush1.bf16.msra.mxu0 %v2258_v19  ;;  %516 = vmatpush1.bf16.msra.mxu1 %v2261_v21  ;;  %v2307_v58 = vld [vmem:[%s3021_s1 + $0x1b0] ss:$8 sps:$4 sm:$0xff]   ;;  %v2315_v59 = vld [vmem:[%s3021_s1 + $0x1a4] ss:$8 sps:$4 sm:$0xff]   ;;  %v2310_v62 = vld [vmem:[%s3021_s1 + $0x120] ss:$8 sps:$4 sm:$0xff]  }
  0x20   : > { %357 = vmatprep.subr.bf16.mxu0 %v2262_v20  ;;  %517 = vmatprep.subr.bf16.mxu1 %v2265_v22  ;;  %v393_v60 = vunpack.c.0.s8 %v392_v54  ;;  %v2318_v63 = vld [vmem:[%s3021_s1 + $0x114] ss:$8 sps:$4 sm:$0xff]   ;;  %v2313_v0 = vld [vmem:[%s3021_s1 + $0x1a0] ss:$8 sps:$4 sm:$0xff]   ;;  %v2316_v1 = vld [vmem:[%s3021_s1 + $0x110] ss:$8 sps:$4 sm:$0xff]  }
  0x21   : > { %v2321_v3 = vld [vmem:[%s3021_s1 + $0x194] ss:$8 sps:$4 sm:$0xff]   ;;  %v1986_v5 = vld.sshfl [vmem:[%s2614_s6] sm:$0x1 pattern:$0x75316420] }
  0x22   : > { %v2710_v4 = vsub.s32 %v393_v60, %v2692_v61  ;;  %v2324_v6 = vld [vmem:[%s3021_s1 + $0x104] ss:$8 sps:$4 sm:$0xff]   ;;  %v2319_v7 = vld [vmem:[%s3021_s1 + $0x190] ss:$8 sps:$4 sm:$0xff]   ;;  %v2322_v10 = vld [vmem:[%s3021_s1 + $0x100] ss:$8 sps:$4 sm:$0xff]  }
  0x23   : > { %358 = vmatpush1.bf16.msra.mxu0 %v2264_v23  ;;  %518 = vmatpush1.bf16.msra.mxu1 %v2267_v25  ;;  %v2327_v8 = vld [vmem:[%s3021_s1 + $0x184] ss:$8 sps:$4 sm:$0xff]   ;;  %v2330_v11 = vld [vmem:[%s3021_s1 + $0x274] ss:$8 sps:$4 sm:$0xff]   ;;  %v2325_v12 = vld [vmem:[%s3021_s1 + $0x180] ss:$8 sps:$4 sm:$0xff]  }
  0x24   : > { %359 = vmatprep.subr.bf16.mxu0 %v2268_v24  ;;  %519 = vmatprep.subr.bf16.mxu1 %v2271_v26  ;;  %v599_v9 = vrot.slane %v1986_v5, %v2710_v4  ;;  %v2333_v14 = vld [vmem:[%s3021_s1 + $0x2f4] ss:$8 sps:$4 sm:$0xff]   ;;  %v2328_v15 = vld [vmem:[%s3021_s1 + $0x270] ss:$8 sps:$4 sm:$0xff]   ;;  %v2336_v16 = vld [vmem:[%s3021_s1 + $0x264] ss:$8 sps:$4 sm:$0xff]  }
  0x25   : > { %v2003_v17 = vld [vmem:[%s2614_s6 + $0x4] sm:$0x1]  ;;  %v2331_v18 = vld [vmem:[%s3021_s1 + $0x2f0] ss:$8 sps:$4 sm:$0xff]   ;;  %v2334_v20 = vld [vmem:[%s3021_s1 + $0x260] ss:$8 sps:$4 sm:$0xff]  }
  0x26   : > { %v601_v13 = vshrl.u32 %v599_v9, 16  ;;  %v2339_v19 = vld [vmem:[%s3021_s1 + $0x2e4] ss:$8 sps:$4 sm:$0xff]   ;;  %v2342_v21 = vld [vmem:[%s3021_s1 + $0x254] ss:$8 sps:$4 sm:$0xff]   ;;  %vm1770_vm0 = vcmask 1040384  }
  0x27   : > { %360 = vmatpush1.bf16.msra.mxu0 %v2270_v27  ;;  %520 = vmatpush1.bf16.msra.mxu1 %v2273_v29  ;;  %v2337_v22 = vld [vmem:[%s3021_s1 + $0x2e0] ss:$8 sps:$4 sm:$0xff]   ;;  %v2345_v23 = vld [vmem:[%s3021_s1 + $0x2d4] ss:$8 sps:$4 sm:$0xff]   ;;  %v2340_v24 = vld [vmem:[%s3021_s1 + $0x250] ss:$8 sps:$4 sm:$0xff]  }
  0x28   : > { %361 = vmatprep.subr.bf16.mxu0 %v2274_v28  ;;  %521 = vmatprep.subr.bf16.mxu1 %v2277_v30  ;;  %v2348_v25 = vld [vmem:[%s3021_s1 + $0x244] ss:$8 sps:$4 sm:$0xff]   ;;  %v2343_v26 = vld [vmem:[%s3021_s1 + $0x2d0] ss:$8 sps:$4 sm:$0xff]   ;;  %v2346_v28 = vld [vmem:[%s3021_s1 + $0x240] ss:$8 sps:$4 sm:$0xff]  }
  0x29   : > { %v2351_v27 = vld [vmem:[%s3021_s1 + $0x2c4] ss:$8 sps:$4 sm:$0xff]   ;;  %v2354_v29 = vld [vmem:[%s3021_s1 + $0x234] ss:$8 sps:$4 sm:$0xff]   ;;  %v2349_v30 = vld [vmem:[%s3021_s1 + $0x2c0] ss:$8 sps:$4 sm:$0xff]  }
  0x2a   : > { %v2384_v53 = vld [vmem:[%s3021_s1 + $0x364] ss:$8 sps:$4 sm:$0xff]   ;;  %v2379_v54 = vld [vmem:[%s3021_s1 + $0x3f0] ss:$8 sps:$4 sm:$0xff]   ;;  %v2397_v5 = vld [vmem:[%s3021_s1 + $0x3c0] ss:$8 sps:$4 sm:$0xff]  }
  0x2b   : > { %362 = vmatpush1.bf16.msra.mxu0 %v2276_v31  ;;  %522 = vmatpush1.bf16.msra.mxu1 %v2279_v33  ;;  %v2357_v31 = vld [vmem:[%s3021_s1 + $0x2b4] ss:$8 sps:$4 sm:$0xff]   ;;  %v2360_v33 = vld [vmem:[%s3021_s1 + $0x224] ss:$8 sps:$4 sm:$0xff]   ;;  %v2388_v60 = vld [vmem:[%s3021_s1 + $0x350] ss:$8 sps:$4 sm:$0xff]  }
  0x2c   : > { %684 = vmatprep.subr.bf16.mxu0 %v2282_v32  ;;  %844 = vmatprep.subr.bf16.mxu1 %v2285_v35  ;;  %v2352_v32 = vld [vmem:[%s3021_s1 + $0x230] ss:$8 sps:$4 sm:$0xff]   ;;  %v2363_v35 = vld [vmem:[%s3021_s1 + $0x2a4] ss:$8 sps:$4 sm:$0xff]   ;;  %vm1771_vm1 = vsmask.f32 256 }
  0x2d   : > { %v2387_v55 = vld [vmem:[%s3021_s1 + $0x3e4] ss:$8 sps:$4 sm:$0xff]   ;;  %v2403_v9 = vld [vmem:[%s3021_s1 + $0x3b0] ss:$8 sps:$4 sm:$0xff]   ;;  %s1920_s20 = sshll.u32 %s3029_s12, 1  ;;  %vm1773_vm2 = vcmask 1041409   ;;  %vm1772_vm4 = vmand %vm1770_vm0, %vm1771_vm1 }
  0x2e   : > { %380 = vmatmul.mubr.bf16.vlgmr.msra.gmra.mxu0 %v250_v34  ;;  %540 = vmatmul.mubr.bf16.vlgmr.msra.gmra.mxu1 %v1937_v38  ;;  %v2355_v34 = vld [vmem:[%s3021_s1 + $0x2b0] ss:$8 sps:$4 sm:$0xff]   ;;  %v2361_v38 = vld [vmem:[%s3021_s1 + $0x2a0] ss:$8 sps:$4 sm:$0xff]   ;;  %vm1774_vm3 = vsmask.f32 1280  ;;  %s245_s23 = scalar_lea.vmem %s3023_s3, %s1920_s20 }
  0x2f   : > { %685 = vmatpush1.bf16.msra.mxu0 %v2280_v36  ;;  %716 = vmatprep.mubr.bf16.mxu0 %v2472_v2  ;;  %v2358_v36 = vld [vmem:[%s3021_s1 + $0x220] ss:$8 sps:$4 sm:$0xff]   ;;  %vm1775_vm5 = vmand %vm1773_vm2, %vm1774_vm3 }
  0x30   : > { %686 = vmatprep.subr.bf16.mxu0 %v2288_v37  ;;  %845 = vmatpush1.bf16.msra.mxu1 %v2283_v39  ;;  %v2366_v37 = vld [vmem:[%s3021_s1 + $0x214] ss:$8 sps:$4 sm:$0xff]   ;;  %vm1776_vm6 = vmor %vm1775_vm5, %vm1772_vm4 }
  0x31   : > { %876 = vmatprep.mubr.bf16.mxu1 %v2472_v2  ;;  %846 = vmatprep.subr.bf16.mxu1 %v2291_v40  ;;  %v2369_v39 = vld [vmem:[%s3021_s1 + $0x294] ss:$8 sps:$4 sm:$0xff]   ;;  %v2364_v40 = vld [vmem:[%s3021_s1 + $0x210] ss:$8 sps:$4 sm:$0xff]  }
  0x33   : > { %687 = vmatpush1.bf16.msra.mxu0 %v2286_v41  ;;  %v2372_v41 = vld [vmem:[%s3021_s1 + $0x204] ss:$8 sps:$4 sm:$0xff]  }
  0x34   : > { %688 = vmatprep.subr.bf16.mxu0 %v2294_v42  ;;  %847 = vmatpush1.bf16.msra.mxu1 %v2289_v43  ;;  %v2367_v42 = vld [vmem:[%s3021_s1 + $0x290] ss:$8 sps:$4 sm:$0xff]   ;;  %v2086_v43 = vld.sshfl [vmem:[%s2614_s6 + $0x4] sm:$0x1 pattern:$0x75316420] }
  0x35   : > { %848 = vmatprep.subr.bf16.mxu1 %v2297_v44  ;;  %v2375_v44 = vld [vmem:[%s3021_s1 + $0x284] ss:$8 sps:$4 sm:$0xff]  }
  0x37   : > { %689 = vmatpush1.bf16.msra.mxu0 %v2292_v45  ;;  %v2370_v45 = vld [vmem:[%s3021_s1 + $0x200] ss:$8 sps:$4 sm:$0xff]  }
  0x38   : > { %690 = vmatprep.subr.bf16.mxu0 %v2300_v46  ;;  %849 = vmatpush1.bf16.msra.mxu1 %v2295_v47  ;;  %v2378_v46 = vld [vmem:[%s3021_s1 + $0x374] ss:$8 sps:$4 sm:$0xff]   ;;  %v1096_v47 = vrot.slane %v2086_v43, %v2710_v4 }
  0x39   : > { %850 = vmatprep.subr.bf16.mxu1 %v2303_v48  ;;  %v2373_v48 = vld [vmem:[%s3021_s1 + $0x280] ss:$8 sps:$4 sm:$0xff]  }
  0x3b   : > { %691 = vmatpush1.bf16.msra.mxu0 %v2298_v49  ;;  %v2036_v49 = vld [vmem:[%s2614_s6 + $0x6] sm:$0x1] }
  0x3c   : > { %692 = vmatprep.subr.bf16.mxu0 %v2306_v50  ;;  %851 = vmatpush1.bf16.msra.mxu1 %v2301_v51  ;;  %v2381_v50 = vld [vmem:[%s3021_s1 + $0x3f4] ss:$8 sps:$4 sm:$0xff]   ;;  %v2376_v51 = vld [vmem:[%s3021_s1 + $0x370] ss:$8 sps:$4 sm:$0xff]  }
  0x3d   : > { %852 = vmatprep.subr.bf16.mxu1 %v2309_v52  ;;  %v1098_v52 = vshrl.u32 %v1096_v47, 16 }
  0x3f   : > { %693 = vmatpush1.bf16.msra.mxu0 %v2304_v56  ;;  %v2382_v56 = vld [vmem:[%s3021_s1 + $0x360] ss:$8 sps:$4 sm:$0xff]  }
  0x40   : > { %694 = vmatprep.subr.bf16.mxu0 %v2312_v57  ;;  %853 = vmatpush1.bf16.msra.mxu1 %v2307_v58  ;;  %v2390_v57 = vld [vmem:[%s3021_s1 + $0x354] ss:$8 sps:$4 sm:$0xff]   ;;  %v2385_v58 = vld [vmem:[%s3021_s1 + $0x3e0] ss:$8 sps:$4 sm:$0xff]  }
  0x41   : > { %854 = vmatprep.subr.bf16.mxu1 %v2315_v59  ;;  %v2393_v59 = vld [vmem:[%s3021_s1 + $0x3d4] ss:$8 sps:$4 sm:$0xff]  }
  0x43   : > { %695 = vmatpush1.bf16.msra.mxu0 %v2310_v62  ;;  %v2396_v62 = vld [vmem:[%s3021_s1 + $0x344] ss:$8 sps:$4 sm:$0xff]  }
  0x44   : > { %696 = vmatprep.subr.bf16.mxu0 %v2318_v63  ;;  %855 = vmatpush1.bf16.msra.mxu1 %v2313_v0  ;;  %v2391_v63 = vld [vmem:[%s3021_s1 + $0x3d0] ss:$8 sps:$4 sm:$0xff]   ;;  %v2399_v0 = vld [vmem:[%s3021_s1 + $0x3c4] ss:$8 sps:$4 sm:$0xff]  }
  0x45   : > { %856 = vmatprep.subr.bf16.mxu1 %v2321_v3  ;;  %v2402_v3 = vld [vmem:[%s3021_s1 + $0x334] ss:$8 sps:$4 sm:$0xff]  }
  0x47   : > { %697 = vmatpush1.bf16.msra.mxu0 %v2316_v1  ;;  %v2394_v1 = vld [vmem:[%s3021_s1 + $0x340] ss:$8 sps:$4 sm:$0xff]  }
  0x48   : > { %698 = vmatprep.subr.bf16.mxu0 %v2324_v6  ;;  %857 = vmatpush1.bf16.msra.mxu1 %v2319_v7  ;;  %v2405_v6 = vld [vmem:[%s3021_s1 + $0x3b4] ss:$8 sps:$4 sm:$0xff]   ;;  %v2400_v7 = vld [vmem:[%s3021_s1 + $0x330] ss:$8 sps:$4 sm:$0xff]  }
  0x49   : > { %858 = vmatprep.subr.bf16.mxu1 %v2327_v8  ;;  %v2408_v8 = vld [vmem:[%s3021_s1 + $0x324] ss:$8 sps:$4 sm:$0xff]  }
  0x4b   : > { %699 = vmatpush1.bf16.msra.mxu0 %v2322_v10  ;;  %v2411_v10 = vld [vmem:[%s3021_s1 + $0x3a4] ss:$8 sps:$4 sm:$0xff]  }
  0x4c   : > { %1004 = vmatprep.subr.bf16.mxu0 %v2330_v11  ;;  %859 = vmatpush1.bf16.msra.mxu1 %v2325_v12  ;;  %v2406_v11 = vld [vmem:[%s3021_s1 + $0x320] ss:$8 sps:$4 sm:$0xff]   ;;  %v2414_v12 = vld [vmem:[%s3021_s1 + $0x314] ss:$8 sps:$4 sm:$0xff]  }
  0x4d   : > { %1181 = vmatprep.subr.bf16.mxu1 %v2333_v14  ;;  %v2417_v14 = vld [vmem:[%s3021_s1 + $0x394] ss:$8 sps:$4 sm:$0xff]  }
  0x4e   : > { %717 = vmatmul.mubr.bf16.vlgmr.msra.gmra.mxu0 %v601_v13  ;;  %v2409_v13 = vld [vmem:[%s3021_s1 + $0x3a0] ss:$8 sps:$4 sm:$0xff]  }
  0x4f   : > { %1005 = vmatpush1.bf16.msra.mxu0 %v2328_v15  ;;  %1036 = vmatprep.mubr.bf16.mxu0 %v2472_v2  ;;  %v2412_v15 = vld [vmem:[%s3021_s1 + $0x310] ss:$8 sps:$4 sm:$0xff]  }
  0x50   : > { %877 = vmatmul.mubr.bf16.vlgmr.msra.gmra.mxu1 %v2003_v17  ;;  %1006 = vmatprep.subr.bf16.mxu0 %v2336_v16  ;;  %v2420_v16 = vld [vmem:[%s3021_s1 + $0x304] ss:$8 sps:$4 sm:$0xff]   ;;  %v2415_v17 = vld [vmem:[%s3021_s1 + $0x390] ss:$8 sps:$4 sm:$0xff]  }
  0x51   : > { %1182 = vmatpush1.bf16.msra.mxu1 %v2331_v18  ;;  %1213 = vmatprep.mubr.bf16.mxu1 %v2472_v2  ;;  %v2423_v18 = vld [vmem:[%s3021_s1 + $0x384] ss:$8 sps:$4 sm:$0xff]  }
  0x52   : > { %1183 = vmatprep.subr.bf16.mxu1 %v2339_v19  ;;  %v2418_v19 = vld [vmem:[%s3021_s1 + $0x300] ss:$8 sps:$4 sm:$0xff]  }
  0x53   : > { %1007 = vmatpush1.bf16.msra.mxu0 %v2334_v20  ;;  %v2426_v20 = vld [vmem:[%s3021_s1 + $0x474] ss:$8 sps:$4 sm:$0xff]  }
  0x54   : > { %1008 = vmatprep.subr.bf16.mxu0 %v2342_v21  ;;  %v2421_v21 = vld [vmem:[%s3021_s1 + $0x380] ss:$8 sps:$4 sm:$0xff]  }
  0x55   : > { %1184 = vmatpush1.bf16.msra.mxu1 %v2337_v22  ;;  %v2103_v22 = vld [vmem:[%s2614_s6 + $0x1] sm:$0x1] }
  0x56   : > { %1185 = vmatprep.subr.bf16.mxu1 %v2345_v23  ;;  %v2424_v23 = vld [vmem:[%s3021_s1 + $0x470] ss:$8 sps:$4 sm:$0xff]  }
  0x57   : > { %1009 = vmatpush1.bf16.msra.mxu0 %v2340_v24  ;;  %v2429_v24 = vld [vmem:[%s3021_s1 + $0x464] ss:$8 sps:$4 sm:$0xff]  }
  0x58   : > { %1010 = vmatprep.subr.bf16.mxu0 %v2348_v25  ;;  %v2136_v25 = vld [vmem:[%s2614_s6 + $0x3] sm:$0x1] }
  0x59   : > { %1186 = vmatpush1.bf16.msra.mxu1 %v2343_v26  ;;  %v2427_v26 = vld [vmem:[%s3021_s1 + $0x460] ss:$8 sps:$4 sm:$0xff]  }
  0x5a   : > { %1187 = vmatprep.subr.bf16.mxu1 %v2351_v27  ;;  %v2432_v27 = vld [vmem:[%s3021_s1 + $0x454] ss:$8 sps:$4 sm:$0xff]  }
  0x5b   : > { %1011 = vmatpush1.bf16.msra.mxu0 %v2346_v28  ;;  %v2430_v28 = vld [vmem:[%s3021_s1 + $0x450] ss:$8 sps:$4 sm:$0xff]  }
  0x5c   : > { %1012 = vmatprep.subr.bf16.mxu0 %v2354_v29  ;;  %v2435_v29 = vld [vmem:[%s3021_s1 + $0x444] ss:$8 sps:$4 sm:$0xff]  }
  0x5d   : > { %1188 = vmatpush1.bf16.msra.mxu1 %v2349_v30  ;;  %v2438_v30 = vld [vmem:[%s3021_s1 + $0x434] ss:$8 sps:$4 sm:$0xff]  }
  0x5e   : > { %1189 = vmatprep.subr.bf16.mxu1 %v2357_v31  ;;  %v2436_v31 = vld [vmem:[%s3021_s1 + $0x430] ss:$8 sps:$4 sm:$0xff]  }
  0x5f   : > { %1013 = vmatpush1.bf16.msra.mxu0 %v2352_v32  ;;  %v2441_v32 = vld [vmem:[%s3021_s1 + $0x424] ss:$8 sps:$4 sm:$0xff]  }
  0x60   : > { %1014 = vmatprep.subr.bf16.mxu0 %v2360_v33  ;;  %v2439_v33 = vld [vmem:[%s3021_s1 + $0x420] ss:$8 sps:$4 sm:$0xff]  }
  0x61   : > { %1190 = vmatpush1.bf16.msra.mxu1 %v2355_v34  ;;  %v2444_v34 = vld [vmem:[%s3021_s1 + $0x414] ss:$8 sps:$4 sm:$0xff]  }
  0x62   : > { %1191 = vmatprep.subr.bf16.mxu1 %v2363_v35  ;;  %v2442_v35 = vld [vmem:[%s3021_s1 + $0x410] ss:$8 sps:$4 sm:$0xff]  }
  0x63   : > { %1015 = vmatpush1.bf16.msra.mxu0 %v2358_v36  ;;  %v2186_v36 = vld.sshfl [vmem:[%s2614_s6 + $0x1] sm:$0x1 pattern:$0x75316420] }
  0x64   : > { %1016 = vmatprep.subr.bf16.mxu0 %v2366_v37  ;;  %v2447_v37 = vld [vmem:[%s3021_s1 + $0x404] ss:$8 sps:$4 sm:$0xff]  }
  0x65   : > { %1192 = vmatpush1.bf16.msra.mxu1 %v2361_v38  ;;  %v1593_v38 = vrot.slane %v2186_v36, %v2710_v4 }
  0x66   : > { %1193 = vmatprep.subr.bf16.mxu1 %v2369_v39  ;;  %v2445_v39 = vld [vmem:[%s3021_s1 + $0x400] ss:$8 sps:$4 sm:$0xff]  }
  0x67   : > { %1017 = vmatpush1.bf16.msra.mxu0 %v2364_v40  ;;  %v1595_v40 = vshrl.u32 %v1593_v38, 16 }
  0x68   : > { %1018 = vmatprep.subr.bf16.mxu0 %v2372_v41 }
  0x69   : > { %1194 = vmatpush1.bf16.msra.mxu1 %v2367_v42 }
  0x6a   : > { %1195 = vmatprep.subr.bf16.mxu1 %v2375_v44 }
  0x6b   : > { %1019 = vmatpush1.bf16.msra.mxu0 %v2370_v45 }
  0x6c   : > { %1341 = vmatprep.subr.bf16.mxu0 %v2378_v46 }
  0x6d   : > { %1196 = vmatpush1.bf16.msra.mxu1 %v2373_v48 }
  0x6e   : > { %1037 = vmatmul.mubr.bf16.vlgmr.msra.gmra.mxu0 %v2036_v49  ;;  %1501 = vmatprep.subr.bf16.mxu1 %v2381_v50  ;;  %v248_v49 = vld [vmem:[%s3022_s2] sm:$0x3] }
  0x6f   : > { %1342 = vmatpush1.bf16.msra.mxu0 %v2376_v51  ;;  %1373 = vmatprep.mubr.bf16.mxu0 %v2472_v2 }
  0x70   : > { %1214 = vmatmul.mubr.bf16.vlgmr.msra.gmra.mxu1 %v1098_v52  ;;  %1343 = vmatprep.subr.bf16.mxu0 %v2384_v53 }
  0x71   : > { %1502 = vmatpush1.bf16.msra.mxu1 %v2379_v54  ;;  %1533 = vmatprep.mubr.bf16.mxu1 %v2472_v2 }
  0x72   : > { %1503 = vmatprep.subr.bf16.mxu1 %v2387_v55 }
  0x73   : > { %1344 = vmatpush1.bf16.msra.mxu0 %v2382_v56 }
  0x74   : > { %1345 = vmatprep.subr.bf16.mxu0 %v2390_v57 }
  0x75   : > { %1504 = vmatpush1.bf16.msra.mxu1 %v2385_v58 }
  0x76   : > { %1505 = vmatprep.subr.bf16.mxu1 %v2393_v59 }
  0x77   : > { %1346 = vmatpush1.bf16.msra.mxu0 %v2388_v60 }
  0x78   : > { %1347 = vmatprep.subr.bf16.mxu0 %v2396_v62 }
  0x79   : > { %1506 = vmatpush1.bf16.msra.mxu1 %v2391_v63 }
  0x7a   : > { %1507 = vmatprep.subr.bf16.mxu1 %v2399_v0 }
  0x7b   : > { %1348 = vmatpush1.bf16.msra.mxu0 %v2394_v1 }
  0x7c   : > { %1349 = vmatprep.subr.bf16.mxu0 %v2402_v3 }
  0x7d   : > { %1508 = vmatpush1.bf16.msra.mxu1 %v2397_v5 }
  0x7e   : > { %1509 = vmatprep.subr.bf16.mxu1 %v2405_v6 }
  0x7f   : > { %1350 = vmatpush1.bf16.msra.mxu0 %v2400_v7 }
  0x80   : > { %1351 = vmatprep.subr.bf16.mxu0 %v2408_v8 }
  0x81   : > { %1510 = vmatpush1.bf16.msra.mxu1 %v2403_v9 }
  0x82   : > { %1511 = vmatprep.subr.bf16.mxu1 %v2411_v10 }
  0x83   : > { %1352 = vmatpush1.bf16.msra.mxu0 %v2406_v11 }
  0x84   : > { %1353 = vmatprep.subr.bf16.mxu0 %v2414_v12 }
  0x85   : > { %1512 = vmatpush1.bf16.msra.mxu1 %v2409_v13 }
  0x86   : > { %1513 = vmatprep.subr.bf16.mxu1 %v2417_v14 }
  0x87   : > { %1354 = vmatpush1.bf16.msra.mxu0 %v2412_v15 }
  0x88   : > { %1355 = vmatprep.subr.bf16.mxu0 %v2420_v16 }
  0x89   : > { %1514 = vmatpush1.bf16.msra.mxu1 %v2415_v17 }
  0x8a   : > { %1515 = vmatprep.subr.bf16.mxu1 %v2423_v18 }
  0x8b   : > { %1356 = vmatpush1.bf16.msra.mxu0 %v2418_v19 }
  0x8c   : > { %1678 = vmatprep.subr.bf16.mxu0 %v2426_v20 }
  0x8d   : > { %1516 = vmatpush1.bf16.msra.mxu1 %v2421_v21 }
  0x8e   : > { %1374 = vmatmul.mubr.bf16.vlgmr.msra.gmra.mxu0 %v2103_v22 }
  0x8f   : > { %1679 = vmatpush1.bf16.msra.mxu0 %v2424_v23  ;;  %1710 = vmatprep.mubr.bf16.mxu0 %v2472_v2  ;;  %v2433_v2 = vld [vmem:[%s3021_s1 + $0x440] ss:$8 sps:$4 sm:$0xff]  }
  0x90   : > { %1534 = vmatmul.mubr.bf16.vlgmr.msra.gmra.mxu1 %v2136_v25  ;;  %1680 = vmatprep.subr.bf16.mxu0 %v2429_v24 }
  0x93   : > { %1681 = vmatpush1.bf16.msra.mxu0 %v2427_v26 }
  0x94   : > { %1682 = vmatprep.subr.bf16.mxu0 %v2432_v27 }
  0x97   : > { %1683 = vmatpush1.bf16.msra.mxu0 %v2430_v28 }
  0x98   : > { %1684 = vmatprep.subr.bf16.mxu0 %v2435_v29 }
  0x9b   : > { %1685 = vmatpush1.bf16.msra.mxu0 %v2433_v2 }
  0x9c   : > { %1686 = vmatprep.subr.bf16.mxu0 %v2438_v30 }
  0x9f   : > { %1687 = vmatpush1.bf16.msra.mxu0 %v2436_v31 }
  0xa0   : > { %1688 = vmatprep.subr.bf16.mxu0 %v2441_v32 }
  0xa3   : > { %1689 = vmatpush1.bf16.msra.mxu0 %v2439_v33 }
  0xa4   : > { %1690 = vmatprep.subr.bf16.mxu0 %v2444_v34 }
  0xa7   : > { %1691 = vmatpush1.bf16.msra.mxu0 %v2442_v35 }
  0xa8   : > { %1692 = vmatprep.subr.bf16.mxu0 %v2447_v37 }
  0xab   : > { %1693 = vmatpush1.bf16.msra.mxu0 %v2445_v39 }
  0xae   : > { %1711 = vmatmul.mubr.bf16.vlgmr.msra.gmra.mxu0 %v1595_v40 }
  0xee   : > { %v381_v41 = vpop.f32.mrf.mxu0  ;;  %v541_v43 = vpop.f32.mrf.mxu1 }
  0xf0   : > { %v383_v42 = vpop.f32.mrf.mxu0  ;;  %v543_v46 = vpop.f32.mrf.mxu1 }
  0xf1   : > { %v390_v44 = vcombine.low %v381_v41, %v383_v42  ;;  %v550_v48 = vcombine.low %v541_v43, %v543_v46 }
  0xf2   : > { %v385_v45 = vpop.f32.mrf.mxu0  ;;  %v545_v51 = vpop.f32.mrf.mxu1 }
  0xf3   : > { %v397_v47 = vrot.slane %v390_v44, %v2710_v4  ;;  %v557_v53 = vrot.slane %v550_v48, %v2710_v4 }
  0xf4   : > { %v386_v50 = vpop.f32.mrf.mxu0  ;;  %v546_v54 = vpop.f32.mrf.mxu1 }
  0xf5   : > { %v404_v52 = vrot.slane %v397_v47, %v2710_v4  ;;  %v564_v56 = vrot.slane %v557_v53, %v2710_v4  ;;  %v1746_v53 = vsub.s32 1, %v2692_v61 }
  0xf7   : > { %v406_v55 = vadd.f32 %v404_v52, %v248_v49  ;;  %v1742_v52 = vsub.s32 0, %v2692_v61 }
  0xf9   : > { %v566_v57 = vadd.f32 %v564_v56, %v406_v55 }
 0x10e   : > { %v718_v58 = vpop.f32.mrf.mxu0 }
 0x110   : > { %v720_v59 = vpop.f32.mrf.mxu0  ;;  %v878_v60 = vpop.f32.mrf.mxu1 }
 0x111   : > { %v727_v62 = vcombine.low %v718_v58, %v720_v59  ;;  %v1777_v59 = vld [vmem:[%s245_s23] sm:$0x3] }
 0x112   : > { %v722_v63 = vpop.f32.mrf.mxu0  ;;  %v880_v0 = vpop.f32.mrf.mxu1 }
 0x113   : > { %v734_v1 = vrot.slane %v727_v62, %v2710_v4  ;;  %v887_v3 = vcombine.low %v878_v60, %v880_v0 }
 0x114   : > { %v723_v5 = vpop.f32.mrf.mxu0  ;;  %v882_v6 = vpop.f32.mrf.mxu1 }
 0x115   : > { %v741_v7 = vrot.slane %v734_v1, %v2710_v4  ;;  %v894_v8 = vrot.slane %v887_v3, %v2710_v4 }
 0x116   : > { %v883_v9 = vpop.f32.mrf.mxu1 }
 0x117   : > { %v743_v10 = vadd.f32 %v741_v7, %v566_v57  ;;  %v901_v11 = vrot.slane %v894_v8, %v2710_v4 }
 0x119   : > { %v903_v12 = vadd.f32 %v901_v11, %v743_v10 }
 0x12e   : > { %v1038_v13 = vpop.f32.mrf.mxu0 }
 0x130   : > { %v1040_v14 = vpop.f32.mrf.mxu0  ;;  %v1215_v15 = vpop.f32.mrf.mxu1 }
 0x131   : > { %v1047_v29 = vcombine.low %v1038_v13, %v1040_v14 }
 0x132   : > { %v1042_v16 = vpop.f32.mrf.mxu0  ;;  %v1217_v17 = vpop.f32.mrf.mxu1 }
 0x133   : > { %v1054_v2 = vrot.slane %v1047_v29, %v2710_v4  ;;  %v1224_v30 = vcombine.low %v1215_v15, %v1217_v17 }
 0x134   : > { %v1043_v18 = vpop.f32.mrf.mxu0  ;;  %v1219_v19 = vpop.f32.mrf.mxu1 }
 0x135   : > { %v1061_v32 = vrot.slane %v1054_v2, %v2710_v4  ;;  %v1231_v33 = vrot.slane %v1224_v30, %v2710_v4 }
 0x136   : > { %v1220_v20 = vpop.f32.mrf.mxu1 }
 0x137   : > { %v1063_v36 = vadd.f32 %v1061_v32, %v903_v12  ;;  %v1238_v37 = vrot.slane %v1231_v33, %v2710_v4 }
 0x139   : > { %v1240_v41 = vadd.f32 %v1238_v37, %v1063_v36 }
 0x14e   : > { %v1375_v21 = vpop.f32.mrf.mxu0 }
 0x150   : > { %v1377_v22 = vpop.f32.mrf.mxu0  ;;  %v1535_v23 = vpop.f32.mrf.mxu1 }
 0x151   : > { %v1384_v31 = vcombine.low %v1375_v21, %v1377_v22 }
 0x152   : > { %v1379_v24 = vpop.f32.mrf.mxu0  ;;  %v1537_v25 = vpop.f32.mrf.mxu1 }
 0x153   : > { %v1391_v34 = vrot.slane %v1384_v31, %v2710_v4  ;;  %v1544_v35 = vcombine.low %v1535_v23, %v1537_v25 }
 0x154   : > { %v1380_v26 = vpop.f32.mrf.mxu0  ;;  %v1539_v27 = vpop.f32.mrf.mxu1 }
 0x155   : > { %v1398_v38 = vrot.slane %v1391_v34, %v2710_v4  ;;  %v1551_v39 = vrot.slane %v1544_v35, %v2710_v4 }
 0x156   : > { %v1540_v28 = vpop.f32.mrf.mxu1 }
 0x157   : > { %v1400_v43 = vadd.f32 %v1398_v38, %v1240_v41  ;;  %v1558_v44 = vrot.slane %v1551_v39, %v2710_v4 }
 0x159   : > { %v1560_v49 = vadd.f32 %v1558_v44, %v1400_v43 }
 0x16e   : > { %v1712_v40 = vpop.f32.mrf.mxu0 }
 0x170   : > { %v1714_v42 = vpop.f32.mrf.mxu0 }
 0x171   : > { %v1721_v45 = vcombine.low %v1712_v40, %v1714_v42 }
 0x172   : > { %v1716_v46 = vpop.f32.mrf.mxu0 }
 0x173   : > { %v1728_v47 = vrot.slane %v1721_v45, %v2710_v4 }
 0x174   : > { %v1717_v48 = vpop.f32.mrf.mxu0 }
 0x175   : > { %v1735_v50 = vrot.slane %v1728_v47, %v2710_v4 }
 0x177   : > { %v1737_v51 = vadd.f32 %v1735_v50, %v1560_v49 }
 0x179   : > { %v1738_v54 = vmax.f32 %v1737_v51, 0.0 }
 0x17b   : > { %v1743_v55 = vrot.slane %v1738_v54, %v1742_v52  ;;  %v1747_v56 = vrot.slane %v1738_v54, %v1746_v53 }
 0x17d   : > { %v2203_v57 = vpack.c.bf16 %v1747_v56, %v1743_v55 }
 0x17f   : > { %v1761_v58 = vrot.slane %v2203_v57, %v2710_v4 }
 0x181   : > { %v1768_v61 = vrot.slane %v1761_v58, %v2710_v4 }
 0x183   : > { %v1778_v60 = vsel %vm1776_vm6, %v1768_v61, %v1777_v59 }
 0x184   : > { %1779 = vst [vmem:[%s245_s23] sm:$0x3] %v1778_v60 }
 0x185 PF: > { %s13_s14 = sadd.s32 1, %s2470_s14   ;;  %s3024_s12 = smov %s2466_s13 }
 0x186   : > { %p10_p5 = scmp.ge.s32.totalorder %s13_s14, 4   ;;  %s3025_s13 = smov %s3027_s15 }
 0x188   :  { %12 = sbr.rel (!%p10_p5) target bundleno = 2 (0x2), region = 82 }

</bundles_post_ra>
